<compile_context>
chip_gen: v5e
topology: v5e:2x2
jax: 0.10.0
libtpu: 0.0.40
codegen_flags: <defaults>
</compile_context>

<pallas_src>
import functools

import jax
import jax.numpy as jnp
from jax.experimental import pallas as pl
from jax.experimental.pallas import tpu as pltpu

H = 31          # logical hidden size (matches nn.LSTMCell(1, 31))
HP = 32         # padded hidden size used inside the kernel

_PREC = jax.lax.Precision.DEFAULT   # pinned: single-pass MXU, same numerics as
                                    # the previously validated run


def _lstm_seq_kernel(x_ref, wih1_ref, b1_ref, whh1_ref, wih2_ref, whh2_ref,
                     b2_ref, wlin_ref, blin_ref, out_ref, h2buf):
    B, T = x_ref.shape                      # x kept as (B, T): no wrapper transpose
    Tout = out_ref.shape[0] // B
    future = Tout - T

    wih1 = wih1_ref[...]     # (1, 4*HP)   g-gate columns pre-scaled x2
    b1 = b1_ref[...]         # (1, 4*HP)   bias_ih + bias_hh, pre-summed, g x2
    whh1 = whh1_ref[...]     # (HP, 4*HP)  g x2
    wih2 = wih2_ref[...]     # (HP, 4*HP)  g x2
    whh2 = whh2_ref[...]     # (HP, 4*HP)  g x2
    b2 = b2_ref[...]         # (1, 4*HP)   g x2
    wlin = wlin_ref[...]     # (1, HP)
    blin = blin_ref[...]     # (1, 1)

    xs = x_ref[...]          # (B, T)

    h1 = jnp.zeros((B, HP), jnp.float32)
    c1 = jnp.zeros((B, HP), jnp.float32)
    h2 = jnp.zeros((B, HP), jnp.float32)
    c2 = jnp.zeros((B, HP), jnp.float32)

    def dot(a, w):
        return jnp.dot(a, w, preferred_element_type=jnp.float32, precision=_PREC)

    def gates_to_state(gates, c):
        # PyTorch LSTMCell gate order i, f, g, o.  ONE 128-lane sigmoid; the g
        # block's pre-activation was scaled by 2 host-side, so tanh(z)=2*s(2z)-1
        # is just a VPU fixup (halves EUP pushes per gate block).
        sg = jax.nn.sigmoid(gates)
        i = sg[:, 0 * HP:1 * HP]
        f = sg[:, 1 * HP:2 * HP]
        g = 2.0 * sg[:, 2 * HP:3 * HP] - 1.0
        o = sg[:, 3 * HP:4 * HP]
        c_new = f * c + i * g
        h_new = o * jnp.tanh(c_new)
        return h_new, c_new

    # Observed timesteps.  T is a small static trip count -> keep unrolled so the
    # LLO scheduler sees the whole chain.
    for t in range(T):
        # state-independent input projection: floats off the serial chain
        g1x = xs[:, t:t + 1] * wih1 + b1
        g1 = g1x + dot(h1, whh1)
        h1, c1 = gates_to_state(g1, c1)
        # layer-2 split: the h2(prev) half overlaps layer-1's activation work
        g2p = dot(h2, whh2) + b2
        g2 = dot(h1, wih2) + g2p
        h2, c2 = gates_to_state(g2, c2)
        h2buf[t * B:(t + 1) * B, :] = h2        # off-chain sublane store

    # Autoregressive future steps.  Only the short XLU reduce (out = h2.wlin)
    # plus a rank-1 broadcast multiply stays on the h2-dependent chain; the
    # h1 @ Whh1 dot overlaps the previous step's layer 2.
    for s in range(future):
        out = jnp.sum(h2 * wlin, axis=-1, keepdims=True) + blin   # prev step's head
        g1p = dot(h1, whh1) + b1
        g1 = out * wih1 + g1p
        h1, c1 = gates_to_state(g1, c1)
        g2p = dot(h2, whh2) + b2
        g2 = dot(h1, wih2) + g2p
        h2, c2 = gates_to_state(g2, c2)
        h2buf[(T + s) * B:(T + s + 1) * B, :] = h2

    # Batched linear head over ALL steps in the epilogue: one f32 VPU mul +
    # XLU lane reduce over the stacked buffer, one dense store.
    h2all = h2buf[...]                                             # (Tout*B, HP)
    out_ref[...] = jnp.sum(h2all * wlin, axis=-1, keepdims=True) + blin


def sequence_one_channel(x, params, future=0):
    B, T = x.shape
    Tout = T + future
    vmem = pl.BlockSpec(memory_space=pltpu.MemorySpace.VMEM)
    out_flat = pl.pallas_call(
        _lstm_seq_kernel,
        out_shape=jax.ShapeDtypeStruct((Tout * B, 1), jnp.float32),
        in_specs=[vmem] * (1 + len(params)),
        out_specs=vmem,
        scratch_shapes=[pltpu.VMEM((Tout * B, HP), jnp.float32)],
    )(x, *params)
    # row index = t*B + b  ->  (Tout, B)  ->  (B, Tout).  Tiny layout plumbing.
    return out_flat.reshape(Tout, B).T


# ---------------- parameter construction (deterministic, synthetic) ----------------

def _uniform(key, shape, scale):
    return jax.random.uniform(key, shape, jnp.float32, -scale, scale)


def _pad_gate_weight(w, h, hp):
    """(4*h, k) PyTorch LSTM weight -> padded, transposed (k_pad, 4*hp)."""
    fourh, k = w.shape
    w4 = w.reshape(4, h, k)
    w4 = jnp.pad(w4, ((0, 0), (0, hp - h), (0, 0)))          # pad gate rows
    if k == h:                                                # pad hidden-indexed cols
        w4 = jnp.pad(w4, ((0, 0), (0, 0), (0, hp - h)))
        k = hp
    return w4.reshape(4 * hp, k).T                            # (k, 4*hp)


def _pad_gate_bias(b, h, hp):
    return jnp.pad(b.reshape(4, h), ((0, 0), (0, hp - h))).reshape(1, 4 * hp)


def make_params(key):
    scale = 1.0 / jnp.sqrt(jnp.float32(H))
    ks = jax.random.split(key, 11)
    # PyTorch parameter shapes
    w_ih1 = _uniform(ks[0], (4 * H, 1), scale)
    w_hh1 = _uniform(ks[1], (4 * H, H), scale)
    b_ih1 = _uniform(ks[2], (4 * H,), scale)
    b_hh1 = _uniform(ks[3], (4 * H,), scale)
    w_ih2 = _uniform(ks[4], (4 * H, H), scale)
    w_hh2 = _uniform(ks[5], (4 * H, H), scale)
    b_ih2 = _uniform(ks[6], (4 * H,), scale)
    b_hh2 = _uniform(ks[7], (4 * H,), scale)
    w_lin = _uniform(ks[8], (1, H), scale)
    b_lin = _uniform(ks[9], (1,), scale)

    raw = (w_ih1, w_hh1, b_ih1, b_hh1, w_ih2, w_hh2, b_ih2, b_hh2, w_lin, b_lin)

    wih1_p = _pad_gate_weight(w_ih1, H, HP)             # (1, 4*HP)
    whh1_p = _pad_gate_weight(w_hh1, H, HP)             # (HP, 4*HP)
    b1_p = _pad_gate_bias(b_ih1 + b_hh1, H, HP)         # (1, 4*HP)
    wih2_p = _pad_gate_weight(w_ih2, H, HP)             # (HP, 4*HP)
    whh2_p = _pad_gate_weight(w_hh2, H, HP)             # (HP, 4*HP)
    b2_p = _pad_gate_bias(b_ih2 + b_hh2, H, HP)         # (1, 4*HP)
    wlin_p = jnp.pad(w_lin, ((0, 0), (0, HP - H)))      # (1, HP)
    blin_p = b_lin.reshape(1, 1)                        # (1, 1)

    # Fold the x2 of tanh(z) = 2*sigmoid(2z) - 1 into the g-gate columns of every
    # gate weight / bias (exact f32 scaling; zeros stay zeros).
    gscale = jnp.ones((1, 4 * HP), jnp.float32).at[:, 2 * HP:3 * HP].set(2.0)
    wih1_p = wih1_p * gscale
    whh1_p = whh1_p * gscale
    b1_p = b1_p * gscale
    wih2_p = wih2_p * gscale
    whh2_p = whh2_p * gscale
    b2_p = b2_p * gscale

    kernel_params = (wih1_p, b1_p, whh1_p, wih2_p, whh2_p, b2_p, wlin_p, blin_p)
    return raw, kernel_params


def _assert_padding_invariant(kp):
    """Padded hidden units must provably stay 0: all padded gate columns, padded
    hidden-state rows and padded bias entries are zero (i=f=o=0.5, g=0 at padding,
    c initialized to 0 => padded c/h stay 0)."""
    wih1, b1, whh1, wih2, whh2, b2, wlin, blin = kp
    gate_pad = (jnp.arange(4)[:, None] * HP + jnp.arange(H, HP)[None, :]).reshape(-1)
    for m in (wih1, b1, whh1, wih2, whh2, b2):
        assert not bool(jnp.any(m[:, gate_pad] != 0.0))
    for m in (whh1, wih2, whh2):
        assert not bool(jnp.any(m[H:HP, :] != 0.0))
    assert not bool(jnp.any(wlin[:, H:] != 0.0))


# ---------------- pure-JAX reference (mirrors the PyTorch forward) ----------------

def reference_forward(x, raw, future=0):
    w_ih1, w_hh1, b_ih1, b_hh1, w_ih2, w_hh2, b_ih2, b_hh2, w_lin, b_lin = raw
    B = x.shape[0]

    def lstm_cell(xt, h, c, w_ih, w_hh, b_ih, b_hh):
        gates = xt @ w_ih.T + h @ w_hh.T + b_ih + b_hh
        i, f, g, o = jnp.split(gates, 4, axis=1)
        i, f, o = jax.nn.sigmoid(i), jax.nn.sigmoid(f), jax.nn.sigmoid(o)
        g = jnp.tanh(g)
        c_new = f * c + i * g
        return o * jnp.tanh(c_new), c_new

    h1 = c1 = h2 = c2 = jnp.zeros((B, H), jnp.float32)
    outs = []
    out = None
    for t in range(x.shape[1]):
        xt = x[:, t:t + 1]
        h1, c1 = lstm_cell(xt, h1, c1, w_ih1, w_hh1, b_ih1, b_hh1)
        h2, c2 = lstm_cell(h1, h2, c2, w_ih2, w_hh2, b_ih2, b_hh2)
        out = h2 @ w_lin.T + b_lin
        outs.append(out)
    for _ in range(future):
        h1, c1 = lstm_cell(out, h1, c1, w_ih1, w_hh1, b_ih1, b_hh1)
        h2, c2 = lstm_cell(h1, h2, c2, w_ih2, w_hh2, b_ih2, b_hh2)
        out = h2 @ w_lin.T + b_lin
        outs.append(out)
    return jnp.concatenate(outs, axis=1)


if __name__ == "__main__":
    key = jax.random.PRNGKey(0)
    k_param, k_x = jax.random.split(key)

    B, T, FUTURE = 2, 8, 4
    x = jax.random.normal(k_x, (B, T), jnp.float32)

    raw, kparams = make_params(k_param)
    _assert_padding_invariant(kparams)

    run = jax.jit(functools.partial(sequence_one_channel, future=FUTURE))
    out = jax.block_until_ready(run(x, kparams))

    ref = reference_forward(x, raw, future=FUTURE)
    assert out.shape == (B, T + FUTURE)
    # f64 (PyTorch) -> f32 (TPU), single-pass MXU precision, and algebraically
    # equivalent (split / 2*sigmoid-1) refactors: allow ~1e-3.
    assert jnp.allclose(out, ref, atol=1e-3, rtol=1e-3), (
        f"max abs err {jnp.max(jnp.abs(out - ref))}")

    print("KERNEL_OK")
</pallas_src>

<mosaic_0001>
module attributes {stable_mosaic.version = 11 : i64} {
  func.func @_lstm_seq_kernel(%arg0: memref<2x8xf32, #tpu.memory_space<vmem>>, %arg1: memref<1x128xf32, #tpu.memory_space<vmem>>, %arg2: memref<1x128xf32, #tpu.memory_space<vmem>>, %arg3: memref<32x128xf32, #tpu.memory_space<vmem>>, %arg4: memref<32x128xf32, #tpu.memory_space<vmem>>, %arg5: memref<32x128xf32, #tpu.memory_space<vmem>>, %arg6: memref<1x128xf32, #tpu.memory_space<vmem>>, %arg7: memref<1x32xf32, #tpu.memory_space<vmem>>, %arg8: memref<1x1xf32, #tpu.memory_space<vmem>>, %arg9: memref<24x1xf32, #tpu.memory_space<vmem>>, %arg10: memref<24x32xf32, #tpu.memory_space<vmem>>) attributes {dimension_semantics = [], scalar_prefetch = 0 : i64, scratch_operands = 1 : i64, tpu.core_type = #tpu.core_type<tc>} {
    %c0 = arith.constant 0 : index
    %c0_0 = arith.constant 0 : index
    %0 = vector.load %arg1[%c0, %c0_0] : memref<1x128xf32, #tpu.memory_space<vmem>>, vector<1x128xf32>
    %c0_1 = arith.constant 0 : index
    %c0_2 = arith.constant 0 : index
    %1 = vector.load %arg2[%c0_1, %c0_2] : memref<1x128xf32, #tpu.memory_space<vmem>>, vector<1x128xf32>
    %c0_3 = arith.constant 0 : index
    %c0_4 = arith.constant 0 : index
    %2 = vector.load %arg3[%c0_3, %c0_4] : memref<32x128xf32, #tpu.memory_space<vmem>>, vector<32x128xf32>
    %c0_5 = arith.constant 0 : index
    %c0_6 = arith.constant 0 : index
    %3 = vector.load %arg4[%c0_5, %c0_6] : memref<32x128xf32, #tpu.memory_space<vmem>>, vector<32x128xf32>
    %c0_7 = arith.constant 0 : index
    %c0_8 = arith.constant 0 : index
    %4 = vector.load %arg5[%c0_7, %c0_8] : memref<32x128xf32, #tpu.memory_space<vmem>>, vector<32x128xf32>
    %c0_9 = arith.constant 0 : index
    %c0_10 = arith.constant 0 : index
    %5 = vector.load %arg6[%c0_9, %c0_10] : memref<1x128xf32, #tpu.memory_space<vmem>>, vector<1x128xf32>
    %c0_11 = arith.constant 0 : index
    %c0_12 = arith.constant 0 : index
    %6 = vector.load %arg7[%c0_11, %c0_12] : memref<1x32xf32, #tpu.memory_space<vmem>>, vector<1x32xf32>
    %c0_13 = arith.constant 0 : index
    %c0_14 = arith.constant 0 : index
    %7 = vector.load %arg8[%c0_13, %c0_14] : memref<1x1xf32, #tpu.memory_space<vmem>>, vector<1x1xf32>
    %c0_15 = arith.constant 0 : index
    %c0_16 = arith.constant 0 : index
    %8 = vector.load %arg0[%c0_15, %c0_16] : memref<2x8xf32, #tpu.memory_space<vmem>>, vector<2x8xf32>
    %cst = arith.constant 0.000000e+00 : f32
    %9 = vector.broadcast %cst : f32 to vector<2x32xf32>
    %cst_17 = arith.constant 0.000000e+00 : f32
    %10 = vector.broadcast %cst_17 : f32 to vector<2x32xf32>
    %cst_18 = arith.constant 0.000000e+00 : f32
    %11 = vector.broadcast %cst_18 : f32 to vector<2x32xf32>
    %cst_19 = arith.constant 0.000000e+00 : f32
    %12 = vector.broadcast %cst_19 : f32 to vector<2x32xf32>
    %13 = vector.extract_strided_slice %8 {offsets = [0, 0], sizes = [2, 1], strides = [1, 1]} : vector<2x8xf32> to vector<2x1xf32>
    %14 = vector.broadcast %13 : vector<2x1xf32> to vector<2x128xf32>
    %15 = vector.broadcast %0 : vector<1x128xf32> to vector<2x128xf32>
    %16 = arith.mulf %14, %15 : vector<2x128xf32>
    %17 = vector.broadcast %1 : vector<1x128xf32> to vector<2x128xf32>
    %18 = arith.addf %16, %17 : vector<2x128xf32>
    %cst_20 = arith.constant dense<0.000000e+00> : vector<2x128xf32>
    %19 = tpu.matmul %9, %2, %cst_20 {dimension_numbers = #tpu.dot_dimension_numbers<[1], [0], [0], [1], [0, 0, 1, 1], [], []>} : vector<2x32xf32>, vector<32x128xf32>, vector<2x128xf32> -> vector<2x128xf32>
    %20 = arith.addf %18, %19 : vector<2x128xf32>
    %21 = arith.negf %20 : vector<2x128xf32>
    %22 = math.exp %21 : vector<2x128xf32>
    %cst_21 = arith.constant 1.000000e+00 : f32
    %23 = vector.broadcast %cst_21 : f32 to vector<2x128xf32>
    %24 = arith.addf %23, %22 : vector<2x128xf32>
    %25 = arith.divf %23, %24 : vector<2x128xf32>
    %26 = vector.extract_strided_slice %25 {offsets = [0, 0], sizes = [2, 32], strides = [1, 1]} : vector<2x128xf32> to vector<2x32xf32>
    %27 = vector.extract_strided_slice %25 {offsets = [0, 32], sizes = [2, 32], strides = [1, 1]} : vector<2x128xf32> to vector<2x32xf32>
    %28 = vector.extract_strided_slice %25 {offsets = [0, 64], sizes = [2, 32], strides = [1, 1]} : vector<2x128xf32> to vector<2x32xf32>
    %cst_22 = arith.constant 2.000000e+00 : f32
    %29 = vector.broadcast %cst_22 : f32 to vector<2x32xf32>
    %30 = arith.mulf %29, %28 : vector<2x32xf32>
    %cst_23 = arith.constant 1.000000e+00 : f32
    %31 = vector.broadcast %cst_23 : f32 to vector<2x32xf32>
    %32 = arith.subf %30, %31 : vector<2x32xf32>
    %33 = vector.extract_strided_slice %25 {offsets = [0, 96], sizes = [2, 32], strides = [1, 1]} : vector<2x128xf32> to vector<2x32xf32>
    %34 = arith.mulf %27, %10 : vector<2x32xf32>
    %35 = arith.mulf %26, %32 : vector<2x32xf32>
    %36 = arith.addf %34, %35 : vector<2x32xf32>
    %37 = math.tanh %36 : vector<2x32xf32>
    %38 = arith.mulf %33, %37 : vector<2x32xf32>
    %cst_24 = arith.constant dense<0.000000e+00> : vector<2x128xf32>
    %39 = tpu.matmul %11, %4, %cst_24 {dimension_numbers = #tpu.dot_dimension_numbers<[1], [0], [0], [1], [0, 0, 1, 1], [], []>} : vector<2x32xf32>, vector<32x128xf32>, vector<2x128xf32> -> vector<2x128xf32>
    %40 = vector.broadcast %5 : vector<1x128xf32> to vector<2x128xf32>
    %41 = arith.addf %39, %40 : vector<2x128xf32>
    %cst_25 = arith.constant dense<0.000000e+00> : vector<2x128xf32>
    %42 = tpu.matmul %38, %3, %cst_25 {dimension_numbers = #tpu.dot_dimension_numbers<[1], [0], [0], [1], [0, 0, 1, 1], [], []>} : vector<2x32xf32>, vector<32x128xf32>, vector<2x128xf32> -> vector<2x128xf32>
    %43 = arith.addf %42, %41 : vector<2x128xf32>
    %44 = arith.negf %43 : vector<2x128xf32>
    %45 = math.exp %44 : vector<2x128xf32>
    %cst_26 = arith.constant 1.000000e+00 : f32
    %46 = vector.broadcast %cst_26 : f32 to vector<2x128xf32>
    %47 = arith.addf %46, %45 : vector<2x128xf32>
    %48 = arith.divf %46, %47 : vector<2x128xf32>
    %49 = vector.extract_strided_slice %48 {offsets = [0, 0], sizes = [2, 32], strides = [1, 1]} : vector<2x128xf32> to vector<2x32xf32>
    %50 = vector.extract_strided_slice %48 {offsets = [0, 32], sizes = [2, 32], strides = [1, 1]} : vector<2x128xf32> to vector<2x32xf32>
    %51 = vector.extract_strided_slice %48 {offsets = [0, 64], sizes = [2, 32], strides = [1, 1]} : vector<2x128xf32> to vector<2x32xf32>
    %cst_27 = arith.constant 2.000000e+00 : f32
    %52 = vector.broadcast %cst_27 : f32 to vector<2x32xf32>
    %53 = arith.mulf %52, %51 : vector<2x32xf32>
    %cst_28 = arith.constant 1.000000e+00 : f32
    %54 = vector.broadcast %cst_28 : f32 to vector<2x32xf32>
    %55 = arith.subf %53, %54 : vector<2x32xf32>
    %56 = vector.extract_strided_slice %48 {offsets = [0, 96], sizes = [2, 32], strides = [1, 1]} : vector<2x128xf32> to vector<2x32xf32>
    %57 = arith.mulf %50, %12 : vector<2x32xf32>
    %58 = arith.mulf %49, %55 : vector<2x32xf32>
    %59 = arith.addf %57, %58 : vector<2x32xf32>
    %60 = math.tanh %59 : vector<2x32xf32>
    %61 = arith.mulf %56, %60 : vector<2x32xf32>
    %c0_29 = arith.constant 0 : index
    %c0_30 = arith.constant 0 : index
    %62 = vector.load %arg10[%c0_29, %c0_30] : memref<24x32xf32, #tpu.memory_space<vmem>>, vector<2x32xf32>
    tpu.vector_store %arg10[%c0_29, %c0_30], %61 {strides = array<i32>} : memref<24x32xf32, #tpu.memory_space<vmem>>, vector<2x32xf32>,
    %63 = vector.extract_strided_slice %8 {offsets = [0, 1], sizes = [2, 1], strides = [1, 1]} : vector<2x8xf32> to vector<2x1xf32>
    %64 = vector.broadcast %63 : vector<2x1xf32> to vector<2x128xf32>
    %65 = vector.broadcast %0 : vector<1x128xf32> to vector<2x128xf32>
    %66 = arith.mulf %64, %65 : vector<2x128xf32>
    %67 = vector.broadcast %1 : vector<1x128xf32> to vector<2x128xf32>
    %68 = arith.addf %66, %67 : vector<2x128xf32>
    %cst_31 = arith.constant dense<0.000000e+00> : vector<2x128xf32>
    %69 = tpu.matmul %38, %2, %cst_31 {dimension_numbers = #tpu.dot_dimension_numbers<[1], [0], [0], [1], [0, 0, 1, 1], [], []>} : vector<2x32xf32>, vector<32x128xf32>, vector<2x128xf32> -> vector<2x128xf32>
    %70 = arith.addf %68, %69 : vector<2x128xf32>
    %71 = arith.negf %70 : vector<2x128xf32>
    %72 = math.exp %71 : vector<2x128xf32>
    %cst_32 = arith.constant 1.000000e+00 : f32
    %73 = vector.broadcast %cst_32 : f32 to vector<2x128xf32>
    %74 = arith.addf %73, %72 : vector<2x128xf32>
    %75 = arith.divf %73, %74 : vector<2x128xf32>
    %76 = vector.extract_strided_slice %75 {offsets = [0, 0], sizes = [2, 32], strides = [1, 1]} : vector<2x128xf32> to vector<2x32xf32>
    %77 = vector.extract_strided_slice %75 {offsets = [0, 32], sizes = [2, 32], strides = [1, 1]} : vector<2x128xf32> to vector<2x32xf32>
    %78 = vector.extract_strided_slice %75 {offsets = [0, 64], sizes = [2, 32], strides = [1, 1]} : vector<2x128xf32> to vector<2x32xf32>
    %cst_33 = arith.constant 2.000000e+00 : f32
    %79 = vector.broadcast %cst_33 : f32 to vector<2x32xf32>
    %80 = arith.mulf %79, %78 : vector<2x32xf32>
    %cst_34 = arith.constant 1.000000e+00 : f32
    %81 = vector.broadcast %cst_34 : f32 to vector<2x32xf32>
    %82 = arith.subf %80, %81 : vector<2x32xf32>
    %83 = vector.extract_strided_slice %75 {offsets = [0, 96], sizes = [2, 32], strides = [1, 1]} : vector<2x128xf32> to vector<2x32xf32>
    %84 = arith.mulf %77, %36 : vector<2x32xf32>
    %85 = arith.mulf %76, %82 : vector<2x32xf32>
    %86 = arith.addf %84, %85 : vector<2x32xf32>
    %87 = math.tanh %86 : vector<2x32xf32>
    %88 = arith.mulf %83, %87 : vector<2x32xf32>
    %cst_35 = arith.constant dense<0.000000e+00> : vector<2x128xf32>
    %89 = tpu.matmul %61, %4, %cst_35 {dimension_numbers = #tpu.dot_dimension_numbers<[1], [0], [0], [1], [0, 0, 1, 1], [], []>} : vector<2x32xf32>, vector<32x128xf32>, vector<2x128xf32> -> vector<2x128xf32>
    %90 = vector.broadcast %5 : vector<1x128xf32> to vector<2x128xf32>
    %91 = arith.addf %89, %90 : vector<2x128xf32>
    %cst_36 = arith.constant dense<0.000000e+00> : vector<2x128xf32>
    %92 = tpu.matmul %88, %3, %cst_36 {dimension_numbers = #tpu.dot_dimension_numbers<[1], [0], [0], [1], [0, 0, 1, 1], [], []>} : vector<2x32xf32>, vector<32x128xf32>, vector<2x128xf32> -> vector<2x128xf32>
    %93 = arith.addf %92, %91 : vector<2x128xf32>
    %94 = arith.negf %93 : vector<2x128xf32>
    %95 = math.exp %94 : vector<2x128xf32>
    %cst_37 = arith.constant 1.000000e+00 : f32
    %96 = vector.broadcast %cst_37 : f32 to vector<2x128xf32>
    %97 = arith.addf %96, %95 : vector<2x128xf32>
    %98 = arith.divf %96, %97 : vector<2x128xf32>
    %99 = vector.extract_strided_slice %98 {offsets = [0, 0], sizes = [2, 32], strides = [1, 1]} : vector<2x128xf32> to vector<2x32xf32>
    %100 = vector.extract_strided_slice %98 {offsets = [0, 32], sizes = [2, 32], strides = [1, 1]} : vector<2x128xf32> to vector<2x32xf32>
    %101 = vector.extract_strided_slice %98 {offsets = [0, 64], sizes = [2, 32], strides = [1, 1]} : vector<2x128xf32> to vector<2x32xf32>
    %cst_38 = arith.constant 2.000000e+00 : f32
    %102 = vector.broadcast %cst_38 : f32 to vector<2x32xf32>
    %103 = arith.mulf %102, %101 : vector<2x32xf32>
    %cst_39 = arith.constant 1.000000e+00 : f32
    %104 = vector.broadcast %cst_39 : f32 to vector<2x32xf32>
    %105 = arith.subf %103, %104 : vector<2x32xf32>
    %106 = vector.extract_strided_slice %98 {offsets = [0, 96], sizes = [2, 32], strides = [1, 1]} : vector<2x128xf32> to vector<2x32xf32>
    %107 = arith.mulf %100, %59 : vector<2x32xf32>
    %108 = arith.mulf %99, %105 : vector<2x32xf32>
    %109 = arith.addf %107, %108 : vector<2x32xf32>
    %110 = math.tanh %109 : vector<2x32xf32>
    %111 = arith.mulf %106, %110 : vector<2x32xf32>
    %c2 = arith.constant 2 : index
    %c0_40 = arith.constant 0 : index
    %112 = vector.load %arg10[%c2, %c0_40] : memref<24x32xf32, #tpu.memory_space<vmem>>, vector<2x32xf32>
    tpu.vector_store %arg10[%c2, %c0_40], %111 {strides = array<i32>} : memref<24x32xf32, #tpu.memory_space<vmem>>, vector<2x32xf32>,
    %113 = vector.extract_strided_slice %8 {offsets = [0, 2], sizes = [2, 1], strides = [1, 1]} : vector<2x8xf32> to vector<2x1xf32>
    %114 = vector.broadcast %113 : vector<2x1xf32> to vector<2x128xf32>
    %115 = vector.broadcast %0 : vector<1x128xf32> to vector<2x128xf32>
    %116 = arith.mulf %114, %115 : vector<2x128xf32>
    %117 = vector.broadcast %1 : vector<1x128xf32> to vector<2x128xf32>
    %118 = arith.addf %116, %117 : vector<2x128xf32>
    %cst_41 = arith.constant dense<0.000000e+00> : vector<2x128xf32>
    %119 = tpu.matmul %88, %2, %cst_41 {dimension_numbers = #tpu.dot_dimension_numbers<[1], [0], [0], [1], [0, 0, 1, 1], [], []>} : vector<2x32xf32>, vector<32x128xf32>, vector<2x128xf32> -> vector<2x128xf32>
    %120 = arith.addf %118, %119 : vector<2x128xf32>
    %121 = arith.negf %120 : vector<2x128xf32>
    %122 = math.exp %121 : vector<2x128xf32>
    %cst_42 = arith.constant 1.000000e+00 : f32
    %123 = vector.broadcast %cst_42 : f32 to vector<2x128xf32>
    %124 = arith.addf %123, %122 : vector<2x128xf32>
    %125 = arith.divf %123, %124 : vector<2x128xf32>
    %126 = vector.extract_strided_slice %125 {offsets = [0, 0], sizes = [2, 32], strides = [1, 1]} : vector<2x128xf32> to vector<2x32xf32>
    %127 = vector.extract_strided_slice %125 {offsets = [0, 32], sizes = [2, 32], strides = [1, 1]} : vector<2x128xf32> to vector<2x32xf32>
    %128 = vector.extract_strided_slice %125 {offsets = [0, 64], sizes = [2, 32], strides = [1, 1]} : vector<2x128xf32> to vector<2x32xf32>
    %cst_43 = arith.constant 2.000000e+00 : f32
    %129 = vector.broadcast %cst_43 : f32 to vector<2x32xf32>
    %130 = arith.mulf %129, %128 : vector<2x32xf32>
    %cst_44 = arith.constant 1.000000e+00 : f32
    %131 = vector.broadcast %cst_44 : f32 to vector<2x32xf32>
    %132 = arith.subf %130, %131 : vector<2x32xf32>
    %133 = vector.extract_strided_slice %125 {offsets = [0, 96], sizes = [2, 32], strides = [1, 1]} : vector<2x128xf32> to vector<2x32xf32>
    %134 = arith.mulf %127, %86 : vector<2x32xf32>
    %135 = arith.mulf %126, %132 : vector<2x32xf32>
    %136 = arith.addf %134, %135 : vector<2x32xf32>
    %137 = math.tanh %136 : vector<2x32xf32>
    %138 = arith.mulf %133, %137 : vector<2x32xf32>
    %cst_45 = arith.constant dense<0.000000e+00> : vector<2x128xf32>
    %139 = tpu.matmul %111, %4, %cst_45 {dimension_numbers = #tpu.dot_dimension_numbers<[1], [0], [0], [1], [0, 0, 1, 1], [], []>} : vector<2x32xf32>, vector<32x128xf32>, vector<2x128xf32> -> vector<2x128xf32>
    %140 = vector.broadcast %5 : vector<1x128xf32> to vector<2x128xf32>
    %141 = arith.addf %139, %140 : vector<2x128xf32>
    %cst_46 = arith.constant dense<0.000000e+00> : vector<2x128xf32>
    %142 = tpu.matmul %138, %3, %cst_46 {dimension_numbers = #tpu.dot_dimension_numbers<[1], [0], [0], [1], [0, 0, 1, 1], [], []>} : vector<2x32xf32>, vector<32x128xf32>, vector<2x128xf32> -> vector<2x128xf32>
    %143 = arith.addf %142, %141 : vector<2x128xf32>
    %144 = arith.negf %143 : vector<2x128xf32>
    %145 = math.exp %144 : vector<2x128xf32>
    %cst_47 = arith.constant 1.000000e+00 : f32
    %146 = vector.broadcast %cst_47 : f32 to vector<2x128xf32>
    %147 = arith.addf %146, %145 : vector<2x128xf32>
    %148 = arith.divf %146, %147 : vector<2x128xf32>
    %149 = vector.extract_strided_slice %148 {offsets = [0, 0], sizes = [2, 32], strides = [1, 1]} : vector<2x128xf32> to vector<2x32xf32>
    %150 = vector.extract_strided_slice %148 {offsets = [0, 32], sizes = [2, 32], strides = [1, 1]} : vector<2x128xf32> to vector<2x32xf32>
    %151 = vector.extract_strided_slice %148 {offsets = [0, 64], sizes = [2, 32], strides = [1, 1]} : vector<2x128xf32> to vector<2x32xf32>
    %cst_48 = arith.constant 2.000000e+00 : f32
    %152 = vector.broadcast %cst_48 : f32 to vector<2x32xf32>
    %153 = arith.mulf %152, %151 : vector<2x32xf32>
    %cst_49 = arith.constant 1.000000e+00 : f32
    %154 = vector.broadcast %cst_49 : f32 to vector<2x32xf32>
    %155 = arith.subf %153, %154 : vector<2x32xf32>
    %156 = vector.extract_strided_slice %148 {offsets = [0, 96], sizes = [2, 32], strides = [1, 1]} : vector<2x128xf32> to vector<2x32xf32>
    %157 = arith.mulf %150, %109 : vector<2x32xf32>
    %158 = arith.mulf %149, %155 : vector<2x32xf32>
    %159 = arith.addf %157, %158 : vector<2x32xf32>
    %160 = math.tanh %159 : vector<2x32xf32>
    %161 = arith.mulf %156, %160 : vector<2x32xf32>
    %c4 = arith.constant 4 : index
    %c0_50 = arith.constant 0 : index
    %162 = vector.load %arg10[%c4, %c0_50] : memref<24x32xf32, #tpu.memory_space<vmem>>, vector<2x32xf32>
    tpu.vector_store %arg10[%c4, %c0_50], %161 {strides = array<i32>} : memref<24x32xf32, #tpu.memory_space<vmem>>, vector<2x32xf32>,
    %163 = vector.extract_strided_slice %8 {offsets = [0, 3], sizes = [2, 1], strides = [1, 1]} : vector<2x8xf32> to vector<2x1xf32>
    %164 = vector.broadcast %163 : vector<2x1xf32> to vector<2x128xf32>
    %165 = vector.broadcast %0 : vector<1x128xf32> to vector<2x128xf32>
    %166 = arith.mulf %164, %165 : vector<2x128xf32>
    %167 = vector.broadcast %1 : vector<1x128xf32> to vector<2x128xf32>
    %168 = arith.addf %166, %167 : vector<2x128xf32>
    %cst_51 = arith.constant dense<0.000000e+00> : vector<2x128xf32>
    %169 = tpu.matmul %138, %2, %cst_51 {dimension_numbers = #tpu.dot_dimension_numbers<[1], [0], [0], [1], [0, 0, 1, 1], [], []>} : vector<2x32xf32>, vector<32x128xf32>, vector<2x128xf32> -> vector<2x128xf32>
    %170 = arith.addf %168, %169 : vector<2x128xf32>
    %171 = arith.negf %170 : vector<2x128xf32>
    %172 = math.exp %171 : vector<2x128xf32>
    %cst_52 = arith.constant 1.000000e+00 : f32
    %173 = vector.broadcast %cst_52 : f32 to vector<2x128xf32>
    %174 = arith.addf %173, %172 : vector<2x128xf32>
    %175 = arith.divf %173, %174 : vector<2x128xf32>
    %176 = vector.extract_strided_slice %175 {offsets = [0, 0], sizes = [2, 32], strides = [1, 1]} : vector<2x128xf32> to vector<2x32xf32>
    %177 = vector.extract_strided_slice %175 {offsets = [0, 32], sizes = [2, 32], strides = [1, 1]} : vector<2x128xf32> to vector<2x32xf32>
    %178 = vector.extract_strided_slice %175 {offsets = [0, 64], sizes = [2, 32], strides = [1, 1]} : vector<2x128xf32> to vector<2x32xf32>
    %cst_53 = arith.constant 2.000000e+00 : f32
    %179 = vector.broadcast %cst_53 : f32 to vector<2x32xf32>
    %180 = arith.mulf %179, %178 : vector<2x32xf32>
    %cst_54 = arith.constant 1.000000e+00 : f32
    %181 = vector.broadcast %cst_54 : f32 to vector<2x32xf32>
    %182 = arith.subf %180, %181 : vector<2x32xf32>
    %183 = vector.extract_strided_slice %175 {offsets = [0, 96], sizes = [2, 32], strides = [1, 1]} : vector<2x128xf32> to vector<2x32xf32>
    %184 = arith.mulf %177, %136 : vector<2x32xf32>
    %185 = arith.mulf %176, %182 : vector<2x32xf32>
    %186 = arith.addf %184, %185 : vector<2x32xf32>
    %187 = math.tanh %186 : vector<2x32xf32>
    %188 = arith.mulf %183, %187 : vector<2x32xf32>
    %cst_55 = arith.constant dense<0.000000e+00> : vector<2x128xf32>
    %189 = tpu.matmul %161, %4, %cst_55 {dimension_numbers = #tpu.dot_dimension_numbers<[1], [0], [0], [1], [0, 0, 1, 1], [], []>} : vector<2x32xf32>, vector<32x128xf32>, vector<2x128xf32> -> vector<2x128xf32>
    %190 = vector.broadcast %5 : vector<1x128xf32> to vector<2x128xf32>
    %191 = arith.addf %189, %190 : vector<2x128xf32>
    %cst_56 = arith.constant dense<0.000000e+00> : vector<2x128xf32>
    %192 = tpu.matmul %188, %3, %cst_56 {dimension_numbers = #tpu.dot_dimension_numbers<[1], [0], [0], [1], [0, 0, 1, 1], [], []>} : vector<2x32xf32>, vector<32x128xf32>, vector<2x128xf32> -> vector<2x128xf32>
    %193 = arith.addf %192, %191 : vector<2x128xf32>
    %194 = arith.negf %193 : vector<2x128xf32>
    %195 = math.exp %194 : vector<2x128xf32>
    %cst_57 = arith.constant 1.000000e+00 : f32
    %196 = vector.broadcast %cst_57 : f32 to vector<2x128xf32>
    %197 = arith.addf %196, %195 : vector<2x128xf32>
    %198 = arith.divf %196, %197 : vector<2x128xf32>
    %199 = vector.extract_strided_slice %198 {offsets = [0, 0], sizes = [2, 32], strides = [1, 1]} : vector<2x128xf32> to vector<2x32xf32>
    %200 = vector.extract_strided_slice %198 {offsets = [0, 32], sizes = [2, 32], strides = [1, 1]} : vector<2x128xf32> to vector<2x32xf32>
    %201 = vector.extract_strided_slice %198 {offsets = [0, 64], sizes = [2, 32], strides = [1, 1]} : vector<2x128xf32> to vector<2x32xf32>
    %cst_58 = arith.constant 2.000000e+00 : f32
    %202 = vector.broadcast %cst_58 : f32 to vector<2x32xf32>
    %203 = arith.mulf %202, %201 : vector<2x32xf32>
    %cst_59 = arith.constant 1.000000e+00 : f32
    %204 = vector.broadcast %cst_59 : f32 to vector<2x32xf32>
    %205 = arith.subf %203, %204 : vector<2x32xf32>
    %206 = vector.extract_strided_slice %198 {offsets = [0, 96], sizes = [2, 32], strides = [1, 1]} : vector<2x128xf32> to vector<2x32xf32>
    %207 = arith.mulf %200, %159 : vector<2x32xf32>
    %208 = arith.mulf %199, %205 : vector<2x32xf32>
    %209 = arith.addf %207, %208 : vector<2x32xf32>
    %210 = math.tanh %209 : vector<2x32xf32>
    %211 = arith.mulf %206, %210 : vector<2x32xf32>
    %c6 = arith.constant 6 : index
    %c0_60 = arith.constant 0 : index
    %212 = vector.load %arg10[%c6, %c0_60] : memref<24x32xf32, #tpu.memory_space<vmem>>, vector<2x32xf32>
    tpu.vector_store %arg10[%c6, %c0_60], %211 {strides = array<i32>} : memref<24x32xf32, #tpu.memory_space<vmem>>, vector<2x32xf32>,
    %213 = vector.extract_strided_slice %8 {offsets = [0, 4], sizes = [2, 1], strides = [1, 1]} : vector<2x8xf32> to vector<2x1xf32>
    %214 = vector.broadcast %213 : vector<2x1xf32> to vector<2x128xf32>
    %215 = vector.broadcast %0 : vector<1x128xf32> to vector<2x128xf32>
    %216 = arith.mulf %214, %215 : vector<2x128xf32>
    %217 = vector.broadcast %1 : vector<1x128xf32> to vector<2x128xf32>
    %218 = arith.addf %216, %217 : vector<2x128xf32>
    %cst_61 = arith.constant dense<0.000000e+00> : vector<2x128xf32>
    %219 = tpu.matmul %188, %2, %cst_61 {dimension_numbers = #tpu.dot_dimension_numbers<[1], [0], [0], [1], [0, 0, 1, 1], [], []>} : vector<2x32xf32>, vector<32x128xf32>, vector<2x128xf32> -> vector<2x128xf32>
    %220 = arith.addf %218, %219 : vector<2x128xf32>
    %221 = arith.negf %220 : vector<2x128xf32>
    %222 = math.exp %221 : vector<2x128xf32>
    %cst_62 = arith.constant 1.000000e+00 : f32
    %223 = vector.broadcast %cst_62 : f32 to vector<2x128xf32>
    %224 = arith.addf %223, %222 : vector<2x128xf32>
    %225 = arith.divf %223, %224 : vector<2x128xf32>
    %226 = vector.extract_strided_slice %225 {offsets = [0, 0], sizes = [2, 32], strides = [1, 1]} : vector<2x128xf32> to vector<2x32xf32>
    %227 = vector.extract_strided_slice %225 {offsets = [0, 32], sizes = [2, 32], strides = [1, 1]} : vector<2x128xf32> to vector<2x32xf32>
    %228 = vector.extract_strided_slice %225 {offsets = [0, 64], sizes = [2, 32], strides = [1, 1]} : vector<2x128xf32> to vector<2x32xf32>
    %cst_63 = arith.constant 2.000000e+00 : f32
    %229 = vector.broadcast %cst_63 : f32 to vector<2x32xf32>
    %230 = arith.mulf %229, %228 : vector<2x32xf32>
    %cst_64 = arith.constant 1.000000e+00 : f32
    %231 = vector.broadcast %cst_64 : f32 to vector<2x32xf32>
    %232 = arith.subf %230, %231 : vector<2x32xf32>
    %233 = vector.extract_strided_slice %225 {offsets = [0, 96], sizes = [2, 32], strides = [1, 1]} : vector<2x128xf32> to vector<2x32xf32>
    %234 = arith.mulf %227, %186 : vector<2x32xf32>
    %235 = arith.mulf %226, %232 : vector<2x32xf32>
    %236 = arith.addf %234, %235 : vector<2x32xf32>
    %237 = math.tanh %236 : vector<2x32xf32>
    %238 = arith.mulf %233, %237 : vector<2x32xf32>
    %cst_65 = arith.constant dense<0.000000e+00> : vector<2x128xf32>
    %239 = tpu.matmul %211, %4, %cst_65 {dimension_numbers = #tpu.dot_dimension_numbers<[1], [0], [0], [1], [0, 0, 1, 1], [], []>} : vector<2x32xf32>, vector<32x128xf32>, vector<2x128xf32> -> vector<2x128xf32>
    %240 = vector.broadcast %5 : vector<1x128xf32> to vector<2x128xf32>
    %241 = arith.addf %239, %240 : vector<2x128xf32>
    %cst_66 = arith.constant dense<0.000000e+00> : vector<2x128xf32>
    %242 = tpu.matmul %238, %3, %cst_66 {dimension_numbers = #tpu.dot_dimension_numbers<[1], [0], [0], [1], [0, 0, 1, 1], [], []>} : vector<2x32xf32>, vector<32x128xf32>, vector<2x128xf32> -> vector<2x128xf32>
    %243 = arith.addf %242, %241 : vector<2x128xf32>
    %244 = arith.negf %243 : vector<2x128xf32>
    %245 = math.exp %244 : vector<2x128xf32>
    %cst_67 = arith.constant 1.000000e+00 : f32
    %246 = vector.broadcast %cst_67 : f32 to vector<2x128xf32>
    %247 = arith.addf %246, %245 : vector<2x128xf32>
    %248 = arith.divf %246, %247 : vector<2x128xf32>
    %249 = vector.extract_strided_slice %248 {offsets = [0, 0], sizes = [2, 32], strides = [1, 1]} : vector<2x128xf32> to vector<2x32xf32>
    %250 = vector.extract_strided_slice %248 {offsets = [0, 32], sizes = [2, 32], strides = [1, 1]} : vector<2x128xf32> to vector<2x32xf32>
    %251 = vector.extract_strided_slice %248 {offsets = [0, 64], sizes = [2, 32], strides = [1, 1]} : vector<2x128xf32> to vector<2x32xf32>
    %cst_68 = arith.constant 2.000000e+00 : f32
    %252 = vector.broadcast %cst_68 : f32 to vector<2x32xf32>
    %253 = arith.mulf %252, %251 : vector<2x32xf32>
    %cst_69 = arith.constant 1.000000e+00 : f32
    %254 = vector.broadcast %cst_69 : f32 to vector<2x32xf32>
    %255 = arith.subf %253, %254 : vector<2x32xf32>
    %256 = vector.extract_strided_slice %248 {offsets = [0, 96], sizes = [2, 32], strides = [1, 1]} : vector<2x128xf32> to vector<2x32xf32>
    %257 = arith.mulf %250, %209 : vector<2x32xf32>
    %258 = arith.mulf %249, %255 : vector<2x32xf32>
    %259 = arith.addf %257, %258 : vector<2x32xf32>
    %260 = math.tanh %259 : vector<2x32xf32>
    %261 = arith.mulf %256, %260 : vector<2x32xf32>
    %c8 = arith.constant 8 : index
    %c0_70 = arith.constant 0 : index
    %262 = vector.load %arg10[%c8, %c0_70] : memref<24x32xf32, #tpu.memory_space<vmem>>, vector<2x32xf32>
    tpu.vector_store %arg10[%c8, %c0_70], %261 {strides = array<i32>} : memref<24x32xf32, #tpu.memory_space<vmem>>, vector<2x32xf32>,
    %263 = vector.extract_strided_slice %8 {offsets = [0, 5], sizes = [2, 1], strides = [1, 1]} : vector<2x8xf32> to vector<2x1xf32>
    %264 = vector.broadcast %263 : vector<2x1xf32> to vector<2x128xf32>
    %265 = vector.broadcast %0 : vector<1x128xf32> to vector<2x128xf32>
    %266 = arith.mulf %264, %265 : vector<2x128xf32>
    %267 = vector.broadcast %1 : vector<1x128xf32> to vector<2x128xf32>
    %268 = arith.addf %266, %267 : vector<2x128xf32>
    %cst_71 = arith.constant dense<0.000000e+00> : vector<2x128xf32>
    %269 = tpu.matmul %238, %2, %cst_71 {dimension_numbers = #tpu.dot_dimension_numbers<[1], [0], [0], [1], [0, 0, 1, 1], [], []>} : vector<2x32xf32>, vector<32x128xf32>, vector<2x128xf32> -> vector<2x128xf32>
    %270 = arith.addf %268, %269 : vector<2x128xf32>
    %271 = arith.negf %270 : vector<2x128xf32>
    %272 = math.exp %271 : vector<2x128xf32>
    %cst_72 = arith.constant 1.000000e+00 : f32
    %273 = vector.broadcast %cst_72 : f32 to vector<2x128xf32>
    %274 = arith.addf %273, %272 : vector<2x128xf32>
    %275 = arith.divf %273, %274 : vector<2x128xf32>
    %276 = vector.extract_strided_slice %275 {offsets = [0, 0], sizes = [2, 32], strides = [1, 1]} : vector<2x128xf32> to vector<2x32xf32>
    %277 = vector.extract_strided_slice %275 {offsets = [0, 32], sizes = [2, 32], strides = [1, 1]} : vector<2x128xf32> to vector<2x32xf32>
    %278 = vector.extract_strided_slice %275 {offsets = [0, 64], sizes = [2, 32], strides = [1, 1]} : vector<2x128xf32> to vector<2x32xf32>
    %cst_73 = arith.constant 2.000000e+00 : f32
    %279 = vector.broadcast %cst_73 : f32 to vector<2x32xf32>
    %280 = arith.mulf %279, %278 : vector<2x32xf32>
    %cst_74 = arith.constant 1.000000e+00 : f32
    %281 = vector.broadcast %cst_74 : f32 to vector<2x32xf32>
    %282 = arith.subf %280, %281 : vector<2x32xf32>
    %283 = vector.extract_strided_slice %275 {offsets = [0, 96], sizes = [2, 32], strides = [1, 1]} : vector<2x128xf32> to vector<2x32xf32>
    %284 = arith.mulf %277, %236 : vector<2x32xf32>
    %285 = arith.mulf %276, %282 : vector<2x32xf32>
    %286 = arith.addf %284, %285 : vector<2x32xf32>
    %287 = math.tanh %286 : vector<2x32xf32>
    %288 = arith.mulf %283, %287 : vector<2x32xf32>
    %cst_75 = arith.constant dense<0.000000e+00> : vector<2x128xf32>
    %289 = tpu.matmul %261, %4, %cst_75 {dimension_numbers = #tpu.dot_dimension_numbers<[1], [0], [0], [1], [0, 0, 1, 1], [], []>} : vector<2x32xf32>, vector<32x128xf32>, vector<2x128xf32> -> vector<2x128xf32>
    %290 = vector.broadcast %5 : vector<1x128xf32> to vector<2x128xf32>
    %291 = arith.addf %289, %290 : vector<2x128xf32>
    %cst_76 = arith.constant dense<0.000000e+00> : vector<2x128xf32>
    %292 = tpu.matmul %288, %3, %cst_76 {dimension_numbers = #tpu.dot_dimension_numbers<[1], [0], [0], [1], [0, 0, 1, 1], [], []>} : vector<2x32xf32>, vector<32x128xf32>, vector<2x128xf32> -> vector<2x128xf32>
    %293 = arith.addf %292, %291 : vector<2x128xf32>
    %294 = arith.negf %293 : vector<2x128xf32>
    %295 = math.exp %294 : vector<2x128xf32>
    %cst_77 = arith.constant 1.000000e+00 : f32
    %296 = vector.broadcast %cst_77 : f32 to vector<2x128xf32>
    %297 = arith.addf %296, %295 : vector<2x128xf32>
    %298 = arith.divf %296, %297 : vector<2x128xf32>
    %299 = vector.extract_strided_slice %298 {offsets = [0, 0], sizes = [2, 32], strides = [1, 1]} : vector<2x128xf32> to vector<2x32xf32>
    %300 = vector.extract_strided_slice %298 {offsets = [0, 32], sizes = [2, 32], strides = [1, 1]} : vector<2x128xf32> to vector<2x32xf32>
    %301 = vector.extract_strided_slice %298 {offsets = [0, 64], sizes = [2, 32], strides = [1, 1]} : vector<2x128xf32> to vector<2x32xf32>
    %cst_78 = arith.constant 2.000000e+00 : f32
    %302 = vector.broadcast %cst_78 : f32 to vector<2x32xf32>
    %303 = arith.mulf %302, %301 : vector<2x32xf32>
    %cst_79 = arith.constant 1.000000e+00 : f32
    %304 = vector.broadcast %cst_79 : f32 to vector<2x32xf32>
    %305 = arith.subf %303, %304 : vector<2x32xf32>
    %306 = vector.extract_strided_slice %298 {offsets = [0, 96], sizes = [2, 32], strides = [1, 1]} : vector<2x128xf32> to vector<2x32xf32>
    %307 = arith.mulf %300, %259 : vector<2x32xf32>
    %308 = arith.mulf %299, %305 : vector<2x32xf32>
    %309 = arith.addf %307, %308 : vector<2x32xf32>
    %310 = math.tanh %309 : vector<2x32xf32>
    %311 = arith.mulf %306, %310 : vector<2x32xf32>
    %c10 = arith.constant 10 : index
    %c0_80 = arith.constant 0 : index
    %312 = vector.load %arg10[%c10, %c0_80] : memref<24x32xf32, #tpu.memory_space<vmem>>, vector<2x32xf32>
    tpu.vector_store %arg10[%c10, %c0_80], %311 {strides = array<i32>} : memref<24x32xf32, #tpu.memory_space<vmem>>, vector<2x32xf32>,
    %313 = vector.extract_strided_slice %8 {offsets = [0, 6], sizes = [2, 1], strides = [1, 1]} : vector<2x8xf32> to vector<2x1xf32>
    %314 = vector.broadcast %313 : vector<2x1xf32> to vector<2x128xf32>
    %315 = vector.broadcast %0 : vector<1x128xf32> to vector<2x128xf32>
    %316 = arith.mulf %314, %315 : vector<2x128xf32>
    %317 = vector.broadcast %1 : vector<1x128xf32> to vector<2x128xf32>
    %318 = arith.addf %316, %317 : vector<2x128xf32>
    %cst_81 = arith.constant dense<0.000000e+00> : vector<2x128xf32>
    %319 = tpu.matmul %288, %2, %cst_81 {dimension_numbers = #tpu.dot_dimension_numbers<[1], [0], [0], [1], [0, 0, 1, 1], [], []>} : vector<2x32xf32>, vector<32x128xf32>, vector<2x128xf32> -> vector<2x128xf32>
    %320 = arith.addf %318, %319 : vector<2x128xf32>
    %321 = arith.negf %320 : vector<2x128xf32>
    %322 = math.exp %321 : vector<2x128xf32>
    %cst_82 = arith.constant 1.000000e+00 : f32
    %323 = vector.broadcast %cst_82 : f32 to vector<2x128xf32>
    %324 = arith.addf %323, %322 : vector<2x128xf32>
    %325 = arith.divf %323, %324 : vector<2x128xf32>
    %326 = vector.extract_strided_slice %325 {offsets = [0, 0], sizes = [2, 32], strides = [1, 1]} : vector<2x128xf32> to vector<2x32xf32>
    %327 = vector.extract_strided_slice %325 {offsets = [0, 32], sizes = [2, 32], strides = [1, 1]} : vector<2x128xf32> to vector<2x32xf32>
    %328 = vector.extract_strided_slice %325 {offsets = [0, 64], sizes = [2, 32], strides = [1, 1]} : vector<2x128xf32> to vector<2x32xf32>
    %cst_83 = arith.constant 2.000000e+00 : f32
    %329 = vector.broadcast %cst_83 : f32 to vector<2x32xf32>
    %330 = arith.mulf %329, %328 : vector<2x32xf32>
    %cst_84 = arith.constant 1.000000e+00 : f32
    %331 = vector.broadcast %cst_84 : f32 to vector<2x32xf32>
    %332 = arith.subf %330, %331 : vector<2x32xf32>
    %333 = vector.extract_strided_slice %325 {offsets = [0, 96], sizes = [2, 32], strides = [1, 1]} : vector<2x128xf32> to vector<2x32xf32>
    %334 = arith.mulf %327, %286 : vector<2x32xf32>
    %335 = arith.mulf %326, %332 : vector<2x32xf32>
    %336 = arith.addf %334, %335 : vector<2x32xf32>
    %337 = math.tanh %336 : vector<2x32xf32>
    %338 = arith.mulf %333, %337 : vector<2x32xf32>
    %cst_85 = arith.constant dense<0.000000e+00> : vector<2x128xf32>
    %339 = tpu.matmul %311, %4, %cst_85 {dimension_numbers = #tpu.dot_dimension_numbers<[1], [0], [0], [1], [0, 0, 1, 1], [], []>} : vector<2x32xf32>, vector<32x128xf32>, vector<2x128xf32> -> vector<2x128xf32>
    %340 = vector.broadcast %5 : vector<1x128xf32> to vector<2x128xf32>
    %341 = arith.addf %339, %340 : vector<2x128xf32>
    %cst_86 = arith.constant dense<0.000000e+00> : vector<2x128xf32>
    %342 = tpu.matmul %338, %3, %cst_86 {dimension_numbers = #tpu.dot_dimension_numbers<[1], [0], [0], [1], [0, 0, 1, 1], [], []>} : vector<2x32xf32>, vector<32x128xf32>, vector<2x128xf32> -> vector<2x128xf32>
    %343 = arith.addf %342, %341 : vector<2x128xf32>
    %344 = arith.negf %343 : vector<2x128xf32>
    %345 = math.exp %344 : vector<2x128xf32>
    %cst_87 = arith.constant 1.000000e+00 : f32
    %346 = vector.broadcast %cst_87 : f32 to vector<2x128xf32>
    %347 = arith.addf %346, %345 : vector<2x128xf32>
    %348 = arith.divf %346, %347 : vector<2x128xf32>
    %349 = vector.extract_strided_slice %348 {offsets = [0, 0], sizes = [2, 32], strides = [1, 1]} : vector<2x128xf32> to vector<2x32xf32>
    %350 = vector.extract_strided_slice %348 {offsets = [0, 32], sizes = [2, 32], strides = [1, 1]} : vector<2x128xf32> to vector<2x32xf32>
    %351 = vector.extract_strided_slice %348 {offsets = [0, 64], sizes = [2, 32], strides = [1, 1]} : vector<2x128xf32> to vector<2x32xf32>
    %cst_88 = arith.constant 2.000000e+00 : f32
    %352 = vector.broadcast %cst_88 : f32 to vector<2x32xf32>
    %353 = arith.mulf %352, %351 : vector<2x32xf32>
    %cst_89 = arith.constant 1.000000e+00 : f32
    %354 = vector.broadcast %cst_89 : f32 to vector<2x32xf32>
    %355 = arith.subf %353, %354 : vector<2x32xf32>
    %356 = vector.extract_strided_slice %348 {offsets = [0, 96], sizes = [2, 32], strides = [1, 1]} : vector<2x128xf32> to vector<2x32xf32>
    %357 = arith.mulf %350, %309 : vector<2x32xf32>
    %358 = arith.mulf %349, %355 : vector<2x32xf32>
    %359 = arith.addf %357, %358 : vector<2x32xf32>
    %360 = math.tanh %359 : vector<2x32xf32>
    %361 = arith.mulf %356, %360 : vector<2x32xf32>
    %c12 = arith.constant 12 : index
    %c0_90 = arith.constant 0 : index
    %362 = vector.load %arg10[%c12, %c0_90] : memref<24x32xf32, #tpu.memory_space<vmem>>, vector<2x32xf32>
    tpu.vector_store %arg10[%c12, %c0_90], %361 {strides = array<i32>} : memref<24x32xf32, #tpu.memory_space<vmem>>, vector<2x32xf32>,
    %363 = vector.extract_strided_slice %8 {offsets = [0, 7], sizes = [2, 1], strides = [1, 1]} : vector<2x8xf32> to vector<2x1xf32>
    %364 = vector.broadcast %363 : vector<2x1xf32> to vector<2x128xf32>
    %365 = vector.broadcast %0 : vector<1x128xf32> to vector<2x128xf32>
    %366 = arith.mulf %364, %365 : vector<2x128xf32>
    %367 = vector.broadcast %1 : vector<1x128xf32> to vector<2x128xf32>
    %368 = arith.addf %366, %367 : vector<2x128xf32>
    %cst_91 = arith.constant dense<0.000000e+00> : vector<2x128xf32>
    %369 = tpu.matmul %338, %2, %cst_91 {dimension_numbers = #tpu.dot_dimension_numbers<[1], [0], [0], [1], [0, 0, 1, 1], [], []>} : vector<2x32xf32>, vector<32x128xf32>, vector<2x128xf32> -> vector<2x128xf32>
    %370 = arith.addf %368, %369 : vector<2x128xf32>
    %371 = arith.negf %370 : vector<2x128xf32>
    %372 = math.exp %371 : vector<2x128xf32>
    %cst_92 = arith.constant 1.000000e+00 : f32
    %373 = vector.broadcast %cst_92 : f32 to vector<2x128xf32>
    %374 = arith.addf %373, %372 : vector<2x128xf32>
    %375 = arith.divf %373, %374 : vector<2x128xf32>
    %376 = vector.extract_strided_slice %375 {offsets = [0, 0], sizes = [2, 32], strides = [1, 1]} : vector<2x128xf32> to vector<2x32xf32>
    %377 = vector.extract_strided_slice %375 {offsets = [0, 32], sizes = [2, 32], strides = [1, 1]} : vector<2x128xf32> to vector<2x32xf32>
    %378 = vector.extract_strided_slice %375 {offsets = [0, 64], sizes = [2, 32], strides = [1, 1]} : vector<2x128xf32> to vector<2x32xf32>
    %cst_93 = arith.constant 2.000000e+00 : f32
    %379 = vector.broadcast %cst_93 : f32 to vector<2x32xf32>
    %380 = arith.mulf %379, %378 : vector<2x32xf32>
    %cst_94 = arith.constant 1.000000e+00 : f32
    %381 = vector.broadcast %cst_94 : f32 to vector<2x32xf32>
    %382 = arith.subf %380, %381 : vector<2x32xf32>
    %383 = vector.extract_strided_slice %375 {offsets = [0, 96], sizes = [2, 32], strides = [1, 1]} : vector<2x128xf32> to vector<2x32xf32>
    %384 = arith.mulf %377, %336 : vector<2x32xf32>
    %385 = arith.mulf %376, %382 : vector<2x32xf32>
    %386 = arith.addf %384, %385 : vector<2x32xf32>
    %387 = math.tanh %386 : vector<2x32xf32>
    %388 = arith.mulf %383, %387 : vector<2x32xf32>
    %cst_95 = arith.constant dense<0.000000e+00> : vector<2x128xf32>
    %389 = tpu.matmul %361, %4, %cst_95 {dimension_numbers = #tpu.dot_dimension_numbers<[1], [0], [0], [1], [0, 0, 1, 1], [], []>} : vector<2x32xf32>, vector<32x128xf32>, vector<2x128xf32> -> vector<2x128xf32>
    %390 = vector.broadcast %5 : vector<1x128xf32> to vector<2x128xf32>
    %391 = arith.addf %389, %390 : vector<2x128xf32>
    %cst_96 = arith.constant dense<0.000000e+00> : vector<2x128xf32>
    %392 = tpu.matmul %388, %3, %cst_96 {dimension_numbers = #tpu.dot_dimension_numbers<[1], [0], [0], [1], [0, 0, 1, 1], [], []>} : vector<2x32xf32>, vector<32x128xf32>, vector<2x128xf32> -> vector<2x128xf32>
    %393 = arith.addf %392, %391 : vector<2x128xf32>
    %394 = arith.negf %393 : vector<2x128xf32>
    %395 = math.exp %394 : vector<2x128xf32>
    %cst_97 = arith.constant 1.000000e+00 : f32
    %396 = vector.broadcast %cst_97 : f32 to vector<2x128xf32>
    %397 = arith.addf %396, %395 : vector<2x128xf32>
    %398 = arith.divf %396, %397 : vector<2x128xf32>
    %399 = vector.extract_strided_slice %398 {offsets = [0, 0], sizes = [2, 32], strides = [1, 1]} : vector<2x128xf32> to vector<2x32xf32>
    %400 = vector.extract_strided_slice %398 {offsets = [0, 32], sizes = [2, 32], strides = [1, 1]} : vector<2x128xf32> to vector<2x32xf32>
    %401 = vector.extract_strided_slice %398 {offsets = [0, 64], sizes = [2, 32], strides = [1, 1]} : vector<2x128xf32> to vector<2x32xf32>
    %cst_98 = arith.constant 2.000000e+00 : f32
    %402 = vector.broadcast %cst_98 : f32 to vector<2x32xf32>
    %403 = arith.mulf %402, %401 : vector<2x32xf32>
    %cst_99 = arith.constant 1.000000e+00 : f32
    %404 = vector.broadcast %cst_99 : f32 to vector<2x32xf32>
    %405 = arith.subf %403, %404 : vector<2x32xf32>
    %406 = vector.extract_strided_slice %398 {offsets = [0, 96], sizes = [2, 32], strides = [1, 1]} : vector<2x128xf32> to vector<2x32xf32>
    %407 = arith.mulf %400, %359 : vector<2x32xf32>
    %408 = arith.mulf %399, %405 : vector<2x32xf32>
    %409 = arith.addf %407, %408 : vector<2x32xf32>
    %410 = math.tanh %409 : vector<2x32xf32>
    %411 = arith.mulf %406, %410 : vector<2x32xf32>
    %c14 = arith.constant 14 : index
    %c0_100 = arith.constant 0 : index
    %412 = vector.load %arg10[%c14, %c0_100] : memref<24x32xf32, #tpu.memory_space<vmem>>, vector<2x32xf32>
    tpu.vector_store %arg10[%c14, %c0_100], %411 {strides = array<i32>} : memref<24x32xf32, #tpu.memory_space<vmem>>, vector<2x32xf32>,
    %413 = vector.broadcast %6 : vector<1x32xf32> to vector<2x32xf32>
    %414 = arith.mulf %411, %413 : vector<2x32xf32>
    %cst_101 = arith.constant dense<0.000000e+00> : vector<2xf32>
    %415 = vector.multi_reduction <add>, %414, %cst_101 [1] : vector<2x32xf32> to vector<2xf32>
    %416 = vector.shape_cast %415 : vector<2xf32> to vector<2x1xf32>
    %417 = vector.broadcast %7 : vector<1x1xf32> to vector<2x1xf32>
    %418 = arith.addf %416, %417 : vector<2x1xf32>
    %cst_102 = arith.constant dense<0.000000e+00> : vector<2x128xf32>
    %419 = tpu.matmul %388, %2, %cst_102 {dimension_numbers = #tpu.dot_dimension_numbers<[1], [0], [0], [1], [0, 0, 1, 1], [], []>} : vector<2x32xf32>, vector<32x128xf32>, vector<2x128xf32> -> vector<2x128xf32>
    %420 = vector.broadcast %1 : vector<1x128xf32> to vector<2x128xf32>
    %421 = arith.addf %419, %420 : vector<2x128xf32>
    %422 = vector.broadcast %418 : vector<2x1xf32> to vector<2x128xf32>
    %423 = vector.broadcast %0 : vector<1x128xf32> to vector<2x128xf32>
    %424 = arith.mulf %422, %423 : vector<2x128xf32>
    %425 = arith.addf %424, %421 : vector<2x128xf32>
    %426 = arith.negf %425 : vector<2x128xf32>
    %427 = math.exp %426 : vector<2x128xf32>
    %cst_103 = arith.constant 1.000000e+00 : f32
    %428 = vector.broadcast %cst_103 : f32 to vector<2x128xf32>
    %429 = arith.addf %428, %427 : vector<2x128xf32>
    %430 = arith.divf %428, %429 : vector<2x128xf32>
    %431 = vector.extract_strided_slice %430 {offsets = [0, 0], sizes = [2, 32], strides = [1, 1]} : vector<2x128xf32> to vector<2x32xf32>
    %432 = vector.extract_strided_slice %430 {offsets = [0, 32], sizes = [2, 32], strides = [1, 1]} : vector<2x128xf32> to vector<2x32xf32>
    %433 = vector.extract_strided_slice %430 {offsets = [0, 64], sizes = [2, 32], strides = [1, 1]} : vector<2x128xf32> to vector<2x32xf32>
    %cst_104 = arith.constant 2.000000e+00 : f32
    %434 = vector.broadcast %cst_104 : f32 to vector<2x32xf32>
    %435 = arith.mulf %434, %433 : vector<2x32xf32>
    %cst_105 = arith.constant 1.000000e+00 : f32
    %436 = vector.broadcast %cst_105 : f32 to vector<2x32xf32>
    %437 = arith.subf %435, %436 : vector<2x32xf32>
    %438 = vector.extract_strided_slice %430 {offsets = [0, 96], sizes = [2, 32], strides = [1, 1]} : vector<2x128xf32> to vector<2x32xf32>
    %439 = arith.mulf %432, %386 : vector<2x32xf32>
    %440 = arith.mulf %431, %437 : vector<2x32xf32>
    %441 = arith.addf %439, %440 : vector<2x32xf32>
    %442 = math.tanh %441 : vector<2x32xf32>
    %443 = arith.mulf %438, %442 : vector<2x32xf32>
    %cst_106 = arith.constant dense<0.000000e+00> : vector<2x128xf32>
    %444 = tpu.matmul %411, %4, %cst_106 {dimension_numbers = #tpu.dot_dimension_numbers<[1], [0], [0], [1], [0, 0, 1, 1], [], []>} : vector<2x32xf32>, vector<32x128xf32>, vector<2x128xf32> -> vector<2x128xf32>
    %445 = vector.broadcast %5 : vector<1x128xf32> to vector<2x128xf32>
    %446 = arith.addf %444, %445 : vector<2x128xf32>
    %cst_107 = arith.constant dense<0.000000e+00> : vector<2x128xf32>
    %447 = tpu.matmul %443, %3, %cst_107 {dimension_numbers = #tpu.dot_dimension_numbers<[1], [0], [0], [1], [0, 0, 1, 1], [], []>} : vector<2x32xf32>, vector<32x128xf32>, vector<2x128xf32> -> vector<2x128xf32>
    %448 = arith.addf %447, %446 : vector<2x128xf32>
    %449 = arith.negf %448 : vector<2x128xf32>
    %450 = math.exp %449 : vector<2x128xf32>
    %cst_108 = arith.constant 1.000000e+00 : f32
    %451 = vector.broadcast %cst_108 : f32 to vector<2x128xf32>
    %452 = arith.addf %451, %450 : vector<2x128xf32>
    %453 = arith.divf %451, %452 : vector<2x128xf32>
    %454 = vector.extract_strided_slice %453 {offsets = [0, 0], sizes = [2, 32], strides = [1, 1]} : vector<2x128xf32> to vector<2x32xf32>
    %455 = vector.extract_strided_slice %453 {offsets = [0, 32], sizes = [2, 32], strides = [1, 1]} : vector<2x128xf32> to vector<2x32xf32>
    %456 = vector.extract_strided_slice %453 {offsets = [0, 64], sizes = [2, 32], strides = [1, 1]} : vector<2x128xf32> to vector<2x32xf32>
    %cst_109 = arith.constant 2.000000e+00 : f32
    %457 = vector.broadcast %cst_109 : f32 to vector<2x32xf32>
    %458 = arith.mulf %457, %456 : vector<2x32xf32>
    %cst_110 = arith.constant 1.000000e+00 : f32
    %459 = vector.broadcast %cst_110 : f32 to vector<2x32xf32>
    %460 = arith.subf %458, %459 : vector<2x32xf32>
    %461 = vector.extract_strided_slice %453 {offsets = [0, 96], sizes = [2, 32], strides = [1, 1]} : vector<2x128xf32> to vector<2x32xf32>
    %462 = arith.mulf %455, %409 : vector<2x32xf32>
    %463 = arith.mulf %454, %460 : vector<2x32xf32>
    %464 = arith.addf %462, %463 : vector<2x32xf32>
    %465 = math.tanh %464 : vector<2x32xf32>
    %466 = arith.mulf %461, %465 : vector<2x32xf32>
    %c16 = arith.constant 16 : index
    %c0_111 = arith.constant 0 : index
    %467 = vector.load %arg10[%c16, %c0_111] : memref<24x32xf32, #tpu.memory_space<vmem>>, vector<2x32xf32>
    tpu.vector_store %arg10[%c16, %c0_111], %466 {strides = array<i32>} : memref<24x32xf32, #tpu.memory_space<vmem>>, vector<2x32xf32>,
    %468 = vector.broadcast %6 : vector<1x32xf32> to vector<2x32xf32>
    %469 = arith.mulf %466, %468 : vector<2x32xf32>
    %cst_112 = arith.constant dense<0.000000e+00> : vector<2xf32>
    %470 = vector.multi_reduction <add>, %469, %cst_112 [1] : vector<2x32xf32> to vector<2xf32>
    %471 = vector.shape_cast %470 : vector<2xf32> to vector<2x1xf32>
    %472 = vector.broadcast %7 : vector<1x1xf32> to vector<2x1xf32>
    %473 = arith.addf %471, %472 : vector<2x1xf32>
    %cst_113 = arith.constant dense<0.000000e+00> : vector<2x128xf32>
    %474 = tpu.matmul %443, %2, %cst_113 {dimension_numbers = #tpu.dot_dimension_numbers<[1], [0], [0], [1], [0, 0, 1, 1], [], []>} : vector<2x32xf32>, vector<32x128xf32>, vector<2x128xf32> -> vector<2x128xf32>
    %475 = vector.broadcast %1 : vector<1x128xf32> to vector<2x128xf32>
    %476 = arith.addf %474, %475 : vector<2x128xf32>
    %477 = vector.broadcast %473 : vector<2x1xf32> to vector<2x128xf32>
    %478 = vector.broadcast %0 : vector<1x128xf32> to vector<2x128xf32>
    %479 = arith.mulf %477, %478 : vector<2x128xf32>
    %480 = arith.addf %479, %476 : vector<2x128xf32>
    %481 = arith.negf %480 : vector<2x128xf32>
    %482 = math.exp %481 : vector<2x128xf32>
    %cst_114 = arith.constant 1.000000e+00 : f32
    %483 = vector.broadcast %cst_114 : f32 to vector<2x128xf32>
    %484 = arith.addf %483, %482 : vector<2x128xf32>
    %485 = arith.divf %483, %484 : vector<2x128xf32>
    %486 = vector.extract_strided_slice %485 {offsets = [0, 0], sizes = [2, 32], strides = [1, 1]} : vector<2x128xf32> to vector<2x32xf32>
    %487 = vector.extract_strided_slice %485 {offsets = [0, 32], sizes = [2, 32], strides = [1, 1]} : vector<2x128xf32> to vector<2x32xf32>
    %488 = vector.extract_strided_slice %485 {offsets = [0, 64], sizes = [2, 32], strides = [1, 1]} : vector<2x128xf32> to vector<2x32xf32>
    %cst_115 = arith.constant 2.000000e+00 : f32
    %489 = vector.broadcast %cst_115 : f32 to vector<2x32xf32>
    %490 = arith.mulf %489, %488 : vector<2x32xf32>
    %cst_116 = arith.constant 1.000000e+00 : f32
    %491 = vector.broadcast %cst_116 : f32 to vector<2x32xf32>
    %492 = arith.subf %490, %491 : vector<2x32xf32>
    %493 = vector.extract_strided_slice %485 {offsets = [0, 96], sizes = [2, 32], strides = [1, 1]} : vector<2x128xf32> to vector<2x32xf32>
    %494 = arith.mulf %487, %441 : vector<2x32xf32>
    %495 = arith.mulf %486, %492 : vector<2x32xf32>
    %496 = arith.addf %494, %495 : vector<2x32xf32>
    %497 = math.tanh %496 : vector<2x32xf32>
    %498 = arith.mulf %493, %497 : vector<2x32xf32>
    %cst_117 = arith.constant dense<0.000000e+00> : vector<2x128xf32>
    %499 = tpu.matmul %466, %4, %cst_117 {dimension_numbers = #tpu.dot_dimension_numbers<[1], [0], [0], [1], [0, 0, 1, 1], [], []>} : vector<2x32xf32>, vector<32x128xf32>, vector<2x128xf32> -> vector<2x128xf32>
    %500 = vector.broadcast %5 : vector<1x128xf32> to vector<2x128xf32>
    %501 = arith.addf %499, %500 : vector<2x128xf32>
    %cst_118 = arith.constant dense<0.000000e+00> : vector<2x128xf32>
    %502 = tpu.matmul %498, %3, %cst_118 {dimension_numbers = #tpu.dot_dimension_numbers<[1], [0], [0], [1], [0, 0, 1, 1], [], []>} : vector<2x32xf32>, vector<32x128xf32>, vector<2x128xf32> -> vector<2x128xf32>
    %503 = arith.addf %502, %501 : vector<2x128xf32>
    %504 = arith.negf %503 : vector<2x128xf32>
    %505 = math.exp %504 : vector<2x128xf32>
    %cst_119 = arith.constant 1.000000e+00 : f32
    %506 = vector.broadcast %cst_119 : f32 to vector<2x128xf32>
    %507 = arith.addf %506, %505 : vector<2x128xf32>
    %508 = arith.divf %506, %507 : vector<2x128xf32>
    %509 = vector.extract_strided_slice %508 {offsets = [0, 0], sizes = [2, 32], strides = [1, 1]} : vector<2x128xf32> to vector<2x32xf32>
    %510 = vector.extract_strided_slice %508 {offsets = [0, 32], sizes = [2, 32], strides = [1, 1]} : vector<2x128xf32> to vector<2x32xf32>
    %511 = vector.extract_strided_slice %508 {offsets = [0, 64], sizes = [2, 32], strides = [1, 1]} : vector<2x128xf32> to vector<2x32xf32>
    %cst_120 = arith.constant 2.000000e+00 : f32
    %512 = vector.broadcast %cst_120 : f32 to vector<2x32xf32>
    %513 = arith.mulf %512, %511 : vector<2x32xf32>
    %cst_121 = arith.constant 1.000000e+00 : f32
    %514 = vector.broadcast %cst_121 : f32 to vector<2x32xf32>
    %515 = arith.subf %513, %514 : vector<2x32xf32>
    %516 = vector.extract_strided_slice %508 {offsets = [0, 96], sizes = [2, 32], strides = [1, 1]} : vector<2x128xf32> to vector<2x32xf32>
    %517 = arith.mulf %510, %464 : vector<2x32xf32>
    %518 = arith.mulf %509, %515 : vector<2x32xf32>
    %519 = arith.addf %517, %518 : vector<2x32xf32>
    %520 = math.tanh %519 : vector<2x32xf32>
    %521 = arith.mulf %516, %520 : vector<2x32xf32>
    %c18 = arith.constant 18 : index
    %c0_122 = arith.constant 0 : index
    %522 = vector.load %arg10[%c18, %c0_122] : memref<24x32xf32, #tpu.memory_space<vmem>>, vector<2x32xf32>
    tpu.vector_store %arg10[%c18, %c0_122], %521 {strides = array<i32>} : memref<24x32xf32, #tpu.memory_space<vmem>>, vector<2x32xf32>,
    %523 = vector.broadcast %6 : vector<1x32xf32> to vector<2x32xf32>
    %524 = arith.mulf %521, %523 : vector<2x32xf32>
    %cst_123 = arith.constant dense<0.000000e+00> : vector<2xf32>
    %525 = vector.multi_reduction <add>, %524, %cst_123 [1] : vector<2x32xf32> to vector<2xf32>
    %526 = vector.shape_cast %525 : vector<2xf32> to vector<2x1xf32>
    %527 = vector.broadcast %7 : vector<1x1xf32> to vector<2x1xf32>
    %528 = arith.addf %526, %527 : vector<2x1xf32>
    %cst_124 = arith.constant dense<0.000000e+00> : vector<2x128xf32>
    %529 = tpu.matmul %498, %2, %cst_124 {dimension_numbers = #tpu.dot_dimension_numbers<[1], [0], [0], [1], [0, 0, 1, 1], [], []>} : vector<2x32xf32>, vector<32x128xf32>, vector<2x128xf32> -> vector<2x128xf32>
    %530 = vector.broadcast %1 : vector<1x128xf32> to vector<2x128xf32>
    %531 = arith.addf %529, %530 : vector<2x128xf32>
    %532 = vector.broadcast %528 : vector<2x1xf32> to vector<2x128xf32>
    %533 = vector.broadcast %0 : vector<1x128xf32> to vector<2x128xf32>
    %534 = arith.mulf %532, %533 : vector<2x128xf32>
    %535 = arith.addf %534, %531 : vector<2x128xf32>
    %536 = arith.negf %535 : vector<2x128xf32>
    %537 = math.exp %536 : vector<2x128xf32>
    %cst_125 = arith.constant 1.000000e+00 : f32
    %538 = vector.broadcast %cst_125 : f32 to vector<2x128xf32>
    %539 = arith.addf %538, %537 : vector<2x128xf32>
    %540 = arith.divf %538, %539 : vector<2x128xf32>
    %541 = vector.extract_strided_slice %540 {offsets = [0, 0], sizes = [2, 32], strides = [1, 1]} : vector<2x128xf32> to vector<2x32xf32>
    %542 = vector.extract_strided_slice %540 {offsets = [0, 32], sizes = [2, 32], strides = [1, 1]} : vector<2x128xf32> to vector<2x32xf32>
    %543 = vector.extract_strided_slice %540 {offsets = [0, 64], sizes = [2, 32], strides = [1, 1]} : vector<2x128xf32> to vector<2x32xf32>
    %cst_126 = arith.constant 2.000000e+00 : f32
    %544 = vector.broadcast %cst_126 : f32 to vector<2x32xf32>
    %545 = arith.mulf %544, %543 : vector<2x32xf32>
    %cst_127 = arith.constant 1.000000e+00 : f32
    %546 = vector.broadcast %cst_127 : f32 to vector<2x32xf32>
    %547 = arith.subf %545, %546 : vector<2x32xf32>
    %548 = vector.extract_strided_slice %540 {offsets = [0, 96], sizes = [2, 32], strides = [1, 1]} : vector<2x128xf32> to vector<2x32xf32>
    %549 = arith.mulf %542, %496 : vector<2x32xf32>
    %550 = arith.mulf %541, %547 : vector<2x32xf32>
    %551 = arith.addf %549, %550 : vector<2x32xf32>
    %552 = math.tanh %551 : vector<2x32xf32>
    %553 = arith.mulf %548, %552 : vector<2x32xf32>
    %cst_128 = arith.constant dense<0.000000e+00> : vector<2x128xf32>
    %554 = tpu.matmul %521, %4, %cst_128 {dimension_numbers = #tpu.dot_dimension_numbers<[1], [0], [0], [1], [0, 0, 1, 1], [], []>} : vector<2x32xf32>, vector<32x128xf32>, vector<2x128xf32> -> vector<2x128xf32>
    %555 = vector.broadcast %5 : vector<1x128xf32> to vector<2x128xf32>
    %556 = arith.addf %554, %555 : vector<2x128xf32>
    %cst_129 = arith.constant dense<0.000000e+00> : vector<2x128xf32>
    %557 = tpu.matmul %553, %3, %cst_129 {dimension_numbers = #tpu.dot_dimension_numbers<[1], [0], [0], [1], [0, 0, 1, 1], [], []>} : vector<2x32xf32>, vector<32x128xf32>, vector<2x128xf32> -> vector<2x128xf32>
    %558 = arith.addf %557, %556 : vector<2x128xf32>
    %559 = arith.negf %558 : vector<2x128xf32>
    %560 = math.exp %559 : vector<2x128xf32>
    %cst_130 = arith.constant 1.000000e+00 : f32
    %561 = vector.broadcast %cst_130 : f32 to vector<2x128xf32>
    %562 = arith.addf %561, %560 : vector<2x128xf32>
    %563 = arith.divf %561, %562 : vector<2x128xf32>
    %564 = vector.extract_strided_slice %563 {offsets = [0, 0], sizes = [2, 32], strides = [1, 1]} : vector<2x128xf32> to vector<2x32xf32>
    %565 = vector.extract_strided_slice %563 {offsets = [0, 32], sizes = [2, 32], strides = [1, 1]} : vector<2x128xf32> to vector<2x32xf32>
    %566 = vector.extract_strided_slice %563 {offsets = [0, 64], sizes = [2, 32], strides = [1, 1]} : vector<2x128xf32> to vector<2x32xf32>
    %cst_131 = arith.constant 2.000000e+00 : f32
    %567 = vector.broadcast %cst_131 : f32 to vector<2x32xf32>
    %568 = arith.mulf %567, %566 : vector<2x32xf32>
    %cst_132 = arith.constant 1.000000e+00 : f32
    %569 = vector.broadcast %cst_132 : f32 to vector<2x32xf32>
    %570 = arith.subf %568, %569 : vector<2x32xf32>
    %571 = vector.extract_strided_slice %563 {offsets = [0, 96], sizes = [2, 32], strides = [1, 1]} : vector<2x128xf32> to vector<2x32xf32>
    %572 = arith.mulf %565, %519 : vector<2x32xf32>
    %573 = arith.mulf %564, %570 : vector<2x32xf32>
    %574 = arith.addf %572, %573 : vector<2x32xf32>
    %575 = math.tanh %574 : vector<2x32xf32>
    %576 = arith.mulf %571, %575 : vector<2x32xf32>
    %c20 = arith.constant 20 : index
    %c0_133 = arith.constant 0 : index
    %577 = vector.load %arg10[%c20, %c0_133] : memref<24x32xf32, #tpu.memory_space<vmem>>, vector<2x32xf32>
    tpu.vector_store %arg10[%c20, %c0_133], %576 {strides = array<i32>} : memref<24x32xf32, #tpu.memory_space<vmem>>, vector<2x32xf32>,
    %578 = vector.broadcast %6 : vector<1x32xf32> to vector<2x32xf32>
    %579 = arith.mulf %576, %578 : vector<2x32xf32>
    %cst_134 = arith.constant dense<0.000000e+00> : vector<2xf32>
    %580 = vector.multi_reduction <add>, %579, %cst_134 [1] : vector<2x32xf32> to vector<2xf32>
    %581 = vector.shape_cast %580 : vector<2xf32> to vector<2x1xf32>
    %582 = vector.broadcast %7 : vector<1x1xf32> to vector<2x1xf32>
    %583 = arith.addf %581, %582 : vector<2x1xf32>
    %cst_135 = arith.constant dense<0.000000e+00> : vector<2x128xf32>
    %584 = tpu.matmul %553, %2, %cst_135 {dimension_numbers = #tpu.dot_dimension_numbers<[1], [0], [0], [1], [0, 0, 1, 1], [], []>} : vector<2x32xf32>, vector<32x128xf32>, vector<2x128xf32> -> vector<2x128xf32>
    %585 = vector.broadcast %1 : vector<1x128xf32> to vector<2x128xf32>
    %586 = arith.addf %584, %585 : vector<2x128xf32>
    %587 = vector.broadcast %583 : vector<2x1xf32> to vector<2x128xf32>
    %588 = vector.broadcast %0 : vector<1x128xf32> to vector<2x128xf32>
    %589 = arith.mulf %587, %588 : vector<2x128xf32>
    %590 = arith.addf %589, %586 : vector<2x128xf32>
    %591 = arith.negf %590 : vector<2x128xf32>
    %592 = math.exp %591 : vector<2x128xf32>
    %cst_136 = arith.constant 1.000000e+00 : f32
    %593 = vector.broadcast %cst_136 : f32 to vector<2x128xf32>
    %594 = arith.addf %593, %592 : vector<2x128xf32>
    %595 = arith.divf %593, %594 : vector<2x128xf32>
    %596 = vector.extract_strided_slice %595 {offsets = [0, 0], sizes = [2, 32], strides = [1, 1]} : vector<2x128xf32> to vector<2x32xf32>
    %597 = vector.extract_strided_slice %595 {offsets = [0, 32], sizes = [2, 32], strides = [1, 1]} : vector<2x128xf32> to vector<2x32xf32>
    %598 = vector.extract_strided_slice %595 {offsets = [0, 64], sizes = [2, 32], strides = [1, 1]} : vector<2x128xf32> to vector<2x32xf32>
    %cst_137 = arith.constant 2.000000e+00 : f32
    %599 = vector.broadcast %cst_137 : f32 to vector<2x32xf32>
    %600 = arith.mulf %599, %598 : vector<2x32xf32>
    %cst_138 = arith.constant 1.000000e+00 : f32
    %601 = vector.broadcast %cst_138 : f32 to vector<2x32xf32>
    %602 = arith.subf %600, %601 : vector<2x32xf32>
    %603 = vector.extract_strided_slice %595 {offsets = [0, 96], sizes = [2, 32], strides = [1, 1]} : vector<2x128xf32> to vector<2x32xf32>
    %604 = arith.mulf %597, %551 : vector<2x32xf32>
    %605 = arith.mulf %596, %602 : vector<2x32xf32>
    %606 = arith.addf %604, %605 : vector<2x32xf32>
    %607 = math.tanh %606 : vector<2x32xf32>
    %608 = arith.mulf %603, %607 : vector<2x32xf32>
    %cst_139 = arith.constant dense<0.000000e+00> : vector<2x128xf32>
    %609 = tpu.matmul %576, %4, %cst_139 {dimension_numbers = #tpu.dot_dimension_numbers<[1], [0], [0], [1], [0, 0, 1, 1], [], []>} : vector<2x32xf32>, vector<32x128xf32>, vector<2x128xf32> -> vector<2x128xf32>
    %610 = vector.broadcast %5 : vector<1x128xf32> to vector<2x128xf32>
    %611 = arith.addf %609, %610 : vector<2x128xf32>
    %cst_140 = arith.constant dense<0.000000e+00> : vector<2x128xf32>
    %612 = tpu.matmul %608, %3, %cst_140 {dimension_numbers = #tpu.dot_dimension_numbers<[1], [0], [0], [1], [0, 0, 1, 1], [], []>} : vector<2x32xf32>, vector<32x128xf32>, vector<2x128xf32> -> vector<2x128xf32>
    %613 = arith.addf %612, %611 : vector<2x128xf32>
    %614 = arith.negf %613 : vector<2x128xf32>
    %615 = math.exp %614 : vector<2x128xf32>
    %cst_141 = arith.constant 1.000000e+00 : f32
    %616 = vector.broadcast %cst_141 : f32 to vector<2x128xf32>
    %617 = arith.addf %616, %615 : vector<2x128xf32>
    %618 = arith.divf %616, %617 : vector<2x128xf32>
    %619 = vector.extract_strided_slice %618 {offsets = [0, 0], sizes = [2, 32], strides = [1, 1]} : vector<2x128xf32> to vector<2x32xf32>
    %620 = vector.extract_strided_slice %618 {offsets = [0, 32], sizes = [2, 32], strides = [1, 1]} : vector<2x128xf32> to vector<2x32xf32>
    %621 = vector.extract_strided_slice %618 {offsets = [0, 64], sizes = [2, 32], strides = [1, 1]} : vector<2x128xf32> to vector<2x32xf32>
    %cst_142 = arith.constant 2.000000e+00 : f32
    %622 = vector.broadcast %cst_142 : f32 to vector<2x32xf32>
    %623 = arith.mulf %622, %621 : vector<2x32xf32>
    %cst_143 = arith.constant 1.000000e+00 : f32
    %624 = vector.broadcast %cst_143 : f32 to vector<2x32xf32>
    %625 = arith.subf %623, %624 : vector<2x32xf32>
    %626 = vector.extract_strided_slice %618 {offsets = [0, 96], sizes = [2, 32], strides = [1, 1]} : vector<2x128xf32> to vector<2x32xf32>
    %627 = arith.mulf %620, %574 : vector<2x32xf32>
    %628 = arith.mulf %619, %625 : vector<2x32xf32>
    %629 = arith.addf %627, %628 : vector<2x32xf32>
    %630 = math.tanh %629 : vector<2x32xf32>
    %631 = arith.mulf %626, %630 : vector<2x32xf32>
    %c22 = arith.constant 22 : index
    %c0_144 = arith.constant 0 : index
    %632 = vector.load %arg10[%c22, %c0_144] : memref<24x32xf32, #tpu.memory_space<vmem>>, vector<2x32xf32>
    tpu.vector_store %arg10[%c22, %c0_144], %631 {strides = array<i32>} : memref<24x32xf32, #tpu.memory_space<vmem>>, vector<2x32xf32>,
    %c0_145 = arith.constant 0 : index
    %c0_146 = arith.constant 0 : index
    %633 = vector.load %arg10[%c0_145, %c0_146] : memref<24x32xf32, #tpu.memory_space<vmem>>, vector<24x32xf32>
    %634 = vector.broadcast %6 : vector<1x32xf32> to vector<24x32xf32>
    %635 = arith.mulf %633, %634 : vector<24x32xf32>
    %cst_147 = arith.constant dense<0.000000e+00> : vector<24xf32>
    %636 = vector.multi_reduction <add>, %635, %cst_147 [1] : vector<24x32xf32> to vector<24xf32>
    %637 = vector.shape_cast %636 : vector<24xf32> to vector<24x1xf32>
    %638 = vector.broadcast %7 : vector<1x1xf32> to vector<24x1xf32>
    %639 = arith.addf %637, %638 : vector<24x1xf32>
    %c0_148 = arith.constant 0 : index
    %c0_149 = arith.constant 0 : index
    %640 = vector.load %arg9[%c0_148, %c0_149] : memref<24x1xf32, #tpu.memory_space<vmem>>, vector<24x1xf32>
    tpu.vector_store %arg9[%c0_148, %c0_149], %639 {strides = array<i32>} : memref<24x1xf32, #tpu.memory_space<vmem>>, vector<24x1xf32>,
    return
  }
}

</mosaic_0001>

<bundles_post_ra>
// kernel: sequence_one_channel.1
= control target key start
LH: loop header
LB: loop body
LE: loop exit
PB: predicated region body
PF: predicated region fallthrough
CT: control target
= control target key end

     0   :  { %s3078_s0 = inlined_call_operand.hbm [shape: f32[2,8], index: 0, kind: input, shape index: {}]   ;;  %s3079_s1 = inlined_call_operand.vmem [shape: f32[1,128], index: 1, kind: input, shape index: {}]   ;;  %s3080_s2 = inlined_call_operand.vmem [shape: f32[1,128], index: 2, kind: input, shape index: {}]   ;;  %s3081_s3 = inlined_call_operand.hbm [shape: f32[32,128], index: 3, kind: input, shape index: {}]   ;;  %s3082_s4 = inlined_call_operand.hbm [shape: f32[32,128], index: 4, kind: input, shape index: {}]   ;;  %s3083_s5 = inlined_call_operand.hbm [shape: f32[32,128], index: 5, kind: input, shape index: {}]   ;;  %s3084_s6 = inlined_call_operand.vmem [shape: f32[1,128], index: 6, kind: input, shape index: {}]   ;;  %s3085_s7 = inlined_call_operand.vmem [shape: f32[1,32], index: 7, kind: input, shape index: {}]   ;;  %s3086_s8 = inlined_call_operand.<no memory space> [shape: f32[1,1], index: 8, kind: input, shape index: {}]   ;;  %s3087_s9 = inlined_call_operand.vmem [shape: f32[24,1], index: 9, kind: output, shape index: {}]  }
   0x1   :  { %v14_v0 = vstv %s3086_s8 }
   0x2   :  { %15 = vst [vmem:[#allocation3] sm:$0x1] %v14_v0 }
   0x3   :  { %16 = vsyncpa [#allocation5], 0 }
   0x4   :  { %17 = vsyncpa [#allocation7], 0  ;;  %s38_s13 = sshll.u32 %s3081_s3, 4  ;;  %s39_s13 = int_to_ptr.hbm [resolvable:$true] %s38_s13 }
   0x5   :  { %18 = vsyncpa [#allocation10], 0  ;;  %s2439_s14 = smov [#allocation6]   ;;  %s24_s18 = sshll.u32 %s3078_s0, 4  ;;  %s25_s18 = int_to_ptr.hbm [resolvable:$true] %s24_s18 }
   0x6   :  { %s40_s15 = sshll.u32 %s2439_s14, 4  ;;  %s2440_s19 = smov 128   ;;  %s41_s15 = int_to_ptr.vmem [resolvable:$true] %s40_s15 }
   0x7   :  { %s2441_s20 = smov 8   ;;  %s2442_s8 = smov [#allocation4]  }
   0x8   :  { %46 = dma.hbm_to_vmem [thread:$0]  %s39_s13, 512, %s41_s15, [#allocation7], %s2440_s19, %s2440_s19, %s2441_s20  }
   0x9   :  { %s26_s21 = sshll.u32 %s2442_s8, 4  ;;  %s51_s24 = sshll.u32 %s3082_s4, 4  ;;  %s27_s21 = int_to_ptr.vmem [resolvable:$true] %s26_s21  ;;  %s52_s24 = int_to_ptr.hbm [resolvable:$true] %s51_s24 }
   0xa   :  { %29 = dma.hbm_to_vmem [thread:$0]  %s25_s18, 32, %s27_s21, [#allocation5]  }
   0xb   :  { %s64_s26 = sshll.u32 %s3083_s5, 4  ;;  %s2443_s27 = smov [#allocation8]   ;;  %s65_s26 = int_to_ptr.hbm [resolvable:$true] %s64_s26 }
   0xc   :  { %s53_s28 = sshll.u32 %s2443_s27, 4  ;;  %s2444_s0 = smov [#allocation9]   ;;  %s54_s28 = int_to_ptr.vmem [resolvable:$true] %s53_s28 }
   0xd   :  { %59 = dma.hbm_to_vmem [thread:$0]  %s52_s24, 512, %s54_s28, [#allocation7], %s2440_s19, %s2440_s19, %s2441_s20  }
   0xe   :  { %s66_s29 = sshll.u32 %s2444_s0, 4  ;;  %s67_s29 = int_to_ptr.vmem [resolvable:$true] %s66_s29 }
   0xf   :  { %72 = dma.hbm_to_vmem [thread:$0]  %s65_s26, 512, %s67_s29, [#allocation10], %s2440_s19, %s2440_s19, %s2441_s20  }
  0x10   :  { %2433 = dma.done.wait [#allocation5], 32  }
  0x11   :  { %2434 = vsyncadd [#allocation5], 4294967264 }
  0x12   :  { %2435 = dma.done.wait [#allocation7], 1024  }
  0x13   :  { %2436 = vsyncadd [#allocation7], 4294966272 }
  0x14   :  { %2437 = dma.done.wait [#allocation10], 512  }
  0x15   :  { %2438 = vsyncadd [#allocation10], 4294966784  ;;  %v2445_v1 = vmov 0   ;;  %v2524_v2 = vld [vmem:[#allocation6 + $0x18] sm:$0xff]  ;;  %v2526_v3 = vld [vmem:[#allocation6 + $0x10] sm:$0xff]  ;;  %v2446_v7 = vmov 0.0  }
  0x16   :  { %2160 = vset.pattern.permute.xlu0 %v2445_v1  ;;  %2169 = vset.pattern.permute.xlu1 %v2445_v1  ;;  %v2529_v4 = vld [vmem:[#allocation6 + $0x8] sm:$0xff]  ;;  %v2531_v5 = vld [vmem:[#allocation4] sm:$0x3]  ;;  %v2537_v6 = vld [vmem:[#allocation6] sm:$0xff]  ;;  %s2447_s11 = smov 64   ;;  %s2448_s12 = smov 32  }
  0x17   :  { %142 = vmatpush.msra.mxu0 %v2524_v2  ;;  %299 = vmatpush.msra.mxu3 %v2524_v2  ;;  %v2547_v8 = vld [vmem:[%s3079_s1] ss:$0 sm:$0xff]  ;;  %v2562_v36 = vld [vmem:[#allocation8 + $0x18] sm:$0xff]  ;;  %v2564_v37 = vld [vmem:[#allocation8 + $0x10] sm:$0xff]  ;;  %v2449_v46 = vmov 1   ;;  %vm126_vm4 = vcmask 261120  }
  0x18   :  { %115 = vperm.xlu0 %2160, %v2531_v5   ;;  %v2553_v11 = vld [vmem:[%s3080_s2] ss:$0 sm:$0xff]  ;;  %v2566_v38 = vld [vmem:[#allocation9 + $0x18] sm:$0xff]  ;;  %229 = vmatpush.msra.mxu2 %v2562_v36  ;;  %v2570_v39 = vld [vmem:[#allocation9 + $0x10] sm:$0xff]  ;;  %vm279_vm13 = vcmask 254976   ;;  %s2456_s21 = smov 96  }
  0x19   :  { %143 = vmatpush.msra.mxu0 %v2526_v3  ;;  %300 = vmatpush.msra.mxu3 %v2526_v3  ;;  %v2572_v40 = vld [vmem:[#allocation8 + $0x8] sm:$0xff]  ;;  %v2578_v41 = vld [vmem:[#allocation8] sm:$0xff] }
  0x1a   :  { %204 = vmatpush.msra.mxu1 %v2566_v38  ;;  %230 = vmatpush.msra.mxu2 %v2564_v37  ;;  %v2589_v44 = vld [vmem:[#allocation9 + $0x8] sm:$0xff]  ;;  %v2591_v45 = vld [vmem:[#allocation9] sm:$0xff] }
  0x1b   :  { %144 = vmatpush.msra.mxu0 %v2529_v4  ;;  %301 = vmatpush.msra.mxu3 %v2529_v4  ;;  %v2627_v50 = vld [vmem:[%s3084_s6] ss:$0 sm:$0xff] }
  0x1c   :  { %205 = vmatpush.msra.mxu1 %v2570_v39  ;;  %231 = vmatpush.msra.mxu2 %v2572_v40 }
  0x1d   :  { %145 = vmatpush.msra.mxu0 %v2537_v6  ;;  %302 = vmatpush.msra.mxu3 %v2537_v6 }
  0x1e   :  { %146 = vmatmul.f32.vlgmr.msra.gmra.mxu0 %v2446_v7  ;;  %232 = vmatpush.msra.mxu2 %v2578_v41 }
  0x1f   :  { %360 = vmatpush.msrb.mxu0 %v2566_v38  ;;  %515 = vmatpush.msrb.mxu3 %v2566_v38 }
  0x20   :  { %454 = vmatpush.msrb.mxu2 %v2524_v2  ;;  %206 = vmatpush.msra.mxu1 %v2589_v44 }
  0x21   :  { %361 = vmatpush.msrb.mxu0 %v2570_v39  ;;  %516 = vmatpush.msrb.mxu3 %v2570_v39 }
  0x22   :  { %455 = vmatpush.msrb.mxu2 %v2526_v3  ;;  %2161 = vset.pattern.permute.xlu2 %v2449_v46 }
  0x23   :  { %362 = vmatpush.msrb.mxu0 %v2589_v44  ;;  %207 = vmatpush.msra.mxu1 %v2591_v45 }
  0x24   :  { %456 = vmatpush.msrb.mxu2 %v2529_v4  ;;  %517 = vmatpush.msrb.mxu3 %v2589_v44 }
  0x25   :  { %208 = vmatmul.f32.vlgmr.msra.gmra.mxu1 %v2446_v7  ;;  %363 = vmatpush.msrb.mxu0 %v2591_v45 }
  0x26   :  { %457 = vmatpush.msrb.mxu2 %v2537_v6  ;;  %385 = vmatpush.msrb.mxu1 %v2562_v36 }
  0x27   :  { %540 = vmatpush.msra.mxu0 %v2562_v36  ;;  %518 = vmatpush.msrb.mxu3 %v2591_v45 }
  0x28   :  { %386 = vmatpush.msrb.mxu1 %v2564_v37 }
  0x29   :  { %541 = vmatpush.msra.mxu0 %v2564_v37 }
  0x2a   :  { %387 = vmatpush.msrb.mxu1 %v2572_v40 }
  0x2b   :  { %542 = vmatpush.msra.mxu0 %v2572_v40 }
  0x2c   :  { %388 = vmatpush.msrb.mxu1 %v2578_v41 }
  0x2d   :  { %543 = vmatpush.msra.mxu0 %v2578_v41 }
  0x2e   :  { %609 = vmatpush.msra.mxu1 %v2524_v2 }
  0x30   :  { %610 = vmatpush.msra.mxu1 %v2526_v3 }
  0x32   :  { %611 = vmatpush.msra.mxu1 %v2529_v4 }
  0x34   :  { %612 = vmatpush.msra.mxu1 %v2537_v6 }
  0x8a   :  { %v116_v9 = vpop.permute.xlu0 %115 }
  0x8b   :  { %v121_v10 = vmul.f32 %v2547_v8, %v116_v9 }
  0x8d   :  { %v125_v12 = vadd.f32 %v2553_v11, %v121_v10 }
  0x9b   :  { %v147_v13 = vpop.f32.mrf.mxu0 }
  0x9c   :  { %v150_v14 = vadd.f32 %v147_v13, %v125_v12 }
  0x9e   :  { %v2060_v15 = vmul.f32 -1.442695, %v150_v14 }
  0xa0   :  { %2175 = vpow2.f32 %v2060_v15 }
  0xa2   :  { %v209_v51 = vpop.f32.mrf.mxu1 }
  0xa3   :  { %v210_v52 = vadd.f32 %v2627_v50, %v209_v51 }
  0xa6   :  { %v2176_v16 = vpop.eup %2175 }
  0xa7   :  { %v154_v17 = vadd.f32 1.0, %v2176_v16 }
  0xa9   :  { %2177 = vrcp.f32 %v154_v17  ;;  %v166_v21 = vand.u32 2147483648, %v154_v17  ;;  %v164_v23 = vand.u32 2147483647, %v154_v17  ;;  %vm160_vm1 = vweird.f32 %v154_v17 }
  0xab   :  { %v167_v25 = vor.u32 1.1754944e-38, %v166_v21  ;;  %vm165_vm3 = vcmp.eq.f32.partialorder %v164_v23, 8.507059e+37 }
  0xaf   :  { %v2178_v18 = vpop.eup %2177 }
  0xb0   :  { %v156_v19 = vmul.f32 %v2178_v18, %v154_v17  ;;  %vm161_vm0 = vweird.f32 %v2178_v18 }
  0xb1   :  { %vm162_vm2 = vmor %vm160_vm1, %vm161_vm0 }
  0xb2   :  { %v157_v20 = vsub.f32 1.0, %v156_v19 }
  0xb4   :  { %v158_v22 = vmul.f32 %v2178_v18, %v157_v20 }
  0xb6   :  { %v159_v24 = vadd.f32 %v2178_v18, %v158_v22 }
  0xb8   :  { %v163_v26 = vsel %vm162_vm2, %v2178_v18, %v159_v24 }
  0xb9   :  { %v168_v27 = vsel %vm165_vm3, %v167_v25, %v163_v26 }
  0xba   :  { %v170_v28 = vmul.f32 2.0, %v168_v27  ;;  %v172_v32 = vmul.f32 0.0, %v168_v27 }
  0xbc   :  { %v2061_v29 = vadd.f32 -1.0, %v170_v28 }
  0xbe   :  { %174 = vrot.lane.b32.xlu0 %v2061_v29, %s2447_s11 }
 0x130   :  { %v175_v30 = vpop.permute.xlu0 %174 }
 0x131   :  { %v177_v31 = vmul.f32 %v175_v30, %v168_v27 }
 0x133   :  { %179 = vrot.lane.b32.xlu1 %v177_v31, %s2448_s12 }
 0x1a5   :  { %v180_v33 = vpop.permute.xlu1 %179 }
 0x1a6   :  { %v2558_v34 = vadd.f32 %v180_v33, %v172_v32 }
 0x1a8   :  { %2179 = vtanh.f32 %v2558_v34 }
 0x1ae   :  { %v2180_v35 = vpop.eup %2179 }
 0x1af   :  { %185 = vrot.lane.b32.xlu1 %v2180_v35, %s2447_s11 }
 0x221   :  { %v186_v42 = vpop.permute.xlu1 %185 }
 0x222   :  { %v188_v43 = vmul.f32 %v186_v42, %v168_v27 }
 0x224   :  { %213 = vrot.lane.b32.xlu2 %v188_v43, %s2448_s12 }
 0x22c   :  { %282 = vperm.xlu2 %2161, %v2531_v5  }
 0x27e   :  { %v214_v47 = vpop.permute.xlu2 %213 }
 0x27f   :  { %2062 = vmatmul.msk.f32.vlgmr.msra.gmra.mxu2 %vm126_vm4, %v214_v47  ;;  %2065 = vmatmul.msk.f32.vlgmr.msra.gmra.mxu3 %vm126_vm4, %v214_v47 }
 0x280   :  { %695 = vmatpush.msra.mxu3 %v2562_v36  ;;  %670 = vmatpush.msra.mxu2 %v2566_v38 }
 0x282   :  { %696 = vmatpush.msra.mxu3 %v2564_v37  ;;  %671 = vmatpush.msra.mxu2 %v2570_v39 }
 0x284   :  { %697 = vmatpush.msra.mxu3 %v2572_v40  ;;  %672 = vmatpush.msra.mxu2 %v2589_v44 }
 0x286   :  { %698 = vmatpush.msra.mxu3 %v2578_v41  ;;  %673 = vmatpush.msra.mxu2 %v2591_v45  ;;  %v283_v48 = vpop.permute.xlu2 %282 }
 0x287   :  { %v285_v49 = vmul.f32 %v2547_v8, %v283_v48 }
 0x289   :  { %v286_v53 = vadd.f32 %v2553_v11, %v285_v49 }
 0x302   :  { %v234_v54 = vpop.f32.mrf.mxu2  ;;  %v304_v55 = vpop.f32.mrf.mxu3 }
 0x303   :  { %v235_v56 = vadd.f32 %v234_v54, %v210_v52  ;;  %v307_v57 = vadd.f32 %v304_v55, %v286_v53 }
 0x305   :  { %v2063_v58 = vmul.f32 -1.442695, %v235_v56  ;;  %v2066_v59 = vmul.f32 -1.442695, %v307_v57 }
 0x307   :  { %2181 = vpow2.f32 %v2063_v58  ;;  %v2450_v58 = vmov 2  }
 0x308   :  { %2183 = vpow2.f32 %v2066_v59  ;;  %2162 = vset.pattern.permute.xlu2 %v2450_v58 }
 0x30d   :  { %v2182_v60 = vpop.eup %2181 }
 0x30e   :  { %v2184_v61 = vpop.eup %2183  ;;  %v240_v62 = vadd.f32 1.0, %v2182_v60 }
 0x30f   :  { %v311_v63 = vadd.f32 1.0, %v2184_v61 }
 0x310   :  { %2185 = vrcp.f32 %v240_v62  ;;  %v252_v14 = vand.u32 2147483648, %v240_v62  ;;  %v250_v16 = vand.u32 2147483647, %v240_v62  ;;  %vm246_vm7 = vweird.f32 %v240_v62 }
 0x311   :  { %2187 = vrcp.f32 %v311_v63  ;;  %v323_v17 = vand.u32 2147483648, %v311_v63  ;;  %v321_v19 = vand.u32 2147483647, %v311_v63  ;;  %vm317_vm9 = vweird.f32 %v311_v63 }
 0x312   :  { %v253_v21 = vor.u32 1.1754944e-38, %v252_v14  ;;  %vm251_vm10 = vcmp.eq.f32.partialorder %v250_v16, 8.507059e+37 }
 0x313   :  { %v324_v24 = vor.u32 1.1754944e-38, %v323_v17  ;;  %vm322_vm12 = vcmp.eq.f32.partialorder %v321_v19, 8.507059e+37 }
 0x316   :  { %v2186_v0 = vpop.eup %2185 }
 0x317   :  { %v2188_v7 = vpop.eup %2187  ;;  %v242_v9 = vmul.f32 %v2186_v0, %v240_v62  ;;  %vm247_vm5 = vweird.f32 %v2186_v0 }
 0x318   :  { %v313_v10 = vmul.f32 %v2188_v7, %v311_v63  ;;  %vm318_vm6 = vweird.f32 %v2188_v7  ;;  %vm248_vm8 = vmor %vm246_vm7, %vm247_vm5 }
 0x319   :  { %v243_v12 = vsub.f32 1.0, %v242_v9  ;;  %vm319_vm11 = vmor %vm317_vm9, %vm318_vm6 }
 0x31a   :  { %v314_v13 = vsub.f32 1.0, %v313_v10 }
 0x31b   :  { %v244_v15 = vmul.f32 %v2186_v0, %v243_v12 }
 0x31c   :  { %v315_v18 = vmul.f32 %v2188_v7, %v314_v13 }
 0x31d   :  { %v245_v20 = vadd.f32 %v2186_v0, %v244_v15 }
 0x31e   :  { %v316_v22 = vadd.f32 %v2188_v7, %v315_v18 }
 0x31f   :  { %v249_v23 = vsel %vm248_vm8, %v2186_v0, %v245_v20 }
 0x320   :  { %v254_v25 = vsel %vm251_vm10, %v253_v21, %v249_v23  ;;  %v320_v26 = vsel %vm319_vm11, %v2188_v7, %v316_v22 }
 0x321   :  { %v256_v27 = vmul.f32 2.0, %v254_v25  ;;  %v325_v28 = vsel %vm322_vm12, %v324_v24, %v320_v26  ;;  %v258_v43 = vmul.f32 0.0, %v254_v25 }
 0x322   :  { %v327_v29 = vmul.f32 2.0, %v325_v28  ;;  %v329_v49 = vmul.f32 %v325_v28, %v2558_v34 }
 0x323   :  { %v2064_v30 = vadd.f32 -1.0, %v256_v27 }
 0x324   :  { %v2067_v31 = vadd.f32 -1.0, %v327_v29 }
 0x325   :  { %260 = vrot.lane.b32.xlu0 %v2064_v30, %s2447_s11 }
 0x326   :  { %331 = vrot.lane.b32.xlu1 %v2067_v31, %s2447_s11 }
 0x397   :  { %v261_v32 = vpop.permute.xlu0 %260 }
 0x398   :  { %v263_v33 = vmul.f32 %v261_v32, %v254_v25  ;;  %v332_v35 = vpop.permute.xlu1 %331 }
 0x399   :  { %v334_v42 = vmul.f32 %v332_v35, %v325_v28 }
 0x39a   :  { %265 = vrot.lane.b32.xlu2 %v263_v33, %s2448_s12 }
 0x39b   :  { %336 = vrot.lane.b32.xlu0 %v334_v42, %s2448_s12 }
 0x3f4   :  { %v266_v46 = vpop.permute.xlu2 %265 }
 0x3f5   :  { %v2635_v47 = vadd.f32 %v266_v46, %v258_v43 }
 0x3f7   :  { %2189 = vtanh.f32 %v2635_v47 }
 0x3fd   :  { %v2190_v48 = vpop.eup %2189 }
 0x3fe   :  { %271 = vrot.lane.b32.xlu1 %v2190_v48, %s2447_s11 }
 0x40d   :  { %v337_v51 = vpop.permute.xlu0 %336 }
 0x40e   :  { %v2640_v52 = vadd.f32 %v337_v51, %v329_v49 }
 0x410   :  { %2191 = vtanh.f32 %v2640_v52 }
 0x416   :  { %v2192_v53 = vpop.eup %2191 }
 0x417   :  { %342 = vrot.lane.b32.xlu2 %v2192_v53, %s2447_s11 }
 0x41f   :  { %437 = vperm.xlu2 %2162, %v2531_v5  }
 0x470   :  { %v272_v54 = vpop.permute.xlu1 %271 }
 0x471   :  { %v274_v55 = vmul.f32 %v272_v54, %v254_v25  ;;  %v343_v56 = vpop.permute.xlu2 %342 }
 0x472   :  { %v345_v57 = vmul.f32 %v343_v56, %v325_v28 }
 0x473   :  { %276 = vrot.lane.b32.xlu0 %v274_v55, %s2448_s12 }
 0x474   :  { %369 = vrot.lane.b32.xlu1 %v345_v57, %s2448_s12 }
 0x479   :  { %v438_v60 = vpop.permute.xlu2 %437 }
 0x47a   :  { %v440_v62 = vmul.f32 %v2547_v8, %v438_v60 }
 0x47c   :  { %v441_v9 = vadd.f32 %v2553_v11, %v440_v62 }
 0x4e5   :  { %v277_v34 = vpop.permute.xlu0 %276 }
 0x4e6   :  { %280 = vst.msk [vmem:[#allocation2] sm:$0x3] %vm279_vm13, %v277_v34  ;;  %v370_v59 = vpop.permute.xlu1 %369  ;;  %2068 = vmatmul.msk.f32.vlgmr.msrb.gmra.mxu0 %vm126_vm4, %v277_v34 }
 0x4e7   :  { %2069 = vmatmul.msk.f32.vlgmr.msrb.gmra.mxu1 %vm126_vm4, %v370_v59  ;;  %2072 = vmatmul.msk.f32.vlgmr.msrb.gmra.mxu2 %vm126_vm4, %v370_v59 }
 0x4e8   :  { %764 = vmatpush.msrb.mxu0 %v2524_v2  ;;  %850 = vmatpush.msrb.mxu2 %v2562_v36 }
 0x4e9   :  { %825 = vmatpush.msrb.mxu1 %v2566_v38 }
 0x4ea   :  { %765 = vmatpush.msrb.mxu0 %v2526_v3  ;;  %851 = vmatpush.msrb.mxu2 %v2564_v37 }
 0x4eb   :  { %826 = vmatpush.msrb.mxu1 %v2570_v39 }
 0x4ec   :  { %766 = vmatpush.msrb.mxu0 %v2529_v4  ;;  %852 = vmatpush.msrb.mxu2 %v2572_v40 }
 0x4ed   :  { %827 = vmatpush.msrb.mxu1 %v2589_v44 }
 0x4ee   :  { %767 = vmatpush.msrb.mxu0 %v2537_v6  ;;  %853 = vmatpush.msrb.mxu2 %v2578_v41 }
 0x4ef   :  { %828 = vmatpush.msrb.mxu1 %v2591_v45 }
 0x563   :  { %v365_v61 = vpop.f32.mrf.mxu0 }
 0x564   :  { %v366_v63 = vadd.f32 %v2627_v50, %v365_v61  ;;  %v390_v0 = vpop.f32.mrf.mxu1 }
 0x566   :  { %v391_v7 = vadd.f32 %v390_v0, %v366_v63 }
 0x568   :  { %v2070_v10 = vmul.f32 -1.442695, %v391_v7 }
 0x56a   :  { %2193 = vpow2.f32 %v2070_v10  ;;  %v459_v12 = vpop.f32.mrf.mxu2 }
 0x56b   :  { %v462_v13 = vadd.f32 %v459_v12, %v441_v9 }
 0x56d   :  { %v2073_v14 = vmul.f32 -1.442695, %v462_v13  ;;  %v2451_v13 = vmov 3  }
 0x56e   :  { %2163 = vset.pattern.permute.xlu2 %v2451_v13 }
 0x56f   :  { %2195 = vpow2.f32 %v2073_v14 }
 0x570   :  { %v2194_v15 = vpop.eup %2193 }
 0x571   :  { %v396_v16 = vadd.f32 1.0, %v2194_v15 }
 0x573   :  { %2197 = vrcp.f32 %v396_v16  ;;  %v408_v22 = vand.u32 2147483648, %v396_v16  ;;  %v406_v25 = vand.u32 2147483647, %v396_v16  ;;  %vm402_vm15 = vweird.f32 %v396_v16 }
 0x575   :  { %v2196_v17 = vpop.eup %2195  ;;  %v409_v29 = vor.u32 1.1754944e-38, %v408_v22  ;;  %vm407_vm1 = vcmp.eq.f32.partialorder %v406_v25, 8.507059e+37 }
 0x576   :  { %v466_v18 = vadd.f32 1.0, %v2196_v17 }
 0x578   :  { %2199 = vrcp.f32 %v466_v18  ;;  %v478_v31 = vand.u32 2147483648, %v466_v18  ;;  %v476_v35 = vand.u32 2147483647, %v466_v18  ;;  %vm472_vm3 = vweird.f32 %v466_v18 }
 0x579   :  { %v2198_v19 = vpop.eup %2197 }
 0x57a   :  { %v398_v20 = vmul.f32 %v2198_v19, %v396_v16  ;;  %vm403_vm14 = vweird.f32 %v2198_v19  ;;  %v479_v48 = vor.u32 1.1754944e-38, %v478_v31  ;;  %vm477_vm6 = vcmp.eq.f32.partialorder %v476_v35, 8.507059e+37 }
 0x57b   :  { %vm404_vm0 = vmor %vm402_vm15, %vm403_vm14 }
 0x57c   :  { %v399_v21 = vsub.f32 1.0, %v398_v20 }
 0x57e   :  { %v2200_v23 = vpop.eup %2199  ;;  %v400_v24 = vmul.f32 %v2198_v19, %v399_v21 }
 0x57f   :  { %v468_v26 = vmul.f32 %v2200_v23, %v466_v18  ;;  %vm473_vm2 = vweird.f32 %v2200_v23 }
 0x580   :  { %v401_v27 = vadd.f32 %v2198_v19, %v400_v24  ;;  %vm474_vm5 = vmor %vm472_vm3, %vm473_vm2 }
 0x581   :  { %v469_v28 = vsub.f32 1.0, %v468_v26 }
 0x582   :  { %v405_v30 = vsel %vm404_vm0, %v2198_v19, %v401_v27 }
 0x583   :  { %v410_v32 = vsel %vm407_vm1, %v409_v29, %v405_v30  ;;  %v470_v33 = vmul.f32 %v2200_v23, %v469_v28 }
 0x584   :  { %v412_v42 = vmul.f32 2.0, %v410_v32  ;;  %v414_v34 = vmul.f32 %v410_v32, %v2635_v47 }
 0x585   :  { %v471_v43 = vadd.f32 %v2200_v23, %v470_v33 }
 0x586   :  { %v2071_v46 = vadd.f32 -1.0, %v412_v42 }
 0x587   :  { %v475_v49 = vsel %vm474_vm5, %v2200_v23, %v471_v43 }
 0x588   :  { %416 = vrot.lane.b32.xlu0 %v2071_v46, %s2447_s11  ;;  %v480_v51 = vsel %vm477_vm6, %v479_v48, %v475_v49 }
 0x589   :  { %v482_v53 = vmul.f32 2.0, %v480_v51  ;;  %v484_v62 = vmul.f32 %v480_v51, %v2640_v52 }
 0x58b   :  { %v2074_v54 = vadd.f32 -1.0, %v482_v53 }
 0x58d   :  { %486 = vrot.lane.b32.xlu1 %v2074_v54, %s2447_s11 }
 0x5fa   :  { %v417_v55 = vpop.permute.xlu0 %416 }
 0x5fb   :  { %v419_v56 = vmul.f32 %v417_v55, %v410_v32 }
 0x5fd   :  { %421 = vrot.lane.b32.xlu2 %v419_v56, %s2448_s12 }
 0x5ff   :  { %v487_v57 = vpop.permute.xlu1 %486 }
 0x600   :  { %v489_v58 = vmul.f32 %v487_v57, %v480_v51 }
 0x602   :  { %491 = vrot.lane.b32.xlu0 %v489_v58, %s2448_s12 }
 0x657   :  { %v422_v59 = vpop.permute.xlu2 %421 }
 0x658   :  { %v2671_v60 = vadd.f32 %v422_v59, %v414_v34 }
 0x65a   :  { %2201 = vtanh.f32 %v2671_v60 }
 0x660   :  { %v2202_v61 = vpop.eup %2201 }
 0x661   :  { %427 = vrot.lane.b32.xlu1 %v2202_v61, %s2447_s11 }
 0x674   :  { %v492_v63 = vpop.permute.xlu0 %491 }
 0x675   :  { %v2676_v0 = vadd.f32 %v492_v63, %v484_v62 }
 0x677   :  { %2203 = vtanh.f32 %v2676_v0 }
 0x67d   :  { %v2204_v7 = vpop.eup %2203 }
 0x67e   :  { %497 = vrot.lane.b32.xlu2 %v2204_v7, %s2447_s11 }
 0x686   :  { %592 = vperm.xlu2 %2163, %v2531_v5  }
 0x6d3   :  { %v428_v9 = vpop.permute.xlu1 %427 }
 0x6d4   :  { %v430_v47 = vmul.f32 %v428_v9, %v410_v32 }
 0x6d6   :  { %432 = vrot.lane.b32.xlu0 %v430_v47, %s2448_s12 }
 0x6d8   :  { %v498_v10 = vpop.permute.xlu2 %497 }
 0x6d9   :  { %v500_v12 = vmul.f32 %v498_v10, %v480_v51 }
 0x6db   :  { %524 = vrot.lane.b32.xlu1 %v500_v12, %s2448_s12 }
 0x6e0   :  { %v593_v15 = vpop.permute.xlu2 %592 }
 0x6e1   :  { %v595_v16 = vmul.f32 %v2547_v8, %v593_v15 }
 0x6e3   :  { %v596_v17 = vadd.f32 %v2553_v11, %v595_v16 }
 0x748   :  { %v433_v52 = vpop.permute.xlu0 %432 }
 0x749   :  { %435 = vst.msk [vmem:[#allocation2 + $0x2] sm:$0x3] %vm279_vm13, %v433_v52  ;;  %2075 = vmatmul.msk.f32.vlgmr.msrb.gmra.mxu3 %vm126_vm4, %v433_v52 }
 0x74a   :  { %919 = vmatpush.msrb.mxu3 %v2524_v2 }
 0x74c   :  { %920 = vmatpush.msrb.mxu3 %v2526_v3 }
 0x74d   :  { %v525_v14 = vpop.permute.xlu1 %524 }
 0x74e   :  { %2076 = vmatmul.msk.f32.vlgmr.msra.gmra.mxu0 %vm126_vm4, %v525_v14  ;;  %2079 = vmatmul.msk.f32.vlgmr.msra.gmra.mxu1 %vm126_vm4, %v525_v14 }
 0x74f   :  { %921 = vmatpush.msrb.mxu3 %v2529_v4  ;;  %1005 = vmatpush.msra.mxu1 %v2562_v36 }
 0x750   :  { %980 = vmatpush.msra.mxu0 %v2566_v38 }
 0x751   :  { %922 = vmatpush.msrb.mxu3 %v2537_v6  ;;  %1006 = vmatpush.msra.mxu1 %v2564_v37 }
 0x752   :  { %981 = vmatpush.msra.mxu0 %v2570_v39 }
 0x753   :  { %1007 = vmatpush.msra.mxu1 %v2572_v40 }
 0x754   :  { %982 = vmatpush.msra.mxu0 %v2589_v44 }
 0x755   :  { %1008 = vmatpush.msra.mxu1 %v2578_v41 }
 0x756   :  { %983 = vmatpush.msra.mxu0 %v2591_v45 }
 0x7cb   :  { %v614_v18 = vpop.f32.mrf.mxu1  ;;  %v545_v22 = vpop.f32.mrf.mxu0 }
 0x7cc   :  { %v617_v19 = vadd.f32 %v614_v18, %v596_v17  ;;  %v520_v20 = vpop.f32.mrf.mxu3 }
 0x7cd   :  { %v521_v21 = vadd.f32 %v2627_v50, %v520_v20 }
 0x7ce   :  { %v2080_v23 = vmul.f32 -1.442695, %v617_v19 }
 0x7cf   :  { %v546_v24 = vadd.f32 %v545_v22, %v521_v21 }
 0x7d0   :  { %2205 = vpow2.f32 %v2080_v23 }
 0x7d1   :  { %v2077_v25 = vmul.f32 -1.442695, %v546_v24  ;;  %v2452_v24 = vmov 4  }
 0x7d2   :  { %2164 = vset.pattern.permute.xlu2 %v2452_v24 }
 0x7d3   :  { %2207 = vpow2.f32 %v2077_v25 }
 0x7d6   :  { %v2206_v26 = vpop.eup %2205 }
 0x7d7   :  { %v621_v27 = vadd.f32 1.0, %v2206_v26 }
 0x7d9   :  { %v2208_v28 = vpop.eup %2207  ;;  %2209 = vrcp.f32 %v621_v27  ;;  %v633_v42 = vand.u32 2147483648, %v621_v27  ;;  %v631_v46 = vand.u32 2147483647, %v621_v27  ;;  %vm627_vm8 = vweird.f32 %v621_v27 }
 0x7da   :  { %v551_v29 = vadd.f32 1.0, %v2208_v28 }
 0x7db   :  { %v634_v53 = vor.u32 1.1754944e-38, %v633_v42  ;;  %vm632_vm11 = vcmp.eq.f32.partialorder %v631_v46, 8.507059e+37 }
 0x7dc   :  { %2211 = vrcp.f32 %v551_v29  ;;  %v563_v51 = vand.u32 2147483648, %v551_v29  ;;  %v561_v55 = vand.u32 2147483647, %v551_v29  ;;  %vm557_vm12 = vweird.f32 %v551_v29 }
 0x7de   :  { %v564_v59 = vor.u32 1.1754944e-38, %v563_v51  ;;  %vm562_vm15 = vcmp.eq.f32.partialorder %v561_v55, 8.507059e+37 }
 0x7df   :  { %v2210_v30 = vpop.eup %2209 }
 0x7e0   :  { %v623_v31 = vmul.f32 %v2210_v30, %v621_v27  ;;  %vm628_vm7 = vweird.f32 %v2210_v30 }
 0x7e1   :  { %vm629_vm9 = vmor %vm627_vm8, %vm628_vm7 }
 0x7e2   :  { %v2212_v32 = vpop.eup %2211  ;;  %v624_v33 = vsub.f32 1.0, %v623_v31 }
 0x7e3   :  { %v553_v35 = vmul.f32 %v2212_v32, %v551_v29  ;;  %vm558_vm10 = vweird.f32 %v2212_v32 }
 0x7e4   :  { %v625_v43 = vmul.f32 %v2210_v30, %v624_v33  ;;  %vm559_vm14 = vmor %vm557_vm12, %vm558_vm10 }
 0x7e5   :  { %v554_v48 = vsub.f32 1.0, %v553_v35 }
 0x7e6   :  { %v626_v49 = vadd.f32 %v2210_v30, %v625_v43 }
 0x7e7   :  { %v555_v54 = vmul.f32 %v2212_v32, %v554_v48 }
 0x7e8   :  { %v630_v56 = vsel %vm629_vm9, %v2210_v30, %v626_v49 }
 0x7e9   :  { %v635_v57 = vsel %vm632_vm11, %v634_v53, %v630_v56  ;;  %v556_v58 = vadd.f32 %v2212_v32, %v555_v54 }
 0x7ea   :  { %v637_v34 = vmul.f32 2.0, %v635_v57  ;;  %v639_v17 = vmul.f32 %v635_v57, %v2676_v0 }
 0x7eb   :  { %v560_v61 = vsel %vm559_vm14, %v2212_v32, %v556_v58 }
 0x7ec   :  { %v2081_v62 = vadd.f32 -1.0, %v637_v34  ;;  %v565_v63 = vsel %vm562_vm15, %v564_v59, %v560_v61 }
 0x7ed   :  { %v567_v7 = vmul.f32 2.0, %v565_v63  ;;  %v569_v52 = vmul.f32 %v565_v63, %v2671_v60 }
 0x7ee   :  { %641 = vrot.lane.b32.xlu1 %v2081_v62, %s2447_s11 }
 0x7ef   :  { %v2078_v9 = vadd.f32 -1.0, %v567_v7 }
 0x7f1   :  { %571 = vrot.lane.b32.xlu0 %v2078_v9, %s2447_s11 }
 0x860   :  { %v642_v47 = vpop.permute.xlu1 %641 }
 0x861   :  { %v644_v10 = vmul.f32 %v642_v47, %v635_v57 }
 0x863   :  { %646 = vrot.lane.b32.xlu0 %v644_v10, %s2448_s12  ;;  %v572_v12 = vpop.permute.xlu0 %571 }
 0x864   :  { %v574_v13 = vmul.f32 %v572_v12, %v565_v63 }
 0x866   :  { %576 = vrot.lane.b32.xlu2 %v574_v13, %s2448_s12 }
 0x8c0   :  { %v577_v14 = vpop.permute.xlu2 %576 }
 0x8c1   :  { %v2707_v15 = vadd.f32 %v577_v14, %v569_v52 }
 0x8c3   :  { %2213 = vtanh.f32 %v2707_v15 }
 0x8c9   :  { %v2214_v16 = vpop.eup %2213 }
 0x8ca   :  { %582 = vrot.lane.b32.xlu1 %v2214_v16, %s2447_s11 }
 0x8d5   :  { %v647_v18 = vpop.permute.xlu0 %646 }
 0x8d6   :  { %v2712_v19 = vadd.f32 %v647_v18, %v639_v17 }
 0x8d8   :  { %2215 = vtanh.f32 %v2712_v19 }
 0x8de   :  { %v2216_v20 = vpop.eup %2215 }
 0x8df   :  { %652 = vrot.lane.b32.xlu2 %v2216_v20, %s2447_s11 }
 0x8e7   :  { %747 = vperm.xlu2 %2164, %v2531_v5  }
 0x939   :  { %v653_v21 = vpop.permute.xlu2 %652 }
 0x93a   :  { %v655_v60 = vmul.f32 %v653_v21, %v635_v57 }
 0x93c   :  { %679 = vrot.lane.b32.xlu1 %v655_v60, %s2448_s12  ;;  %v583_v22 = vpop.permute.xlu1 %582 }
 0x93d   :  { %v585_v23 = vmul.f32 %v583_v22, %v565_v63 }
 0x93f   :  { %587 = vrot.lane.b32.xlu0 %v585_v23, %s2448_s12 }
 0x941   :  { %v748_v26 = vpop.permute.xlu2 %747 }
 0x942   :  { %v750_v27 = vmul.f32 %v2547_v8, %v748_v26 }
 0x944   :  { %v751_v28 = vadd.f32 %v2553_v11, %v750_v27 }
 0x9ae   :  { %v680_v0 = vpop.permute.xlu1 %679 }
 0x9af   :  { %2083 = vmatmul.msk.f32.vlgmr.msra.gmra.mxu3 %vm126_vm4, %v680_v0  ;;  %2086 = vmatmul.msk.f32.vlgmr.msrb.gmra.mxu0 %vm126_vm4, %v680_v0 }
 0x9b0   :  { %1160 = vmatpush.msrb.mxu0 %v2562_v36  ;;  %1135 = vmatpush.msra.mxu3 %v2566_v38 }
 0x9b1   :  { %v588_v25 = vpop.permute.xlu0 %587 }
 0x9b2   :  { %590 = vst.msk [vmem:[#allocation2 + $0x4] sm:$0x3] %vm279_vm13, %v588_v25  ;;  %2082 = vmatmul.msk.f32.vlgmr.msra.gmra.mxu2 %vm126_vm4, %v588_v25  ;;  %1161 = vmatpush.msrb.mxu0 %v2564_v37 }
 0x9b3   :  { %1074 = vmatpush.msra.mxu2 %v2524_v2  ;;  %1136 = vmatpush.msra.mxu3 %v2570_v39 }
 0x9b4   :  { %1162 = vmatpush.msrb.mxu0 %v2572_v40 }
 0x9b5   :  { %1075 = vmatpush.msra.mxu2 %v2526_v3  ;;  %1137 = vmatpush.msra.mxu3 %v2589_v44 }
 0x9b6   :  { %1163 = vmatpush.msrb.mxu0 %v2578_v41 }
 0x9b7   :  { %1076 = vmatpush.msra.mxu2 %v2529_v4  ;;  %1138 = vmatpush.msra.mxu3 %v2591_v45 }
 0x9b9   :  { %1077 = vmatpush.msra.mxu2 %v2537_v6 }
 0xa2c   :  { %v769_v29 = vpop.f32.mrf.mxu0 }
 0xa2d   :  { %v772_v30 = vadd.f32 %v769_v29, %v751_v28 }
 0xa2f   :  { %v2087_v31 = vmul.f32 -1.442695, %v772_v30 }
 0xa31   :  { %2217 = vpow2.f32 %v2087_v31 }
 0xa32   :  { %v700_v42 = vpop.f32.mrf.mxu3 }
 0xa35   :  { %v675_v32 = vpop.f32.mrf.mxu2 }
 0xa36   :  { %v676_v33 = vadd.f32 %v2627_v50, %v675_v32 }
 0xa37   :  { %v2218_v35 = vpop.eup %2217 }
 0xa38   :  { %v776_v43 = vadd.f32 1.0, %v2218_v35  ;;  %v701_v46 = vadd.f32 %v700_v42, %v676_v33  ;;  %v2453_v42 = vmov 5  }
 0xa39   :  { %2165 = vset.pattern.permute.xlu2 %v2453_v42  ;;  %v2798_v42 = vld [vmem:[#allocation8 + $0x18] sm:$0xff] }
 0xa3a   :  { %2219 = vrcp.f32 %v776_v43  ;;  %v2084_v48 = vmul.f32 -1.442695, %v701_v46  ;;  %v788_v56 = vand.u32 2147483648, %v776_v43  ;;  %v786_v58 = vand.u32 2147483647, %v776_v43 }
 0xa3b   :  { %vm782_vm1 = vweird.f32 %v776_v43 }
 0xa3c   :  { %2221 = vpow2.f32 %v2084_v48  ;;  %v789_v59 = vor.u32 1.1754944e-38, %v788_v56  ;;  %vm787_vm3 = vcmp.eq.f32.partialorder %v786_v58, 8.507059e+37 }
 0xa40   :  { %v2220_v49 = vpop.eup %2219 }
 0xa41   :  { %v778_v51 = vmul.f32 %v2220_v49, %v776_v43  ;;  %vm783_vm0 = vweird.f32 %v2220_v49 }
 0xa42   :  { %v2222_v53 = vpop.eup %2221  ;;  %vm784_vm2 = vmor %vm782_vm1, %vm783_vm0 }
 0xa43   :  { %v779_v54 = vsub.f32 1.0, %v778_v51  ;;  %v706_v55 = vadd.f32 1.0, %v2222_v53 }
 0xa45   :  { %2223 = vrcp.f32 %v706_v55  ;;  %v780_v57 = vmul.f32 %v2220_v49, %v779_v54  ;;  %v718_v12 = vand.u32 2147483648, %v706_v55  ;;  %v716_v52 = vand.u32 2147483647, %v706_v55 }
 0xa46   :  { %vm712_vm6 = vweird.f32 %v706_v55 }
 0xa47   :  { %v781_v34 = vadd.f32 %v2220_v49, %v780_v57  ;;  %v719_v16 = vor.u32 1.1754944e-38, %v718_v12  ;;  %vm717_vm8 = vcmp.eq.f32.partialorder %v716_v52, 8.507059e+37 }
 0xa49   :  { %v785_v61 = vsel %vm784_vm2, %v2220_v49, %v781_v34 }
 0xa4a   :  { %v790_v62 = vsel %vm787_vm3, %v789_v59, %v785_v61 }
 0xa4b   :  { %v2224_v63 = vpop.eup %2223  ;;  %v792_v7 = vmul.f32 2.0, %v790_v62  ;;  %v794_v0 = vmul.f32 %v790_v62, %v2712_v19 }
 0xa4c   :  { %v708_v9 = vmul.f32 %v2224_v63, %v706_v55  ;;  %vm713_vm5 = vweird.f32 %v2224_v63 }
 0xa4d   :  { %v2088_v47 = vadd.f32 -1.0, %v792_v7  ;;  %vm714_vm7 = vmor %vm712_vm6, %vm713_vm5 }
 0xa4e   :  { %v709_v10 = vsub.f32 1.0, %v708_v9 }
 0xa4f   :  { %796 = vrot.lane.b32.xlu0 %v2088_v47, %s2447_s11 }
 0xa50   :  { %v710_v13 = vmul.f32 %v2224_v63, %v709_v10 }
 0xa52   :  { %v711_v14 = vadd.f32 %v2224_v63, %v710_v13 }
 0xa54   :  { %v715_v17 = vsel %vm714_vm7, %v2224_v63, %v711_v14 }
 0xa55   :  { %v720_v18 = vsel %vm717_vm8, %v719_v16, %v715_v17 }
 0xa56   :  { %v722_v20 = vmul.f32 2.0, %v720_v18  ;;  %v724_v28 = vmul.f32 %v720_v18, %v2707_v15 }
 0xa58   :  { %v2085_v21 = vadd.f32 -1.0, %v722_v20 }
 0xa5a   :  { %726 = vrot.lane.b32.xlu1 %v2085_v21, %s2447_s11 }
 0xac1   :  { %v797_v60 = vpop.permute.xlu0 %796 }
 0xac2   :  { %v799_v22 = vmul.f32 %v797_v60, %v790_v62 }
 0xac4   :  { %801 = vrot.lane.b32.xlu2 %v799_v22, %s2448_s12 }
 0xacc   :  { %v727_v23 = vpop.permute.xlu1 %726 }
 0xacd   :  { %v729_v24 = vmul.f32 %v727_v23, %v720_v18 }
 0xacf   :  { %731 = vrot.lane.b32.xlu0 %v729_v24, %s2448_s12 }
 0xb1e   :  { %v802_v25 = vpop.permute.xlu2 %801 }
 0xb1f   :  { %v2743_v26 = vadd.f32 %v802_v25, %v794_v0 }
 0xb21   :  { %2225 = vtanh.f32 %v2743_v26 }
 0xb27   :  { %v2226_v27 = vpop.eup %2225 }
 0xb28   :  { %807 = vrot.lane.b32.xlu1 %v2226_v27, %s2447_s11 }
 0xb41   :  { %v732_v29 = vpop.permute.xlu0 %731 }
 0xb42   :  { %v2748_v30 = vadd.f32 %v732_v29, %v724_v28 }
 0xb44   :  { %2227 = vtanh.f32 %v2748_v30 }
 0xb4a   :  { %v2228_v31 = vpop.eup %2227 }
 0xb4b   :  { %737 = vrot.lane.b32.xlu2 %v2228_v31, %s2447_s11 }
 0xb53   :  { %902 = vperm.xlu2 %2165, %v2531_v5  }
 0xb9a   :  { %v808_v32 = vpop.permute.xlu1 %807 }
 0xb9b   :  { %v810_v19 = vmul.f32 %v808_v32, %v790_v62 }
 0xb9d   :  { %834 = vrot.lane.b32.xlu0 %v810_v19, %s2448_s12  ;;  %v2454_v19 = vmov 6  }
 0xb9e   :  { %2166 = vset.pattern.permute.xlu2 %v2454_v19 }
 0xba5   :  { %v738_v33 = vpop.permute.xlu2 %737 }
 0xba6   :  { %v740_v35 = vmul.f32 %v738_v33, %v720_v18  ;;  %v2790_v33 = vld [vmem:[#allocation4] sm:$0x3] }
 0xba8   :  { %742 = vrot.lane.b32.xlu1 %v740_v35, %s2448_s12  ;;  %v2795_v35 = vld [vmem:[#allocation9 + $0x18] sm:$0xff] }
 0xc0f   :  { %v835_v15 = vpop.permute.xlu0 %834 }
 0xc10   :  { %2090 = vmatmul.msk.f32.vlgmr.msrb.gmra.mxu2 %vm126_vm4, %v835_v15  ;;  %2093 = vmatmul.msk.f32.vlgmr.msrb.gmra.mxu3 %vm126_vm4, %v835_v15  ;;  %v2801_v15 = vld [vmem:[#allocation9 + $0x10] sm:$0xff] }
 0xc11   :  { %1315 = vmatpush.msrb.mxu3 %v2562_v36  ;;  %1290 = vmatpush.msrb.mxu2 %v2566_v38  ;;  %v903_v36 = vpop.permute.xlu2 %902 }
 0xc13   :  { %1316 = vmatpush.msrb.mxu3 %v2564_v37  ;;  %1291 = vmatpush.msrb.mxu2 %v2570_v39  ;;  %v905_v37 = vmul.f32 %v2547_v8, %v903_v36  ;;  %v2807_v36 = vld [vmem:[#allocation9 + $0x8] sm:$0xff] }
 0xc15   :  { %1317 = vmatpush.msrb.mxu3 %v2572_v40  ;;  %1292 = vmatpush.msrb.mxu2 %v2589_v44  ;;  %v906_v38 = vadd.f32 %v2553_v11, %v905_v37  ;;  %v2810_v37 = vld [vmem:[#allocation8 + $0x8] sm:$0xff] }
 0xc17   :  { %1318 = vmatpush.msrb.mxu3 %v2578_v41  ;;  %1293 = vmatpush.msrb.mxu2 %v2591_v45 }
 0xc1a   :  { %v743_v5 = vpop.permute.xlu1 %742 }
 0xc1b   :  { %745 = vst.msk [vmem:[#allocation2 + $0x6] sm:$0x3] %vm279_vm13, %v743_v5  ;;  %2089 = vmatmul.msk.f32.vlgmr.msrb.gmra.mxu1 %vm126_vm4, %v743_v5  ;;  %v2804_v5 = vld [vmem:[#allocation8 + $0x10] sm:$0xff] }
 0xc1c   :  { %1229 = vmatpush.msrb.mxu1 %v2524_v2 }
 0xc1e   :  { %1230 = vmatpush.msrb.mxu1 %v2526_v3 }
 0xc20   :  { %1231 = vmatpush.msrb.mxu1 %v2529_v4 }
 0xc22   :  { %1232 = vmatpush.msrb.mxu1 %v2537_v6 }
 0xc93   :  { %v924_v39 = vpop.f32.mrf.mxu3  ;;  %v855_v43 = vpop.f32.mrf.mxu2 }
 0xc94   :  { %v927_v40 = vadd.f32 %v924_v39, %v906_v38  ;;  %v2815_v39 = vld [vmem:[#allocation9] sm:$0xff] }
 0xc96   :  { %v2094_v41 = vmul.f32 -1.442695, %v927_v40  ;;  %v2818_v40 = vld [vmem:[#allocation6 + $0x18] sm:$0xff] }
 0xc98   :  { %2229 = vpow2.f32 %v2094_v41  ;;  %v830_v44 = vpop.f32.mrf.mxu1  ;;  %v2821_v41 = vld [vmem:[#allocation8] sm:$0xff] }
 0xc99   :  { %v831_v45 = vadd.f32 %v2627_v50, %v830_v44  ;;  %v2824_v44 = vld [vmem:[#allocation6 + $0x10] sm:$0xff] }
 0xc9b   :  { %v856_v2 = vadd.f32 %v855_v43, %v831_v45  ;;  %v2827_v45 = vld [vmem:[#allocation6 + $0x8] sm:$0xff]  ;;  %v2830_v43 = vld [vmem:[#allocation6] sm:$0xff] }
 0xc9d   :  { %v2091_v46 = vmul.f32 -1.442695, %v856_v2 }
 0xc9e   :  { %v2230_v3 = vpop.eup %2229 }
 0xc9f   :  { %v931_v48 = vadd.f32 1.0, %v2230_v3  ;;  %2231 = vpow2.f32 %v2091_v46  ;;  %v2836_v46 = vld [vmem:[%s3079_s1] ss:$0 sm:$0xff] }
 0xca1   :  { %2233 = vrcp.f32 %v931_v48  ;;  %v943_v51 = vand.u32 2147483648, %v931_v48  ;;  %v941_v54 = vand.u32 2147483647, %v931_v48  ;;  %vm937_vm10 = vweird.f32 %v931_v48 }
 0xca3   :  { %v944_v58 = vor.u32 1.1754944e-38, %v943_v51  ;;  %vm942_vm12 = vcmp.eq.f32.partialorder %v941_v54, 8.507059e+37 }
 0xca5   :  { %v2232_v4 = vpop.eup %2231 }
 0xca6   :  { %v861_v6 = vadd.f32 1.0, %v2232_v4 }
 0xca7   :  { %v2234_v49 = vpop.eup %2233 }
 0xca8   :  { %v933_v8 = vmul.f32 %v2234_v49, %v931_v48  ;;  %2235 = vrcp.f32 %v861_v6  ;;  %vm938_vm9 = vweird.f32 %v2234_v49  ;;  %v873_v63 = vand.u32 2147483648, %v861_v6  ;;  %v2842_v48 = vld [vmem:[%s3080_s2] ss:$0 sm:$0xff] }
 0xca9   :  { %vm939_vm11 = vmor %vm937_vm10, %vm938_vm9  ;;  %v871_v9 = vand.u32 2147483647, %v861_v6  ;;  %vm867_vm15 = vweird.f32 %v861_v6 }
 0xcaa   :  { %v934_v11 = vsub.f32 1.0, %v933_v8  ;;  %v874_v12 = vor.u32 1.1754944e-38, %v873_v63 }
 0xcab   :  { %vm872_vm1 = vcmp.eq.f32.partialorder %v871_v9, 8.507059e+37 }
 0xcac   :  { %v935_v53 = vmul.f32 %v2234_v49, %v934_v11 }
 0xcae   :  { %v2236_v55 = vpop.eup %2235  ;;  %v936_v56 = vadd.f32 %v2234_v49, %v935_v53 }
 0xcaf   :  { %v863_v57 = vmul.f32 %v2236_v55, %v861_v6  ;;  %vm868_vm14 = vweird.f32 %v2236_v55 }
 0xcb0   :  { %v940_v34 = vsel %vm939_vm11, %v2234_v49, %v936_v56  ;;  %vm869_vm0 = vmor %vm867_vm15, %vm868_vm14 }
 0xcb1   :  { %v864_v59 = vsub.f32 1.0, %v863_v57  ;;  %v945_v61 = vsel %vm942_vm12, %v944_v58, %v940_v34 }
 0xcb2   :  { %v947_v62 = vmul.f32 2.0, %v945_v61  ;;  %v949_v0 = vmul.f32 %v945_v61, %v2743_v26 }
 0xcb3   :  { %v865_v7 = vmul.f32 %v2236_v55, %v864_v59 }
 0xcb4   :  { %v2095_v47 = vadd.f32 -1.0, %v947_v62 }
 0xcb5   :  { %v866_v10 = vadd.f32 %v2236_v55, %v865_v7 }
 0xcb6   :  { %951 = vrot.lane.b32.xlu1 %v2095_v47, %s2447_s11 }
 0xcb7   :  { %v870_v13 = vsel %vm869_vm0, %v2236_v55, %v866_v10 }
 0xcb8   :  { %v875_v52 = vsel %vm872_vm1, %v874_v12, %v870_v13 }
 0xcb9   :  { %v877_v14 = vmul.f32 2.0, %v875_v52  ;;  %v879_v60 = vmul.f32 %v875_v52, %v2748_v30 }
 0xcbb   :  { %v2092_v16 = vadd.f32 -1.0, %v877_v14 }
 0xcbd   :  { %881 = vrot.lane.b32.xlu0 %v2092_v16, %s2447_s11 }
 0xd28   :  { %v952_v17 = vpop.permute.xlu1 %951 }
 0xd29   :  { %v954_v18 = vmul.f32 %v952_v17, %v945_v61 }
 0xd2b   :  { %956 = vrot.lane.b32.xlu0 %v954_v18, %s2448_s12 }
 0xd2f   :  { %v882_v20 = vpop.permute.xlu0 %881 }
 0xd30   :  { %v884_v21 = vmul.f32 %v882_v20, %v875_v52 }
 0xd32   :  { %886 = vrot.lane.b32.xlu2 %v884_v21, %s2448_s12 }
 0xd8c   :  { %v887_v22 = vpop.permute.xlu2 %886 }
 0xd8d   :  { %v2779_v23 = vadd.f32 %v887_v22, %v879_v60 }
 0xd8f   :  { %2237 = vtanh.f32 %v2779_v23 }
 0xd95   :  { %v2238_v24 = vpop.eup %2237 }
 0xd96   :  { %892 = vrot.lane.b32.xlu1 %v2238_v24, %s2447_s11 }
 0xd9d   :  { %v957_v25 = vpop.permute.xlu0 %956 }
 0xd9e   :  { %v2784_v27 = vadd.f32 %v957_v25, %v949_v0 }
 0xda0   :  { %2239 = vtanh.f32 %v2784_v27 }
 0xda6   :  { %v2240_v28 = vpop.eup %2239 }
 0xda7   :  { %962 = vrot.lane.b32.xlu2 %v2240_v28, %s2447_s11 }
 0xdaf   :  { %1057 = vperm.xlu2 %2166, %v2790_v33  }
 0xe01   :  { %v963_v29 = vpop.permute.xlu2 %962 }
 0xe02   :  { %v965_v30 = vmul.f32 %v963_v29, %v945_v61 }
 0xe04   :  { %989 = vrot.lane.b32.xlu1 %v965_v30, %s2448_s12 }
 0xe08   :  { %v893_v31 = vpop.permute.xlu1 %892 }
 0xe09   :  { %v895_v32 = vmul.f32 %v893_v31, %v875_v52  ;;  %v1058_v2 = vpop.permute.xlu2 %1057 }
 0xe0a   :  { %v1060_v3 = vmul.f32 %v2836_v46, %v1058_v2 }
 0xe0b   :  { %897 = vrot.lane.b32.xlu0 %v895_v32, %s2448_s12 }
 0xe0c   :  { %v1061_v4 = vadd.f32 %v2842_v48, %v1060_v3 }
 0xe76   :  { %v990_v26 = vpop.permute.xlu1 %989 }
 0xe77   :  { %2097 = vmatmul.msk.f32.vlgmr.msra.gmra.mxu1 %vm126_vm4, %v990_v26  ;;  %2100 = vmatmul.msk.f32.vlgmr.msra.gmra.mxu2 %vm126_vm4, %v990_v26 }
 0xe78   :  { %1462 = vmatpush.msra.mxu1 %v2795_v35  ;;  %1487 = vmatpush.msra.mxu2 %v2798_v42 }
 0xe7a   :  { %1463 = vmatpush.msra.mxu1 %v2801_v15  ;;  %1488 = vmatpush.msra.mxu2 %v2804_v5 }
 0xe7c   :  { %1464 = vmatpush.msra.mxu1 %v2807_v36  ;;  %1489 = vmatpush.msra.mxu2 %v2810_v37 }
 0xe7d   :  { %v898_v38 = vpop.permute.xlu0 %897 }
 0xe7e   :  { %900 = vst.msk [vmem:[#allocation2 + $0x8] sm:$0x3] %vm279_vm13, %v898_v38  ;;  %2096 = vmatmul.msk.f32.vlgmr.msra.gmra.mxu0 %vm126_vm4, %v898_v38  ;;  %1465 = vmatpush.msra.mxu1 %v2815_v39 }
 0xe7f   :  { %1395 = vmatpush.msra.mxu0 %v2818_v40  ;;  %1490 = vmatpush.msra.mxu2 %v2821_v41 }
 0xe81   :  { %1396 = vmatpush.msra.mxu0 %v2824_v44 }
 0xe83   :  { %1397 = vmatpush.msra.mxu0 %v2827_v45 }
 0xe85   :  { %1398 = vmatpush.msra.mxu0 %v2830_v43 }
 0xef4   :  { %v1010_v51 = vpop.f32.mrf.mxu1 }
 0xefa   :  { %v1079_v6 = vpop.f32.mrf.mxu2 }
 0xefb   :  { %v1082_v49 = vadd.f32 %v1079_v6, %v1061_v4  ;;  %v985_v8 = vpop.f32.mrf.mxu0 }
 0xefc   :  { %v986_v11 = vadd.f32 %v2627_v50, %v985_v8 }
 0xefd   :  { %v2101_v53 = vmul.f32 -1.442695, %v1082_v49 }
 0xefe   :  { %v1011_v54 = vadd.f32 %v1010_v51, %v986_v11 }
 0xeff   :  { %2241 = vpow2.f32 %v2101_v53  ;;  %v2455_v53 = vmov 7  }
 0xf00   :  { %v2098_v55 = vmul.f32 -1.442695, %v1011_v54  ;;  %2167 = vset.pattern.permute.xlu2 %v2455_v53 }
 0xf02   :  { %2243 = vpow2.f32 %v2098_v55 }
 0xf05   :  { %v2242_v56 = vpop.eup %2241 }
 0xf06   :  { %v1086_v57 = vadd.f32 1.0, %v2242_v56 }
 0xf08   :  { %v2244_v58 = vpop.eup %2243  ;;  %2245 = vrcp.f32 %v1086_v57  ;;  %v1098_v9 = vand.u32 2147483648, %v1086_v57  ;;  %v1096_v50 = vand.u32 2147483647, %v1086_v57  ;;  %vm1092_vm3 = vweird.f32 %v1086_v57 }
 0xf09   :  { %v1016_v34 = vadd.f32 1.0, %v2244_v58 }
 0xf0a   :  { %v1099_v52 = vor.u32 1.1754944e-38, %v1098_v9  ;;  %vm1097_vm7 = vcmp.eq.f32.partialorder %v1096_v50, 8.507059e+37 }
 0xf0b   :  { %2247 = vrcp.f32 %v1016_v34  ;;  %v1028_v13 = vand.u32 2147483648, %v1016_v34  ;;  %v1026_v16 = vand.u32 2147483647, %v1016_v34  ;;  %vm1022_vm8 = vweird.f32 %v1016_v34 }
 0xf0d   :  { %v1029_v60 = vor.u32 1.1754944e-38, %v1028_v13  ;;  %vm1027_vm10 = vcmp.eq.f32.partialorder %v1026_v16, 8.507059e+37 }
 0xf0e   :  { %v2246_v59 = vpop.eup %2245 }
 0xf0f   :  { %v1088_v61 = vmul.f32 %v2246_v59, %v1086_v57  ;;  %vm1093_vm2 = vweird.f32 %v2246_v59 }
 0xf10   :  { %vm1094_vm5 = vmor %vm1092_vm3, %vm1093_vm2 }
 0xf11   :  { %v2248_v62 = vpop.eup %2247  ;;  %v1089_v63 = vsub.f32 1.0, %v1088_v61 }
 0xf12   :  { %v1018_v7 = vmul.f32 %v2248_v62, %v1016_v34  ;;  %vm1023_vm6 = vweird.f32 %v2248_v62 }
 0xf13   :  { %v1090_v47 = vmul.f32 %v2246_v59, %v1089_v63  ;;  %vm1024_vm9 = vmor %vm1022_vm8, %vm1023_vm6 }
 0xf14   :  { %v1019_v10 = vsub.f32 1.0, %v1018_v7 }
 0xf15   :  { %v1091_v12 = vadd.f32 %v2246_v59, %v1090_v47 }
 0xf16   :  { %v1020_v14 = vmul.f32 %v2248_v62, %v1019_v10 }
 0xf17   :  { %v1095_v17 = vsel %vm1094_vm5, %v2246_v59, %v1091_v12  ;;  %v2885_v59 = vld [vmem:[%s3084_s6] ss:$0 sm:$0xff] }
 0xf18   :  { %v1100_v18 = vsel %vm1097_vm7, %v1099_v52, %v1095_v17  ;;  %v1021_v20 = vadd.f32 %v2248_v62, %v1020_v14 }
 0xf19   :  { %v1102_v21 = vmul.f32 2.0, %v1100_v18  ;;  %v1104_v3 = vmul.f32 %v1100_v18, %v2784_v27 }
 0xf1a   :  { %v1025_v22 = vsel %vm1024_vm9, %v2248_v62, %v1021_v20 }
 0xf1b   :  { %v2102_v24 = vadd.f32 -1.0, %v1102_v21  ;;  %v1030_v0 = vsel %vm1027_vm10, %v1029_v60, %v1025_v22 }
 0xf1c   :  { %v1032_v25 = vmul.f32 2.0, %v1030_v0  ;;  %v1034_v19 = vmul.f32 %v1030_v0, %v2779_v23 }
 0xf1d   :  { %1106 = vrot.lane.b32.xlu1 %v2102_v24, %s2447_s11 }
 0xf1e   :  { %v2099_v28 = vadd.f32 -1.0, %v1032_v25 }
 0xf20   :  { %1036 = vrot.lane.b32.xlu0 %v2099_v28, %s2447_s11 }
 0xf8f   :  { %v1107_v29 = vpop.permute.xlu1 %1106 }
 0xf90   :  { %v1109_v30 = vmul.f32 %v1107_v29, %v1100_v18 }
 0xf92   :  { %1111 = vrot.lane.b32.xlu0 %v1109_v30, %s2448_s12  ;;  %v1037_v31 = vpop.permute.xlu0 %1036 }
 0xf93   :  { %v1039_v32 = vmul.f32 %v1037_v31, %v1030_v0 }
 0xf95   :  { %1041 = vrot.lane.b32.xlu2 %v1039_v32, %s2448_s12 }
 0xfef   :  { %v1042_v26 = vpop.permute.xlu2 %1041 }
 0xff0   :  { %v2851_v38 = vadd.f32 %v1042_v26, %v1034_v19 }
 0xff2   :  { %2249 = vtanh.f32 %v2851_v38 }
 0xff8   :  { %v2250_v2 = vpop.eup %2249 }
 0xff9   :  { %1047 = vrot.lane.b32.xlu1 %v2250_v2, %s2447_s11 }
0x1004   :  { %v1112_v4 = vpop.permute.xlu0 %1111 }
0x1005   :  { %v2856_v6 = vadd.f32 %v1112_v4, %v1104_v3 }
0x1007   :  { %2251 = vtanh.f32 %v2856_v6 }
0x100d   :  { %v2252_v49 = vpop.eup %2251 }
0x100e   :  { %1117 = vrot.lane.b32.xlu2 %v2252_v49, %s2447_s11 }
0x1016   :  { %1212 = vperm.xlu2 %2167, %v2790_v33  }
0x101e   :  { %2168 = vset.pattern.permute.xlu2 %v2445_v1 }
0x1068   :  { %v1118_v8 = vpop.permute.xlu2 %1117 }
0x1069   :  { %v1120_v23 = vmul.f32 %v1118_v8, %v1100_v18 }
0x106b   :  { %1144 = vrot.lane.b32.xlu1 %v1120_v23, %s2448_s12  ;;  %v1048_v11 = vpop.permute.xlu1 %1047 }
0x106c   :  { %v1050_v51 = vmul.f32 %v1048_v11, %v1030_v0 }
0x106e   :  { %1052 = vrot.lane.b32.xlu0 %v1050_v51, %s2448_s12 }
0x1070   :  { %v1213_v1 = vpop.permute.xlu2 %1212 }
0x1071   :  { %v1215_v33 = vmul.f32 %v2836_v46, %v1213_v1 }
0x1073   :  { %v1216_v55 = vadd.f32 %v2842_v48, %v1215_v33 }
0x10dd   :  { %v1145_v27 = vpop.permute.xlu1 %1144 }
0x10de   :  { %2104 = vmatmul.msk.f32.vlgmr.msrb.gmra.mxu0 %vm126_vm4, %v1145_v27  ;;  %2107 = vmatmul.msk.f32.vlgmr.msrb.gmra.mxu1 %vm126_vm4, %v1145_v27 }
0x10df   :  { %1626 = vmatpush.msrb.mxu0 %v2795_v35  ;;  %1651 = vmatpush.msrb.mxu1 %v2798_v42 }
0x10e0   :  { %v1053_v54 = vpop.permute.xlu0 %1052 }
0x10e1   :  { %1055 = vst.msk [vmem:[#allocation2 + $0xa] sm:$0x3] %vm279_vm13, %v1053_v54  ;;  %2103 = vmatmul.msk.f32.vlgmr.msra.gmra.mxu3 %vm126_vm4, %v1053_v54  ;;  %1627 = vmatpush.msrb.mxu0 %v2801_v15 }
0x10e2   :  { %1559 = vmatpush.msra.mxu3 %v2818_v40  ;;  %1652 = vmatpush.msrb.mxu1 %v2804_v5 }
0x10e3   :  { %1628 = vmatpush.msrb.mxu0 %v2807_v36 }
0x10e4   :  { %1560 = vmatpush.msra.mxu3 %v2824_v44  ;;  %1653 = vmatpush.msrb.mxu1 %v2810_v37 }
0x10e5   :  { %1629 = vmatpush.msrb.mxu0 %v2815_v39 }
0x10e6   :  { %1561 = vmatpush.msra.mxu3 %v2827_v45  ;;  %1654 = vmatpush.msrb.mxu1 %v2821_v41 }
0x10e8   :  { %1562 = vmatpush.msra.mxu3 %v2830_v43 }
0x115b   :  { %v1234_v56 = vpop.f32.mrf.mxu1  ;;  %v1165_v63 = vpop.f32.mrf.mxu0 }
0x115c   :  { %v1237_v57 = vadd.f32 %v1234_v56, %v1216_v55 }
0x115e   :  { %v2108_v58 = vmul.f32 -1.442695, %v1237_v57 }
0x1160   :  { %2253 = vpow2.f32 %v2108_v58 }
0x1164   :  { %v1140_v34 = vpop.f32.mrf.mxu3 }
0x1165   :  { %v1141_v61 = vadd.f32 %v2885_v59, %v1140_v34 }
0x1166   :  { %v2254_v62 = vpop.eup %2253 }
0x1167   :  { %v1241_v7 = vadd.f32 1.0, %v2254_v62  ;;  %v1166_v9 = vadd.f32 %v1165_v63, %v1141_v61 }
0x1169   :  { %2255 = vrcp.f32 %v1241_v7  ;;  %v2105_v47 = vmul.f32 -1.442695, %v1166_v9  ;;  %v1253_v14 = vand.u32 2147483648, %v1241_v7  ;;  %v1251_v17 = vand.u32 2147483647, %v1241_v7 }
0x116a   :  { %vm1247_vm12 = vweird.f32 %v1241_v7 }
0x116b   :  { %2257 = vpow2.f32 %v2105_v47  ;;  %v1254_v20 = vor.u32 1.1754944e-38, %v1253_v14  ;;  %vm1252_vm15 = vcmp.eq.f32.partialorder %v1251_v17, 8.507059e+37 }
0x116f   :  { %v2256_v50 = vpop.eup %2255 }
0x1170   :  { %v1243_v10 = vmul.f32 %v2256_v50, %v1241_v7  ;;  %vm1248_vm11 = vweird.f32 %v2256_v50 }
0x1171   :  { %v2258_v12 = vpop.eup %2257  ;;  %vm1249_vm14 = vmor %vm1247_vm12, %vm1248_vm11 }
0x1172   :  { %v1244_v13 = vsub.f32 1.0, %v1243_v10  ;;  %v1171_v52 = vadd.f32 1.0, %v2258_v12 }
0x1174   :  { %2259 = vrcp.f32 %v1171_v52  ;;  %v1245_v16 = vmul.f32 %v2256_v50, %v1244_v13  ;;  %v1183_v29 = vand.u32 2147483648, %v1171_v52  ;;  %v1181_v31 = vand.u32 2147483647, %v1171_v52 }
0x1175   :  { %vm1177_vm1 = vweird.f32 %v1171_v52 }
0x1176   :  { %v1246_v18 = vadd.f32 %v2256_v50, %v1245_v16  ;;  %v1184_v19 = vor.u32 1.1754944e-38, %v1183_v29  ;;  %vm1182_vm3 = vcmp.eq.f32.partialorder %v1181_v31, 8.507059e+37 }
0x1178   :  { %v1250_v21 = vsel %vm1249_vm14, %v2256_v50, %v1246_v18 }
0x1179   :  { %v1255_v60 = vsel %vm1252_vm15, %v1254_v20, %v1250_v21 }
0x117a   :  { %v2260_v22 = vpop.eup %2259  ;;  %v1257_v24 = vmul.f32 2.0, %v1255_v60  ;;  %v1259_v1 = vmul.f32 %v1255_v60, %v2856_v6 }
0x117b   :  { %v1173_v0 = vmul.f32 %v2260_v22, %v1171_v52  ;;  %vm1178_vm0 = vweird.f32 %v2260_v22 }
0x117c   :  { %v2109_v25 = vadd.f32 -1.0, %v1257_v24  ;;  %vm1179_vm2 = vmor %vm1177_vm1, %vm1178_vm0 }
0x117d   :  { %v1174_v28 = vsub.f32 1.0, %v1173_v0  ;;  %v2925_v0 = vld [vmem:[%s3085_s7] ss:$0 sm:$0xff] }
0x117e   :  { %1261 = vrot.lane.b32.xlu1 %v2109_v25, %s2447_s11 }
0x117f   :  { %v1175_v30 = vmul.f32 %v2260_v22, %v1174_v28 }
0x1181   :  { %v1176_v32 = vadd.f32 %v2260_v22, %v1175_v30 }
0x1183   :  { %v1180_v26 = vsel %vm1179_vm2, %v2260_v22, %v1176_v32 }
0x1184   :  { %v1185_v2 = vsel %vm1182_vm3, %v1184_v19, %v1180_v26 }
0x1185   :  { %v1187_v3 = vmul.f32 2.0, %v1185_v2  ;;  %v1189_v51 = vmul.f32 %v1185_v2, %v2851_v38 }
0x1187   :  { %v2106_v4 = vadd.f32 -1.0, %v1187_v3 }
0x1189   :  { %1191 = vrot.lane.b32.xlu0 %v2106_v4, %s2447_s11 }
0x11f0   :  { %v1262_v49 = vpop.permute.xlu1 %1261 }
0x11f1   :  { %v1264_v8 = vmul.f32 %v1262_v49, %v1255_v60 }
0x11f3   :  { %1266 = vrot.lane.b32.xlu0 %v1264_v8, %s2448_s12  ;;  %v2939_v8 = vld [vmem:[#allocation3] ss:$0 sm:$0xff] }
0x11fb   :  { %v1192_v23 = vpop.permute.xlu0 %1191 }
0x11fc   :  { %v1194_v11 = vmul.f32 %v1192_v23, %v1185_v2 }
0x11fe   :  { %1196 = vrot.lane.b32.xlu2 %v1194_v11, %s2448_s12 }
0x1258   :  { %v1197_v53 = vpop.permute.xlu2 %1196 }
0x1259   :  { %v2893_v27 = vadd.f32 %v1197_v53, %v1189_v51 }
0x125b   :  { %2261 = vtanh.f32 %v2893_v27 }
0x1261   :  { %v2262_v54 = vpop.eup %2261 }
0x1262   :  { %1202 = vrot.lane.b32.xlu1 %v2262_v54, %s2447_s11 }
0x1265   :  { %v1267_v33 = vpop.permute.xlu0 %1266 }
0x1266   :  { %v2898_v55 = vadd.f32 %v1267_v33, %v1259_v1 }
0x1268   :  { %2263 = vtanh.f32 %v2898_v55 }
0x126e   :  { %v2264_v56 = vpop.eup %2263 }
0x126f   :  { %1272 = vrot.lane.b32.xlu2 %v2264_v56, %s2447_s11 }
0x12c9   :  { %v1273_v57 = vpop.permute.xlu2 %1272 }
0x12ca   :  { %v1275_v38 = vmul.f32 %v1273_v57, %v1255_v60 }
0x12cc   :  { %1299 = vrot.lane.b32.xlu1 %v1275_v38, %s2448_s12 }
0x12d4   :  { %v1203_v58 = vpop.permute.xlu1 %1202 }
0x12d5   :  { %v1205_v34 = vmul.f32 %v1203_v58, %v1185_v2 }
0x12d7   :  { %1207 = vrot.lane.b32.xlu0 %v1205_v34, %s2448_s12 }
0x133e   :  { %v1300_v61 = vpop.permute.xlu1 %1299 }
0x133f   :  { %2111 = vmatmul.msk.f32.vlgmr.msrb.gmra.mxu3 %vm126_vm4, %v1300_v61  ;;  %2114 = vmatmul.msk.f32.vlgmr.msra.gmra.mxu0 %vm126_vm4, %v1300_v61 }
0x1340   :  { %1790 = vmatpush.msrb.mxu3 %v2795_v35  ;;  %1815 = vmatpush.msra.mxu0 %v2798_v42 }
0x1342   :  { %1791 = vmatpush.msrb.mxu3 %v2801_v15  ;;  %1816 = vmatpush.msra.mxu0 %v2804_v5 }
0x1344   :  { %1792 = vmatpush.msrb.mxu3 %v2807_v36  ;;  %1817 = vmatpush.msra.mxu0 %v2810_v37 }
0x1346   :  { %1793 = vmatpush.msrb.mxu3 %v2815_v39  ;;  %1818 = vmatpush.msra.mxu0 %v2821_v41 }
0x1349   :  { %v1208_v6 = vpop.permute.xlu0 %1207 }
0x134a   :  { %1210 = vst.msk [vmem:[#allocation2 + $0xc] sm:$0x3] %vm279_vm13, %v1208_v6  ;;  %2110 = vmatmul.msk.f32.vlgmr.msrb.gmra.mxu2 %vm126_vm4, %v1208_v6 }
0x134b   :  { %1723 = vmatpush.msrb.mxu2 %v2818_v40 }
0x134d   :  { %1724 = vmatpush.msrb.mxu2 %v2824_v44 }
0x134f   :  { %1725 = vmatpush.msrb.mxu2 %v2827_v45 }
0x1351   :  { %1726 = vmatpush.msrb.mxu2 %v2830_v43 }
0x13bc   :  { %v1400_v51 = vpop.f32.mrf.mxu0 }
0x13c2   :  { %v1320_v7 = vpop.f32.mrf.mxu3 }
0x13cd   :  { %v1295_v62 = vpop.f32.mrf.mxu2 }
0x13ce   :  { %v1296_v63 = vadd.f32 %v2885_v59, %v1295_v62 }
0x13d0   :  { %v1321_v9 = vadd.f32 %v1320_v7, %v1296_v63 }
0x13d2   :  { %v2112_v47 = vmul.f32 -1.442695, %v1321_v9 }
0x13d4   :  { %2265 = vpow2.f32 %v2112_v47 }
0x13da   :  { %v2266_v50 = vpop.eup %2265 }
0x13db   :  { %v1326_v10 = vadd.f32 1.0, %v2266_v50 }
0x13dd   :  { %2267 = vrcp.f32 %v1326_v10  ;;  %v1338_v14 = vand.u32 2147483648, %v1326_v10  ;;  %v1336_v17 = vand.u32 2147483647, %v1326_v10  ;;  %vm1332_vm6 = vweird.f32 %v1326_v10 }
0x13df   :  { %v1339_v20 = vor.u32 1.1754944e-38, %v1338_v14  ;;  %vm1337_vm8 = vcmp.eq.f32.partialorder %v1336_v17, 8.507059e+37 }
0x13e3   :  { %v2268_v12 = vpop.eup %2267 }
0x13e4   :  { %v1328_v13 = vmul.f32 %v2268_v12, %v1326_v10  ;;  %vm1333_vm5 = vweird.f32 %v2268_v12 }
0x13e5   :  { %vm1334_vm7 = vmor %vm1332_vm6, %vm1333_vm5 }
0x13e6   :  { %v1329_v52 = vsub.f32 1.0, %v1328_v13 }
0x13e8   :  { %v1330_v16 = vmul.f32 %v2268_v12, %v1329_v52 }
0x13ea   :  { %v1331_v18 = vadd.f32 %v2268_v12, %v1330_v16 }
0x13ec   :  { %v1335_v21 = vsel %vm1334_vm7, %v2268_v12, %v1331_v18 }
0x13ed   :  { %v1340_v60 = vsel %vm1337_vm8, %v1339_v20, %v1335_v21 }
0x13ee   :  { %v1342_v22 = vmul.f32 2.0, %v1340_v60  ;;  %v1344_v29 = vmul.f32 %v1340_v60, %v2893_v27  ;;  %v1401_v27 = vadd.f32 %v2842_v48, %v1400_v51 }
0x13f0   :  { %v2113_v24 = vadd.f32 -1.0, %v1342_v22 }
0x13f2   :  { %1346 = vrot.lane.b32.xlu2 %v2113_v24, %s2447_s11 }
0x13fa   :  { %1368 = vrot.lane.b32.xlu2 %v2925_v0, %s2456_s21 }
0x144c   :  { %v1347_v25 = vpop.permute.xlu2 %1346 }
0x144d   :  { %v1349_v28 = vmul.f32 %v1347_v25, %v1340_v60 }
0x144f   :  { %1351 = vrot.lane.b32.xlu0 %v1349_v28, %s2448_s12 }
0x1454   :  { %v2934_v26 = vpop.permute.xlu2 %1368 }
0x14c1   :  { %v1352_v30 = vpop.permute.xlu0 %1351 }
0x14c2   :  { %v2930_v31 = vadd.f32 %v1352_v30, %v1344_v29 }
0x14c4   :  { %2269 = vtanh.f32 %v2930_v31 }
0x14ca   :  { %v2270_v32 = vpop.eup %2269 }
0x14cb   :  { %1357 = vrot.lane.b32.xlu1 %v2270_v32, %s2447_s11 }
0x153d   :  { %v1358_v19 = vpop.permute.xlu1 %1357 }
0x153e   :  { %v1360_v2 = vmul.f32 %v1358_v19, %v1340_v60 }
0x1540   :  { %v1371_v3 = vmul.f32 %v2934_v26, %v1360_v2 }
0x1542   :  { %1373 = vrot.lane.b32.xlu0 %v1371_v3, %s2448_s12 }
0x15b4   :  { %v1374_v4 = vpop.permute.xlu0 %1373 }
0x15b5   :  { %v1376_v49 = vsel %vm279_vm13, %v1374_v4, 0.0 }
0x15b6   :  { %1377 = vadd.xlane.f32.xlu1 %v1376_v49 }
0x1629   :  { %v1378_v23 = vpop.xlane.xlu1 %1377 }
0x162a   :  { %v1382_v11 = vadd.f32 %v2939_v8, %v1378_v23 }
0x162c   :  { %1405 = vperm.xlu2 %2168, %v1382_v11  }
0x1686   :  { %v1406_v53 = vpop.permute.xlu2 %1405 }
0x1687   :  { %v1408_v54 = vmul.f32 %v2836_v46, %v1406_v53 }
0x1689   :  { %v1409_v1 = vadd.f32 %v1408_v54, %v1401_v27 }
0x168b   :  { %v2115_v33 = vmul.f32 -1.442695, %v1409_v1 }
0x168d   :  { %2271 = vpow2.f32 %v2115_v33 }
0x1693   :  { %v2272_v56 = vpop.eup %2271 }
0x1694   :  { %v1413_v57 = vadd.f32 1.0, %v2272_v56 }
0x1696   :  { %2273 = vrcp.f32 %v1413_v57  ;;  %v1425_v61 = vand.u32 2147483648, %v1413_v57  ;;  %v1423_v62 = vand.u32 2147483647, %v1413_v57  ;;  %vm1419_vm10 = vweird.f32 %v1413_v57 }
0x1698   :  { %v1426_v7 = vor.u32 1.1754944e-38, %v1425_v61  ;;  %vm1424_vm12 = vcmp.eq.f32.partialorder %v1423_v62, 8.507059e+37 }
0x169c   :  { %v2274_v38 = vpop.eup %2273 }
0x169d   :  { %v1415_v58 = vmul.f32 %v2274_v38, %v1413_v57  ;;  %vm1420_vm9 = vweird.f32 %v2274_v38 }
0x169e   :  { %vm1421_vm11 = vmor %vm1419_vm10, %vm1420_vm9 }
0x169f   :  { %v1416_v34 = vsub.f32 1.0, %v1415_v58 }
0x16a1   :  { %v1417_v6 = vmul.f32 %v2274_v38, %v1416_v34 }
0x16a3   :  { %v1418_v63 = vadd.f32 %v2274_v38, %v1417_v6 }
0x16a5   :  { %v1422_v9 = vsel %vm1421_vm11, %v2274_v38, %v1418_v63 }
0x16a6   :  { %v1427_v47 = vsel %vm1424_vm12, %v1426_v7, %v1422_v9 }
0x16a7   :  { %v1429_v50 = vmul.f32 2.0, %v1427_v47  ;;  %v1431_v52 = vmul.f32 %v1427_v47, %v2898_v55 }
0x16a9   :  { %v2116_v10 = vadd.f32 -1.0, %v1429_v50 }
0x16ab   :  { %1433 = vrot.lane.b32.xlu0 %v2116_v10, %s2447_s11 }
0x171d   :  { %v1434_v12 = vpop.permute.xlu0 %1433 }
0x171e   :  { %v1436_v13 = vmul.f32 %v1434_v12, %v1427_v47 }
0x1720   :  { %1438 = vrot.lane.b32.xlu2 %v1436_v13, %s2448_s12 }
0x177a   :  { %v1439_v14 = vpop.permute.xlu2 %1438 }
0x177b   :  { %v2947_v16 = vadd.f32 %v1439_v14, %v1431_v52 }
0x177d   :  { %2275 = vtanh.f32 %v2947_v16 }
0x1783   :  { %v2276_v17 = vpop.eup %2275 }
0x1784   :  { %1444 = vrot.lane.b32.xlu0 %v2276_v17, %s2447_s11 }
0x178c   :  { %1362 = vrot.lane.b32.xlu0 %v1360_v2, %s2448_s12 }
0x17f6   :  { %v1445_v18 = vpop.permute.xlu0 %1444 }
0x17f7   :  { %v1447_v20 = vmul.f32 %v1445_v18, %v1427_v47 }
0x17f9   :  { %1471 = vrot.lane.b32.xlu2 %v1447_v20, %s2448_s12 }
0x17fe   :  { %v1363_v21 = vpop.permute.xlu0 %1362 }
0x17ff   :  { %1365 = vst.msk [vmem:[#allocation2 + $0xe] sm:$0x3] %vm279_vm13, %v1363_v21  ;;  %2117 = vmatmul.msk.f32.vlgmr.msra.gmra.mxu1 %vm126_vm4, %v1363_v21 }
0x1800   :  { %1887 = vmatpush.msra.mxu1 %v2818_v40 }
0x1802   :  { %1888 = vmatpush.msra.mxu1 %v2824_v44 }
0x1804   :  { %1889 = vmatpush.msra.mxu1 %v2827_v45 }
0x1806   :  { %1890 = vmatpush.msra.mxu1 %v2830_v43 }
0x1853   :  { %v1472_v55 = vpop.permute.xlu2 %1471 }
0x1854   :  { %2118 = vmatmul.msk.f32.vlgmr.msra.gmra.mxu2 %vm126_vm4, %v1472_v55  ;;  %2121 = vmatmul.msk.f32.vlgmr.msra.gmra.mxu3 %vm126_vm4, %v1472_v55 }
0x1855   :  { %1954 = vmatpush.msra.mxu2 %v2795_v35  ;;  %1979 = vmatpush.msra.mxu3 %v2798_v42 }
0x1857   :  { %1955 = vmatpush.msra.mxu2 %v2801_v15  ;;  %1980 = vmatpush.msra.mxu3 %v2804_v5 }
0x1859   :  { %1956 = vmatpush.msra.mxu2 %v2807_v36  ;;  %1981 = vmatpush.msra.mxu3 %v2810_v37 }
0x185b   :  { %1957 = vmatpush.msra.mxu2 %v2815_v39  ;;  %1982 = vmatpush.msra.mxu3 %v2821_v41 }
0x187c   :  { %v1467_v40 = vpop.f32.mrf.mxu1 }
0x187d   :  { %v1468_v44 = vadd.f32 %v2885_v59, %v1467_v40 }
0x18d7   :  { %v1492_v45 = vpop.f32.mrf.mxu2  ;;  %v1564_v1 = vpop.f32.mrf.mxu3 }
0x18d8   :  { %v1493_v43 = vadd.f32 %v1492_v45, %v1468_v44  ;;  %v1565_v56 = vadd.f32 %v2842_v48, %v1564_v1 }
0x18da   :  { %v2119_v35 = vmul.f32 -1.442695, %v1493_v43 }
0x18dc   :  { %2277 = vpow2.f32 %v2119_v35 }
0x18e2   :  { %v2278_v42 = vpop.eup %2277 }
0x18e3   :  { %v1498_v60 = vadd.f32 1.0, %v2278_v42 }
0x18e5   :  { %2279 = vrcp.f32 %v1498_v60  ;;  %v1510_v36 = vand.u32 2147483648, %v1498_v60  ;;  %v1508_v37 = vand.u32 2147483647, %v1498_v60  ;;  %vm1504_vm15 = vweird.f32 %v1498_v60 }
0x18e7   :  { %v1511_v41 = vor.u32 1.1754944e-38, %v1510_v36  ;;  %vm1509_vm1 = vcmp.eq.f32.partialorder %v1508_v37, 8.507059e+37 }
0x18eb   :  { %v2280_v15 = vpop.eup %2279 }
0x18ec   :  { %v1500_v5 = vmul.f32 %v2280_v15, %v1498_v60  ;;  %vm1505_vm14 = vweird.f32 %v2280_v15 }
0x18ed   :  { %vm1506_vm0 = vmor %vm1504_vm15, %vm1505_vm14 }
0x18ee   :  { %v1501_v22 = vsub.f32 1.0, %v1500_v5 }
0x18f0   :  { %v1502_v24 = vmul.f32 %v2280_v15, %v1501_v22 }
0x18f2   :  { %v1503_v39 = vadd.f32 %v2280_v15, %v1502_v24 }
0x18f4   :  { %v1507_v25 = vsel %vm1506_vm0, %v2280_v15, %v1503_v39 }
0x18f5   :  { %v1512_v28 = vsel %vm1509_vm1, %v1511_v41, %v1507_v25 }
0x18f6   :  { %v1514_v29 = vmul.f32 2.0, %v1512_v28  ;;  %v1516_v2 = vmul.f32 %v1512_v28, %v2930_v31 }
0x18f8   :  { %v2120_v30 = vadd.f32 -1.0, %v1514_v29 }
0x18fa   :  { %1518 = vrot.lane.b32.xlu2 %v2120_v30, %s2447_s11 }
0x1954   :  { %v1519_v32 = vpop.permute.xlu2 %1518 }
0x1955   :  { %v1521_v19 = vmul.f32 %v1519_v32, %v1512_v28 }
0x1957   :  { %1523 = vrot.lane.b32.xlu0 %v1521_v19, %s2448_s12 }
0x19c9   :  { %v1524_v3 = vpop.permute.xlu0 %1523 }
0x19ca   :  { %v2973_v4 = vadd.f32 %v1524_v3, %v1516_v2 }
0x19cc   :  { %2281 = vtanh.f32 %v2973_v4 }
0x19d2   :  { %v2282_v49 = vpop.eup %2281 }
0x19d3   :  { %1529 = vrot.lane.b32.xlu2 %v2282_v49, %s2447_s11 }
0x1a2d   :  { %v1530_v23 = vpop.permute.xlu2 %1529 }
0x1a2e   :  { %v1532_v11 = vmul.f32 %v1530_v23, %v1512_v28 }
0x1a30   :  { %v1538_v51 = vmul.f32 %v1532_v11, %v2934_v26 }
0x1a32   :  { %1540 = vrot.lane.b32.xlu0 %v1538_v51, %s2448_s12 }
0x1aa4   :  { %v1541_v53 = vpop.permute.xlu0 %1540 }
0x1aa5   :  { %v1543_v27 = vsel %vm279_vm13, %v1541_v53, 0.0 }
0x1aa6   :  { %1544 = vadd.xlane.f32.xlu2 %v1543_v27 }
0x1b19   :  { %v1545_v54 = vpop.xlane.xlu2 %1544 }
0x1b1a   :  { %v1546_v31 = vadd.f32 %v2939_v8, %v1545_v54 }
0x1b1c   :  { %1569 = vperm.xlu1 %2169, %v1546_v31  }
0x1b24   :  { %1534 = vrot.lane.b32.xlu1 %v1532_v11, %s2448_s12 }
0x1b8e   :  { %v1570_v33 = vpop.permute.xlu1 %1569 }
0x1b8f   :  { %v1572_v57 = vmul.f32 %v2836_v46, %v1570_v33 }
0x1b91   :  { %v1573_v38 = vadd.f32 %v1572_v57, %v1565_v56 }
0x1b93   :  { %v2122_v58 = vmul.f32 -1.442695, %v1573_v38 }
0x1b95   :  { %2283 = vpow2.f32 %v2122_v58 }
0x1b96   :  { %v1535_v34 = vpop.permute.xlu1 %1534 }
0x1b97   :  { %1537 = vst.msk [vmem:[#allocation2 + $0x10] sm:$0x3] %vm279_vm13, %v1535_v34  ;;  %2124 = vmatmul.msk.f32.vlgmr.msrb.gmra.mxu0 %vm126_vm4, %v1535_v34 }
0x1b9b   :  { %v2284_v61 = vpop.eup %2283 }
0x1b9c   :  { %v1577_v6 = vadd.f32 1.0, %v2284_v61 }
0x1b9e   :  { %2285 = vrcp.f32 %v1577_v6  ;;  %v1589_v9 = vand.u32 2147483648, %v1577_v6  ;;  %v1587_v50 = vand.u32 2147483647, %v1577_v6  ;;  %vm1583_vm3 = vweird.f32 %v1577_v6 }
0x1ba0   :  { %v1590_v12 = vor.u32 1.1754944e-38, %v1589_v9  ;;  %vm1588_vm6 = vcmp.eq.f32.partialorder %v1587_v50, 8.507059e+37 }
0x1ba4   :  { %v2286_v62 = vpop.eup %2285 }
0x1ba5   :  { %v1579_v63 = vmul.f32 %v2286_v62, %v1577_v6  ;;  %vm1584_vm2 = vweird.f32 %v2286_v62 }
0x1ba6   :  { %vm1585_vm5 = vmor %vm1583_vm3, %vm1584_vm2 }
0x1ba7   :  { %v1580_v7 = vsub.f32 1.0, %v1579_v63 }
0x1ba9   :  { %v1581_v47 = vmul.f32 %v2286_v62, %v1580_v7 }
0x1bab   :  { %v1582_v10 = vadd.f32 %v2286_v62, %v1581_v47 }
0x1bad   :  { %v1586_v13 = vsel %vm1585_vm5, %v2286_v62, %v1582_v10 }
0x1bae   :  { %v1591_v52 = vsel %vm1588_vm6, %v1590_v12, %v1586_v13 }
0x1baf   :  { %v1593_v14 = vmul.f32 2.0, %v1591_v52  ;;  %v1595_v21 = vmul.f32 %v1591_v52, %v2947_v16 }
0x1bb1   :  { %v2123_v17 = vadd.f32 -1.0, %v1593_v14 }
0x1bb3   :  { %1597 = vrot.lane.b32.xlu0 %v2123_v17, %s2447_s11 }
0x1c14   :  { %v1631_v42 = vpop.f32.mrf.mxu0 }
0x1c15   :  { %v1632_v16 = vadd.f32 %v2885_v59, %v1631_v42 }
0x1c25   :  { %v1598_v18 = vpop.permute.xlu0 %1597 }
0x1c26   :  { %v1600_v20 = vmul.f32 %v1598_v18, %v1591_v52 }
0x1c28   :  { %1602 = vrot.lane.b32.xlu0 %v1600_v20, %s2448_s12 }
0x1c9a   :  { %v1603_v55 = vpop.permute.xlu0 %1602 }
0x1c9b   :  { %v2989_v40 = vadd.f32 %v1603_v55, %v1595_v21 }
0x1c9d   :  { %2287 = vtanh.f32 %v2989_v40 }
0x1ca3   :  { %v2288_v44 = vpop.eup %2287 }
0x1ca4   :  { %1608 = vrot.lane.b32.xlu0 %v2288_v44, %s2447_s11 }
0x1d16   :  { %v1609_v45 = vpop.permute.xlu0 %1608 }
0x1d17   :  { %v1611_v43 = vmul.f32 %v1609_v45, %v1591_v52 }
0x1d19   :  { %1635 = vrot.lane.b32.xlu0 %v1611_v43, %s2448_s12 }
0x1d8b   :  { %v1636_v35 = vpop.permute.xlu0 %1635 }
0x1d8c   :  { %2125 = vmatmul.msk.f32.vlgmr.msrb.gmra.mxu1 %vm126_vm4, %v1636_v35  ;;  %2128 = vmatmul.msk.f32.vlgmr.msrb.gmra.mxu2 %vm126_vm4, %v1636_v35 }
0x1e09   :  { %v1656_v60 = vpop.f32.mrf.mxu1 }
0x1e0a   :  { %v1657_v15 = vadd.f32 %v1656_v60, %v1632_v16 }
0x1e0c   :  { %v2126_v5 = vmul.f32 -1.442695, %v1657_v15 }
0x1e0e   :  { %2289 = vpow2.f32 %v2126_v5 }
0x1e0f   :  { %v1728_v38 = vpop.f32.mrf.mxu2 }
0x1e10   :  { %v1729_v34 = vadd.f32 %v2842_v48, %v1728_v38 }
0x1e14   :  { %v2290_v22 = vpop.eup %2289 }
0x1e15   :  { %v1662_v36 = vadd.f32 1.0, %v2290_v22 }
0x1e17   :  { %2291 = vrcp.f32 %v1662_v36  ;;  %v1674_v41 = vand.u32 2147483648, %v1662_v36  ;;  %v1672_v28 = vand.u32 2147483647, %v1662_v36  ;;  %vm1668_vm8 = vweird.f32 %v1662_v36 }
0x1e19   :  { %v1675_v30 = vor.u32 1.1754944e-38, %v1674_v41  ;;  %vm1673_vm10 = vcmp.eq.f32.partialorder %v1672_v28, 8.507059e+37 }
0x1e1d   :  { %v2292_v24 = vpop.eup %2291 }
0x1e1e   :  { %v1664_v37 = vmul.f32 %v2292_v24, %v1662_v36  ;;  %vm1669_vm7 = vweird.f32 %v2292_v24 }
0x1e1f   :  { %vm1670_vm9 = vmor %vm1668_vm8, %vm1669_vm7 }
0x1e20   :  { %v1665_v39 = vsub.f32 1.0, %v1664_v37 }
0x1e22   :  { %v1666_v25 = vmul.f32 %v2292_v24, %v1665_v39 }
0x1e24   :  { %v1667_v29 = vadd.f32 %v2292_v24, %v1666_v25 }
0x1e26   :  { %v1671_v32 = vsel %vm1670_vm9, %v2292_v24, %v1667_v29 }
0x1e27   :  { %v1676_v19 = vsel %vm1673_vm10, %v1675_v30, %v1671_v32 }
0x1e28   :  { %v1678_v2 = vmul.f32 2.0, %v1676_v19  ;;  %v1680_v11 = vmul.f32 %v1676_v19, %v2973_v4 }
0x1e2a   :  { %v2127_v3 = vadd.f32 -1.0, %v1678_v2 }
0x1e2c   :  { %1682 = vrot.lane.b32.xlu1 %v2127_v3, %s2447_s11 }
0x1e9e   :  { %v1683_v49 = vpop.permute.xlu1 %1682 }
0x1e9f   :  { %v1685_v23 = vmul.f32 %v1683_v49, %v1676_v19 }
0x1ea1   :  { %1687 = vrot.lane.b32.xlu0 %v1685_v23, %s2448_s12 }
0x1f13   :  { %v1688_v51 = vpop.permute.xlu0 %1687 }
0x1f14   :  { %v3000_v53 = vadd.f32 %v1688_v51, %v1680_v11 }
0x1f16   :  { %2293 = vtanh.f32 %v3000_v53 }
0x1f1c   :  { %v2294_v27 = vpop.eup %2293 }
0x1f1d   :  { %1693 = vrot.lane.b32.xlu2 %v2294_v27, %s2447_s11 }
0x1f77   :  { %v1694_v54 = vpop.permute.xlu2 %1693 }
0x1f78   :  { %v1696_v31 = vmul.f32 %v1694_v54, %v1676_v19 }
0x1f7a   :  { %v1702_v1 = vmul.f32 %v1696_v31, %v2934_v26 }
0x1f7c   :  { %1704 = vrot.lane.b32.xlu1 %v1702_v1, %s2448_s12 }
0x1fee   :  { %v1705_v33 = vpop.permute.xlu1 %1704 }
0x1fef   :  { %v1707_v56 = vsel %vm279_vm13, %v1705_v33, 0.0 }
0x1ff0   :  { %1708 = vadd.xlane.f32.xlu0 %v1707_v56 }
0x2063   :  { %v1709_v57 = vpop.xlane.xlu0 %1708 }
0x2064   :  { %v1710_v4 = vadd.f32 %v2939_v8, %v1709_v57 }
0x2066   :  { %1733 = vperm.xlu1 %2169, %v1710_v4  }
0x20d8   :  { %v1734_v58 = vpop.permute.xlu1 %1733 }
0x20d9   :  { %v1736_v61 = vmul.f32 %v2836_v46, %v1734_v58 }
0x20db   :  { %v1737_v6 = vadd.f32 %v1736_v61, %v1729_v34 }
0x20dd   :  { %v2129_v62 = vmul.f32 -1.442695, %v1737_v6  ;;  %v2335_v6 = vld [vmem:[%s3080_s2] ss:$0 sm:$0xff] }
0x20df   :  { %2295 = vpow2.f32 %v2129_v62 }
0x20e5   :  { %v2296_v63 = vpop.eup %2295 }
0x20e6   :  { %v1741_v7 = vadd.f32 1.0, %v2296_v63 }
0x20e8   :  { %2297 = vrcp.f32 %v1741_v7  ;;  %v1753_v10 = vand.u32 2147483648, %v1741_v7  ;;  %v1751_v13 = vand.u32 2147483647, %v1741_v7  ;;  %vm1747_vm12 = vweird.f32 %v1741_v7 }
0x20ea   :  { %v1754_v14 = vor.u32 1.1754944e-38, %v1753_v10  ;;  %vm1752_vm15 = vcmp.eq.f32.partialorder %v1751_v13, 8.507059e+37 }
0x20ee   :  { %v2298_v9 = vpop.eup %2297 }
0x20ef   :  { %v1743_v47 = vmul.f32 %v2298_v9, %v1741_v7  ;;  %vm1748_vm11 = vweird.f32 %v2298_v9 }
0x20f0   :  { %vm1749_vm14 = vmor %vm1747_vm12, %vm1748_vm11 }
0x20f1   :  { %v1744_v50 = vsub.f32 1.0, %v1743_v47 }
0x20f3   :  { %v1745_v12 = vmul.f32 %v2298_v9, %v1744_v50 }
0x20f5   :  { %v1746_v52 = vadd.f32 %v2298_v9, %v1745_v12 }
0x20f7   :  { %v1750_v48 = vsel %vm1749_vm14, %v2298_v9, %v1746_v52  ;;  %vm2049_vm14 = vcmask 7168  }
0x20f8   :  { %v1755_v46 = vsel %vm1752_vm15, %v1754_v14, %v1750_v48 }
0x20f9   :  { %v1757_v17 = vmul.f32 2.0, %v1755_v46  ;;  %v1759_v55 = vmul.f32 %v1755_v46, %v2989_v40 }
0x20fb   :  { %v2130_v18 = vadd.f32 -1.0, %v1757_v17 }
0x20fd   :  { %1761 = vrot.lane.b32.xlu1 %v2130_v18, %s2447_s11 }
0x216f   :  { %v1762_v20 = vpop.permute.xlu1 %1761 }
0x2170   :  { %v1764_v21 = vmul.f32 %v1762_v20, %v1755_v46 }
0x2172   :  { %1766 = vrot.lane.b32.xlu2 %v1764_v21, %s2448_s12 }
0x217a   :  { %1698 = vrot.lane.b32.xlu2 %v1696_v31, %s2448_s12 }
0x21cc   :  { %v1767_v44 = vpop.permute.xlu2 %1766 }
0x21cd   :  { %v3014_v45 = vadd.f32 %v1767_v44, %v1759_v55 }
0x21cf   :  { %2299 = vtanh.f32 %v3014_v45 }
0x21d4   :  { %v1699_v43 = vpop.permute.xlu2 %1698 }
0x21d5   :  { %v2300_v35 = vpop.eup %2299  ;;  %1701 = vst.msk [vmem:[#allocation2 + $0x12] sm:$0x3] %vm279_vm13, %v1699_v43  ;;  %2131 = vmatmul.msk.f32.vlgmr.msrb.gmra.mxu3 %vm126_vm4, %v1699_v43 }
0x21d6   :  { %1772 = vrot.lane.b32.xlu1 %v2300_v35, %s2447_s11 }
0x2248   :  { %v1773_v42 = vpop.permute.xlu1 %1772 }
0x2249   :  { %v1775_v16 = vmul.f32 %v1773_v42, %v1755_v46 }
0x224b   :  { %1799 = vrot.lane.b32.xlu1 %v1775_v16, %s2448_s12 }
0x2258   :  { %v1795_v40 = vpop.f32.mrf.mxu3 }
0x2259   :  { %v1796_v15 = vadd.f32 %v2885_v59, %v1795_v40 }
0x22bd   :  { %v1800_v60 = vpop.permute.xlu1 %1799 }
0x22be   :  { %2132 = vmatmul.msk.f32.vlgmr.msra.gmra.mxu0 %vm126_vm4, %v1800_v60  ;;  %2135 = vmatmul.msk.f32.vlgmr.msra.gmra.mxu1 %vm126_vm4, %v1800_v60 }
0x233b   :  { %v1820_v5 = vpop.f32.mrf.mxu0  ;;  %v1892_v34 = vpop.f32.mrf.mxu1 }
0x233c   :  { %v1821_v22 = vadd.f32 %v1820_v5, %v1796_v15  ;;  %v1893_v62 = vadd.f32 %v2335_v6, %v1892_v34 }
0x233e   :  { %v2133_v36 = vmul.f32 -1.442695, %v1821_v22 }
0x2340   :  { %2301 = vpow2.f32 %v2133_v36 }
0x2346   :  { %v2302_v24 = vpop.eup %2301 }
0x2347   :  { %v1826_v37 = vadd.f32 1.0, %v2302_v24 }
0x2349   :  { %2303 = vrcp.f32 %v1826_v37  ;;  %v1838_v28 = vand.u32 2147483648, %v1826_v37  ;;  %v1836_v30 = vand.u32 2147483647, %v1826_v37  ;;  %vm1832_vm1 = vweird.f32 %v1826_v37 }
0x234b   :  { %v1839_v19 = vor.u32 1.1754944e-38, %v1838_v28  ;;  %vm1837_vm3 = vcmp.eq.f32.partialorder %v1836_v30, 8.507059e+37 }
0x234f   :  { %v2304_v39 = vpop.eup %2303 }
0x2350   :  { %v1828_v41 = vmul.f32 %v2304_v39, %v1826_v37  ;;  %vm1833_vm0 = vweird.f32 %v2304_v39 }
0x2351   :  { %vm1834_vm2 = vmor %vm1832_vm1, %vm1833_vm0 }
0x2352   :  { %v1829_v25 = vsub.f32 1.0, %v1828_v41 }
0x2354   :  { %v1830_v29 = vmul.f32 %v2304_v39, %v1829_v25 }
0x2356   :  { %v1831_v32 = vadd.f32 %v2304_v39, %v1830_v29 }
0x2358   :  { %v1835_v2 = vsel %vm1834_vm2, %v2304_v39, %v1831_v32 }
0x2359   :  { %v1840_v3 = vsel %vm1837_vm3, %v1839_v19, %v1835_v2 }
0x235a   :  { %v1842_v49 = vmul.f32 2.0, %v1840_v3  ;;  %v1844_v27 = vmul.f32 %v1840_v3, %v3000_v53 }
0x235c   :  { %v2134_v23 = vadd.f32 -1.0, %v1842_v49 }
0x235e   :  { %1846 = vrot.lane.b32.xlu2 %v2134_v23, %s2447_s11 }
0x23b8   :  { %v1847_v11 = vpop.permute.xlu2 %1846 }
0x23b9   :  { %v1849_v51 = vmul.f32 %v1847_v11, %v1840_v3 }
0x23bb   :  { %1851 = vrot.lane.b32.xlu1 %v1849_v51, %s2448_s12 }
0x242d   :  { %v1852_v54 = vpop.permute.xlu1 %1851 }
0x242e   :  { %v3027_v31 = vadd.f32 %v1852_v54, %v1844_v27 }
0x2430   :  { %2305 = vtanh.f32 %v3027_v31 }
0x2436   :  { %v2306_v1 = vpop.eup %2305 }
0x2437   :  { %1857 = vrot.lane.b32.xlu2 %v2306_v1, %s2447_s11  ;;  %v2030_v1 = vld [vmem:[#allocation2] sm:$0xff] }
0x2491   :  { %v1858_v33 = vpop.permute.xlu2 %1857 }
0x2492   :  { %v1860_v56 = vmul.f32 %v1858_v33, %v1840_v3  ;;  %v2034_v33 = vmul.f32 %v2925_v0, %v2030_v1 }
0x2494   :  { %v1866_v57 = vmul.f32 %v1860_v56, %v2934_v26  ;;  %v2336_v26 = vld [vmem:[%s3079_s1] ss:$0 sm:$0xff] }
0x2496   :  { %1868 = vrot.lane.b32.xlu0 %v1866_v57, %s2448_s12 }
0x2508   :  { %v1869_v4 = vpop.permute.xlu0 %1868 }
0x2509   :  { %v1871_v38 = vsel %vm279_vm13, %v1869_v4, 0.0 }
0x250a   :  { %1872 = vadd.xlane.f32.xlu1 %v1871_v38 }
0x257d   :  { %v1873_v58 = vpop.xlane.xlu1 %1872 }
0x257e   :  { %v1874_v53 = vadd.f32 %v2939_v8, %v1873_v58 }
0x2580   :  { %1897 = vperm.xlu2 %2168, %v1874_v53  }
0x25da   :  { %v1898_v61 = vpop.permute.xlu2 %1897 }
0x25db   :  { %v1900_v63 = vmul.f32 %v2336_v26, %v1898_v61 }
0x25dd   :  { %v1901_v7 = vadd.f32 %v1900_v63, %v1893_v62 }
0x25df   :  { %v2136_v9 = vmul.f32 -1.442695, %v1901_v7 }
0x25e1   :  { %2307 = vpow2.f32 %v2136_v9 }
0x25e7   :  { %v2308_v47 = vpop.eup %2307 }
0x25e8   :  { %v1905_v50 = vadd.f32 1.0, %v2308_v47 }
0x25ea   :  { %2309 = vrcp.f32 %v1905_v50  ;;  %v1917_v52 = vand.u32 2147483648, %v1905_v50  ;;  %v1915_v48 = vand.u32 2147483647, %v1905_v50  ;;  %vm1911_vm6 = vweird.f32 %v1905_v50 }
0x25ec   :  { %v1918_v17 = vor.u32 1.1754944e-38, %v1917_v52  ;;  %vm1916_vm8 = vcmp.eq.f32.partialorder %v1915_v48, 8.507059e+37 }
0x25f0   :  { %v2310_v10 = vpop.eup %2309 }
0x25f1   :  { %v1907_v12 = vmul.f32 %v2310_v10, %v1905_v50  ;;  %vm1912_vm5 = vweird.f32 %v2310_v10 }
0x25f2   :  { %vm1913_vm7 = vmor %vm1911_vm6, %vm1912_vm5 }
0x25f3   :  { %v1908_v13 = vsub.f32 1.0, %v1907_v12 }
0x25f5   :  { %v1909_v14 = vmul.f32 %v2310_v10, %v1908_v13 }
0x25f7   :  { %v1910_v46 = vadd.f32 %v2310_v10, %v1909_v14 }
0x25f9   :  { %v1914_v18 = vsel %vm1913_vm7, %v2310_v10, %v1910_v46 }
0x25fa   :  { %v1919_v20 = vsel %vm1916_vm8, %v1918_v17, %v1914_v18 }
0x25fb   :  { %v1921_v21 = vmul.f32 2.0, %v1919_v20  ;;  %v1923_v35 = vmul.f32 %v1919_v20, %v3014_v45 }
0x25fd   :  { %v2137_v55 = vadd.f32 -1.0, %v1921_v21 }
0x25ff   :  { %1925 = vrot.lane.b32.xlu2 %v2137_v55, %s2447_s11 }
0x2659   :  { %v1926_v44 = vpop.permute.xlu2 %1925 }
0x265a   :  { %v1928_v43 = vmul.f32 %v1926_v44, %v1919_v20 }
0x265c   :  { %1930 = vrot.lane.b32.xlu0 %v1928_v43, %s2448_s12 }
0x2664   :  { %1862 = vrot.lane.b32.xlu0 %v1860_v56, %s2448_s12  ;;  %v2037_v56 = vsel %vm126_vm4, %v2034_v33, 0.0 }
0x26ce   :  { %v1931_v42 = vpop.permute.xlu0 %1930 }
0x26cf   :  { %v1933_v16 = vadd.f32 %v1931_v42, %v1923_v35 }
0x26d1   :  { %2311 = vtanh.f32 %v1933_v16 }
0x26d6   :  { %v1863_v60 = vpop.permute.xlu0 %1862 }
0x26d7   :  { %v2312_v40 = vpop.eup %2311  ;;  %1865 = vst.msk [vmem:[#allocation2 + $0x14] sm:$0x3] %vm279_vm13, %v1863_v60  ;;  %2138 = vmatmul.msk.f32.vlgmr.msra.gmra.mxu2 %vm126_vm4, %v1863_v60 }
0x26d8   :  { %1936 = vrot.lane.b32.xlu2 %v2312_v40, %s2447_s11 }
0x2732   :  { %v1937_v15 = vpop.permute.xlu2 %1936 }
0x2733   :  { %v1939_v5 = vmul.f32 %v1937_v15, %v1919_v20 }
0x2735   :  { %1963 = vrot.lane.b32.xlu2 %v1939_v5, %s2448_s12 }
0x275a   :  { %v1959_v36 = vpop.f32.mrf.mxu2 }
0x275b   :  { %v1960_v45 = vadd.f32 %v2885_v59, %v1959_v36 }
0x278f   :  { %v1964_v22 = vpop.permute.xlu2 %1963 }
0x2790   :  { %2139 = vmatmul.msk.f32.vlgmr.msra.gmra.mxu3 %vm126_vm4, %v1964_v22 }
0x2813   :  { %v1984_v24 = vpop.f32.mrf.mxu3 }
0x2814   :  { %v1985_v37 = vadd.f32 %v1984_v24, %v1960_v45 }
0x2816   :  { %v2140_v39 = vmul.f32 -1.442695, %v1985_v37 }
0x2818   :  { %2313 = vpow2.f32 %v2140_v39 }
0x281e   :  { %v2314_v41 = vpop.eup %2313 }
0x281f   :  { %v1990_v25 = vadd.f32 1.0, %v2314_v41 }
0x2821   :  { %2315 = vrcp.f32 %v1990_v25  ;;  %v2002_v32 = vand.u32 2147483648, %v1990_v25  ;;  %v2000_v2 = vand.u32 2147483647, %v1990_v25  ;;  %vm1996_vm10 = vweird.f32 %v1990_v25 }
0x2823   :  { %v2003_v49 = vor.u32 1.1754944e-38, %v2002_v32  ;;  %vm2001_vm12 = vcmp.eq.f32.partialorder %v2000_v2, 8.507059e+37 }
0x2827   :  { %v2316_v28 = vpop.eup %2315 }
0x2828   :  { %v1992_v29 = vmul.f32 %v2316_v28, %v1990_v25  ;;  %vm1997_vm9 = vweird.f32 %v2316_v28 }
0x2829   :  { %vm1998_vm11 = vmor %vm1996_vm10, %vm1997_vm9 }
0x282a   :  { %v1993_v30 = vsub.f32 1.0, %v1992_v29 }
0x282c   :  { %v1994_v19 = vmul.f32 %v2316_v28, %v1993_v30 }
0x282e   :  { %v1995_v3 = vadd.f32 %v2316_v28, %v1994_v19 }
0x2830   :  { %v1999_v23 = vsel %vm1998_vm11, %v2316_v28, %v1995_v3 }
0x2831   :  { %v2004_v59 = vsel %vm2001_vm12, %v2003_v49, %v1999_v23 }
0x2832   :  { %v2006_v11 = vmul.f32 2.0, %v2004_v59  ;;  %v2008_v57 = vmul.f32 %v2004_v59, %v3027_v31  ;;  %v2031_v31 = vld [vmem:[#allocation2 + $0x8] sm:$0xff] }
0x2833   :  { %v2035_v62 = vmul.f32 %v2925_v0, %v2031_v31 }
0x2834   :  { %v2141_v51 = vadd.f32 -1.0, %v2006_v11 }
0x2835   :  { %v2040_v26 = vsel %vm126_vm4, %v2035_v62, 0.0 }
0x2836   :  { %2010 = vrot.lane.b32.xlu0 %v2141_v51, %s2447_s11 }
0x28a8   :  { %v2011_v27 = vpop.permute.xlu0 %2010 }
0x28a9   :  { %v2013_v54 = vmul.f32 %v2011_v27, %v2004_v59 }
0x28ab   :  { %2015 = vrot.lane.b32.xlu2 %v2013_v54, %s2448_s12 }
0x28d4   :  { %2038 = vadd.xlane.f32.xlu2 %v2037_v56 }
0x2905   :  { %v2016_v4 = vpop.permute.xlu2 %2015 }
0x2906   :  { %v2018_v38 = vadd.f32 %v2016_v4, %v2008_v57 }
0x2908   :  { %2317 = vtanh.f32 %v2018_v38 }
0x290e   :  { %v2318_v58 = vpop.eup %2317 }
0x290f   :  { %2021 = vrot.lane.b32.xlu1 %v2318_v58, %s2447_s11 }
0x2947   :  { %v2039_v53 = vpop.xlane.xlu2 %2038 }
0x2948   :  { %v2046_v34 = vadd.f32 %v2939_v8, %v2039_v53 }
0x294a   :  { %2050 = vst.msk [vmem:[%s3087_s9] sm:$0xff] %vm2049_vm14, %v2046_v34 }
0x2981   :  { %v2022_v61 = vpop.permute.xlu1 %2021 }
0x2982   :  { %v2024_v6 = vmul.f32 %v2022_v61, %v2004_v59 }
0x2984   :  { %2026 = vrot.lane.b32.xlu0 %v2024_v6, %s2448_s12 }
0x29ae   :  { %2041 = vadd.xlane.f32.xlu0 %v2040_v26 }
0x29f6   :  { %v2027_v63 = vpop.permute.xlu0 %2026 }
0x29f7   :  { %2029 = vst.msk [vmem:[#allocation2 + $0x16] sm:$0x3] %vm279_vm13, %v2027_v63 }
0x29fe   :  { %v2032_v7 = vld [vmem:[#allocation2 + $0x10] sm:$0xff] }
0x29ff   :  { %v2036_v9 = vmul.f32 %v2925_v0, %v2032_v7 }
0x2a01   :  { %v2043_v47 = vsel %vm126_vm4, %v2036_v9, 0.0 }
0x2a02   :  { %2044 = vadd.xlane.f32.xlu1 %v2043_v47 }
0x2a21   :  { %v2042_v50 = vpop.xlane.xlu0 %2041 }
0x2a22   :  { %v2047_v10 = vadd.f32 %v2939_v8, %v2042_v50 }
0x2a24   :  { %2051 = vst.msk [vmem:[%s3087_s9 + $0x8] sm:$0xff] %vm2049_vm14, %v2047_v10 }
0x2a75   :  { %v2045_v12 = vpop.xlane.xlu1 %2044 }
0x2a76   :  { %v2048_v13 = vadd.f32 %v2939_v8, %v2045_v12 }
0x2a78   :  { %2052 = vst.msk [vmem:[%s3087_s9 + $0x10] sm:$0xff] %vm2049_vm14, %v2048_v13 }
0x2a79   :  { %2057 = vsyncpa [#allocation5], 1 }
0x2a7a   :  { %2058 = vsyncpa [#allocation7], 1 }
0x2a7b   :  { %2059 = vsyncpa [#allocation10], 1 }

</bundles_post_ra>
